<compile_context>
chip_gen: v7x
topology: tpu7x:2x2x1
jax: 0.10.0
libtpu: 0.0.40
codegen_flags: <defaults>
</compile_context>

<pallas_src>
import jax
import jax.numpy as jnp
from jax.experimental import pallas as pl
from jax.experimental.pallas import tpu as pltpu


_BN_EPS = 1e-5


# --------------------------------- kernels ----------------------------------

def _bn_leaky_f32(acc, g, be):
    """Training-mode BatchNorm (batch stats over rows, biased var) + LeakyReLU."""
    mean = jnp.mean(acc, axis=0, keepdims=True)
    xc = acc - mean                                   # centered -> two-pass var
    var = jnp.mean(xc * xc, axis=0, keepdims=True)
    y = xc * (g * jax.lax.rsqrt(var + _BN_EPS)) + be
    return jnp.where(y > 0, y, 0.2 * y)


def _conv_bias_leaky_kernel(x_ref, w_ref, b_ref, o_ref):
    """One M-tile of (TM,K)@(K,OC) + bias + LeakyReLU(0.2). bf16 in/out, f32 acc."""
    acc = jnp.dot(x_ref[...], w_ref[...], preferred_element_type=jnp.float32)
    acc = acc + b_ref[...]
    o_ref[...] = jnp.where(acc > 0, acc, 0.2 * acc).astype(o_ref.dtype)


def _conv_bn_leaky_kernel(x_ref, w_ref, g_ref, be_ref, o_ref):
    """Full-M conv matmul, then in-kernel BatchNorm(batch stats) + LeakyReLU.
    Conv bias omitted: BN with batch statistics is exactly bias-invariant."""
    acc = jnp.dot(x_ref[...], w_ref[...], preferred_element_type=jnp.float32)
    o_ref[...] = _bn_leaky_f32(acc, g_ref[...], be_ref[...]).astype(o_ref.dtype)


def _conv_bn_leaky_head_kernel(x_ref, w_ref, g_ref, be_ref,
                               w4_ref, sel_ref, b4_ref, o_ref):
    """conv3 + BN + LeakyReLU + folded conv4(256->1, 4x4 valid) + bias + sigmoid.
    The (B*16, 256) activation never leaves VMEM; output is just (B, 1)."""
    acc = jnp.dot(x_ref[...], w_ref[...], preferred_element_type=jnp.float32)
    y = _bn_leaky_f32(acc, g_ref[...], be_ref[...])           # (B*16, 256) f32
    # conv4 == dot of each (b, oh, ow) row with its matching 4x4 weight tap,
    # then a per-batch sum over the 16 rows (sel selects rows of each batch).
    prod = y * w4_ref[...]                                     # (B*16, 256)
    per_b = jnp.dot(sel_ref[...], prod,
                    preferred_element_type=jnp.float32)        # (B, 256)
    z = jnp.sum(per_b, axis=1, keepdims=True) + b4_ref[...]    # (B, 1)
    o_ref[...] = jax.nn.sigmoid(z)


# ----------------------------- pallas_call wrappers --------------------------

def _conv_bias_leaky(patches, w, b):
    M, K = patches.shape
    OC = w.shape[1]
    # >=2 grid steps on the 'parallel' axis when M allows it (v7x megacore);
    # one full-extent block otherwise (avoids per-step overhead on v5e/v6e).
    # Everything here is far below the per-generation VMEM limits, so no
    # explicit vmem_limit_bytes / pl.Buffered tuning is needed at this size.
    tm = M // 2 if (M >= 256 and M % 32 == 0) else M
    return pl.pallas_call(
        _conv_bias_leaky_kernel,
        grid=(pl.cdiv(M, tm),),
        in_specs=[pl.BlockSpec((tm, K), lambda i: (i, 0)),
                  pl.BlockSpec((K, OC), lambda i: (0, 0)),     # grid-resident
                  pl.BlockSpec((1, OC), lambda i: (0, 0))],    # grid-resident
        out_specs=pl.BlockSpec((tm, OC), lambda i: (i, 0)),
        out_shape=jax.ShapeDtypeStruct((M, OC), jnp.bfloat16),
        compiler_params=pltpu.CompilerParams(
            dimension_semantics=("parallel",)),
    )(patches, w, b)


def _conv_bn_leaky(patches, w, g, be):
    M, K = patches.shape
    OC = w.shape[1]
    return pl.pallas_call(
        _conv_bn_leaky_kernel,
        grid=(1,),
        in_specs=[pl.BlockSpec((M, K), lambda i: (0, 0)),
                  pl.BlockSpec((K, OC), lambda i: (0, 0)),
                  pl.BlockSpec((1, OC), lambda i: (0, 0)),
                  pl.BlockSpec((1, OC), lambda i: (0, 0))],
        out_specs=pl.BlockSpec((M, OC), lambda i: (0, 0)),
        out_shape=jax.ShapeDtypeStruct((M, OC), jnp.bfloat16),
        compiler_params=pltpu.CompilerParams(
            dimension_semantics=("arbitrary",)),
    )(patches, w, g, be)


def _conv_bn_leaky_head(patches, w, g, be, w4e, sel, b4):
    M, K = patches.shape
    OC = w.shape[1]
    B = sel.shape[0]
    return pl.pallas_call(
        _conv_bn_leaky_head_kernel,
        grid=(1,),
        in_specs=[pl.BlockSpec((M, K), lambda i: (0, 0)),
                  pl.BlockSpec((K, OC), lambda i: (0, 0)),
                  pl.BlockSpec((1, OC), lambda i: (0, 0)),
                  pl.BlockSpec((1, OC), lambda i: (0, 0)),
                  pl.BlockSpec((M, OC), lambda i: (0, 0)),
                  pl.BlockSpec((B, M), lambda i: (0, 0)),
                  pl.BlockSpec((1, 1), lambda i: (0, 0))],
        out_specs=pl.BlockSpec((B, 1), lambda i: (0, 0)),
        out_shape=jax.ShapeDtypeStruct((B, 1), jnp.float32),
        compiler_params=pltpu.CompilerParams(
            dimension_semantics=("arbitrary",)),
    )(patches, w, g, be, w4e, sel, b4)


# --------------------------------- helpers ----------------------------------

def _round_up(n, m):
    return -(-n // m) * m


def _im2col_nhwc(x, k, stride, pad):
    """NHWC -> (B*OH*OW, C*K*K) patch matrix; K ordered (ic, kh, kw)."""
    B, H, W, C = x.shape
    if pad:
        x = jnp.pad(x, ((0, 0), (pad, pad), (pad, pad), (0, 0)))
    OH = (H + 2 * pad - k) // stride + 1
    OW = (W + 2 * pad - k) // stride + 1
    cols = []
    for i in range(k):
        for j in range(k):
            cols.append(x[:, i:i + stride * OH:stride, j:j + stride * OW:stride, :])
    patches = jnp.stack(cols, axis=-1)                 # (B, OH, OW, C, K*K)
    return patches.reshape(B * OH * OW, C * k * k), (B, OH, OW)


# ------------------------------ parameter prep -------------------------------

def init_params(key):
    """Parameters in the PyTorch module's layout (Conv2d: (OC, IC, KH, KW))."""
    ks = jax.random.split(key, 8)

    def conv(kw, kb, oc, ic, k):
        return (0.02 * jax.random.normal(kw, (oc, ic, k, k), jnp.float32),
                0.02 * jax.random.normal(kb, (oc,), jnp.float32))

    w1, b1 = conv(ks[0], ks[1], 64, 3, 4)
    w2, b2 = conv(ks[2], ks[3], 128, 64, 4)
    w3, b3 = conv(ks[4], ks[5], 256, 128, 4)
    w4, b4 = conv(ks[6], ks[7], 1, 256, 4)
    return dict(
        w1=w1, b1=b1,
        w2=w2, b2=b2, g2=jnp.ones((128,), jnp.float32), be2=jnp.zeros((128,), jnp.float32),
        w3=w3, b3=b3, g3=jnp.ones((256,), jnp.float32), be3=jnp.zeros((256,), jnp.float32),
        w4=w4, b4=b4,
    )


def prepare_params(p, batch):
    """One-time weight prep, hoisted out of the jitted forward.
    (OC,IC,KH,KW) -> (K,OC) with K ordered (ic,kh,kw), bf16, K lane-padded."""
    def to2d(w):
        return w.reshape(w.shape[0], -1).T             # (K, OC)

    w1 = to2d(p["w1"])                                  # (48, 64)
    w1 = jnp.pad(w1, ((0, _round_up(w1.shape[0], 128) - w1.shape[0]), (0, 0)))
    # Folded head: w4e[r, c] = w4[0, c, oh, ow] for row r = b*16 + oh*4 + ow;
    # sel[b, r] = 1 iff row r belongs to batch b.
    w4e = jnp.tile(jnp.transpose(p["w4"][0], (1, 2, 0)).reshape(16, 256), (batch, 1))
    sel = jnp.repeat(jnp.eye(batch, dtype=jnp.float32), 16, axis=1)   # (B, B*16)
    return dict(
        w1=w1.astype(jnp.bfloat16), b1=p["b1"].reshape(1, -1).astype(jnp.float32),
        # b2 / b3 are intentionally dropped: training-mode BatchNorm is exactly
        # invariant to a per-channel bias added before it.
        w2=to2d(p["w2"]).astype(jnp.bfloat16),
        g2=p["g2"].reshape(1, -1).astype(jnp.float32),
        be2=p["be2"].reshape(1, -1).astype(jnp.float32),
        w3=to2d(p["w3"]).astype(jnp.bfloat16),
        g3=p["g3"].reshape(1, -1).astype(jnp.float32),
        be3=p["be3"].reshape(1, -1).astype(jnp.float32),
        w4e=w4e.astype(jnp.float32), sel=sel,
        b4=p["b4"].reshape(1, 1).astype(jnp.float32),
    )


# -------------------------------- forward pass --------------------------------

def discriminator_forward(x_nchw, pp):
    """DCGAN Discriminator forward (expects 32x32 RGB input -> (B, 1))."""
    B, _, H, W = x_nchw.shape
    if (H, W) != (32, 32):
        raise ValueError("fused head assumes 32x32 inputs (conv4 is a 4x4 'valid' head)")
    x = jnp.transpose(x_nchw, (0, 2, 3, 1)).astype(jnp.bfloat16)       # NHWC, bf16 once

    # Conv(3->64, k4 s2 p1) + LeakyReLU
    p1, (B, oh, ow) = _im2col_nhwc(x, 4, 2, 1)                         # (B*256, 48)
    p1 = jnp.pad(p1, ((0, 0), (0, pp["w1"].shape[0] - p1.shape[1])))   # K: 48 -> 128
    a1 = _conv_bias_leaky(p1, pp["w1"], pp["b1"]).reshape(B, oh, ow, -1)

    # Conv(64->128, k4 s2 p1) [no bias] + BN + LeakyReLU, one fused kernel
    p2, (B, oh, ow) = _im2col_nhwc(a1, 4, 2, 1)                        # (B*64, 1024)
    a2 = _conv_bn_leaky(p2, pp["w2"], pp["g2"], pp["be2"]).reshape(B, oh, ow, -1)

    # Conv(128->256) [no bias] + BN + LeakyReLU + Conv(256->1) + Sigmoid, one kernel
    p3, _ = _im2col_nhwc(a2, 4, 2, 1)                                  # (B*16, 2048)
    return _conv_bn_leaky_head(p3, pp["w3"], pp["g3"], pp["be3"],
                               pp["w4e"], pp["sel"], pp["b4"])          # (B, 1)


# -------------------------- pure-JAX f32 reference ----------------------------

def _reference_forward(x_nchw, p):
    def conv(x, w, b, stride, pad):
        y = jax.lax.conv_general_dilated(
            x, w, (stride, stride), [(pad, pad), (pad, pad)],
            dimension_numbers=("NCHW", "OIHW", "NCHW"),
            precision=jax.lax.Precision.HIGHEST)
        return y + b.reshape(1, -1, 1, 1)

    def bn(y, g, be):
        mean = y.mean(axis=(0, 2, 3), keepdims=True)
        var = y.var(axis=(0, 2, 3), keepdims=True)      # biased, training mode
        return (y - mean) * jax.lax.rsqrt(var + _BN_EPS) * g.reshape(1, -1, 1, 1) \
               + be.reshape(1, -1, 1, 1)

    lrelu = lambda t: jnp.where(t > 0, t, 0.2 * t)
    y = lrelu(conv(x_nchw, p["w1"], p["b1"], 2, 1))
    y = lrelu(bn(conv(y, p["w2"], p["b2"], 2, 1), p["g2"], p["be2"]))
    y = lrelu(bn(conv(y, p["w3"], p["b3"], 2, 1), p["g3"], p["be3"]))
    y = jax.nn.sigmoid(conv(y, p["w4"], p["b4"], 1, 0))
    return y.reshape(-1, 1)


# ----------------------------------- main -------------------------------------

if __name__ == "__main__":
    key = jax.random.PRNGKey(0)
    k_x, k_p = jax.random.split(key)
    x = jax.random.normal(k_x, (2, 3, 32, 32), jnp.float32)   # 32x32 RGB, batch 2
    params = init_params(k_p)
    pp = prepare_params(params, batch=x.shape[0])             # one-time, outside jit

    fwd = jax.jit(discriminator_forward)
    out = jax.block_until_ready(fwd(x, pp))
    assert out.shape == (2, 1), out.shape
    assert bool(jnp.all(jnp.isfinite(out)))
    assert bool(jnp.all((out >= 0.0) & (out <= 1.0)))

    # bf16 matmuls deviate slightly from the f32 PyTorch reference; document
    # and test against a tolerance (per review).
    ref = _reference_forward(x, params)
    max_err = float(jnp.max(jnp.abs(out - ref)))
    assert max_err < 5e-2, f"max |pallas - ref| = {max_err}"

    print("KERNEL_OK")
</pallas_src>

<mosaic_0001>
module attributes {stable_mosaic.version = 11 : i64} {
  func.func @_conv_bias_leaky_kernel(%arg0: i32, %arg1: memref<256x128xbf16, #tpu.memory_space<vmem>>, %arg2: memref<128x64xbf16, #tpu.memory_space<vmem>>, %arg3: memref<1x64xf32, #tpu.memory_space<vmem>>, %arg4: memref<256x64xbf16, #tpu.memory_space<vmem>>) attributes {dimension_semantics = [#tpu.dimension_semantics<parallel>], iteration_bounds = array<i64: 2>, scalar_prefetch = 0 : i64, scratch_operands = 0 : i64, tpu.core_type = #tpu.core_type<tc>, window_params = [{transform_indices = @transform_0, window_bounds = array<i64: 256, 128>}, {pipeline_mode = #tpu.pipeline_mode<synchronous>, transform_indices = @transform_1, window_bounds = array<i64: 128, 64>}, {pipeline_mode = #tpu.pipeline_mode<synchronous>, transform_indices = @transform_2, window_bounds = array<i64: 1, 64>}, {transform_indices = @transform_3, window_bounds = array<i64: 256, 64>}]} {
    %c0 = arith.constant 0 : index
    %c0_0 = arith.constant 0 : index
    %0 = vector.load %arg1[%c0, %c0_0] : memref<256x128xbf16, #tpu.memory_space<vmem>>, vector<256x128xbf16>
    %c0_1 = arith.constant 0 : index
    %c0_2 = arith.constant 0 : index
    %1 = vector.load %arg2[%c0_1, %c0_2] : memref<128x64xbf16, #tpu.memory_space<vmem>>, vector<128x64xbf16>
    %cst = arith.constant dense<0.000000e+00> : vector<256x64xf32>
    %2 = tpu.matmul %0, %1, %cst {dimension_numbers = #tpu.dot_dimension_numbers<[1], [0], [0], [1], [0, 0, 1, 1], [], []>} : vector<256x128xbf16>, vector<128x64xbf16>, vector<256x64xf32> -> vector<256x64xf32>
    %c0_3 = arith.constant 0 : index
    %c0_4 = arith.constant 0 : index
    %3 = vector.load %arg3[%c0_3, %c0_4] : memref<1x64xf32, #tpu.memory_space<vmem>>, vector<1x64xf32>
    %4 = vector.broadcast %3 : vector<1x64xf32> to vector<256x64xf32>
    %5 = arith.addf %2, %4 : vector<256x64xf32>
    %cst_5 = arith.constant 0.000000e+00 : f32
    %6 = vector.broadcast %cst_5 : f32 to vector<256x64xf32>
    %7 = arith.cmpf ogt, %5, %6 : vector<256x64xf32>
    %cst_6 = arith.constant 2.000000e-01 : f32
    %8 = vector.broadcast %cst_6 : f32 to vector<256x64xf32>
    %9 = arith.mulf %8, %5 : vector<256x64xf32>
    %10 = arith.select %7, %5, %9 : vector<256x64xi1>, vector<256x64xf32>
    %11 = arith.truncf %10 : vector<256x64xf32> to vector<256x64xbf16>
    %c0_7 = arith.constant 0 : index
    %c0_8 = arith.constant 0 : index
    %12 = vector.load %arg4[%c0_7, %c0_8] : memref<256x64xbf16, #tpu.memory_space<vmem>>, vector<256x64xbf16>
    tpu.vector_store %arg4[%c0_7, %c0_8], %11 {strides = array<i32>} : memref<256x64xbf16, #tpu.memory_space<vmem>>, vector<256x64xbf16>,
    return
  }
  func.func @transform_0(%arg0: i32) -> (i32, i32) {
    %c0_i32 = arith.constant 0 : i32
    %c0_i32_0 = arith.constant 0 : i32
    return %arg0, %c0_i32 : i32, i32
  }
  func.func @transform_1(%arg0: i32) -> (i32, i32) {
    %c0_i32 = arith.constant 0 : i32
    %c0_i32_0 = arith.constant 0 : i32
    %c0_i32_1 = arith.constant 0 : i32
    return %c0_i32, %c0_i32_0 : i32, i32
  }
  func.func @transform_2(%arg0: i32) -> (i32, i32) {
    %c0_i32 = arith.constant 0 : i32
    %c0_i32_0 = arith.constant 0 : i32
    %c0_i32_1 = arith.constant 0 : i32
    return %c0_i32, %c0_i32_0 : i32, i32
  }
  func.func @transform_3(%arg0: i32) -> (i32, i32) {
    %c0_i32 = arith.constant 0 : i32
    %c0_i32_0 = arith.constant 0 : i32
    return %arg0, %c0_i32 : i32, i32
  }
}

module attributes {stable_mosaic.version = 11 : i64} {
  func.func @_conv_bn_leaky_kernel(%arg0: i32, %arg1: memref<128x1024xbf16, #tpu.memory_space<vmem>>, %arg2: memref<1024x128xbf16, #tpu.memory_space<vmem>>, %arg3: memref<1x128xf32, #tpu.memory_space<vmem>>, %arg4: memref<1x128xf32, #tpu.memory_space<vmem>>, %arg5: memref<128x128xbf16, #tpu.memory_space<vmem>>) attributes {dimension_semantics = [#tpu.dimension_semantics<arbitrary>], iteration_bounds = array<i64: 1>, scalar_prefetch = 0 : i64, scratch_operands = 0 : i64, tpu.core_type = #tpu.core_type<tc>, window_params = [{pipeline_mode = #tpu.pipeline_mode<synchronous>, transform_indices = @transform_0, window_bounds = array<i64: 128, 1024>}, {pipeline_mode = #tpu.pipeline_mode<synchronous>, transform_indices = @transform_1, window_bounds = array<i64: 1024, 128>}, {pipeline_mode = #tpu.pipeline_mode<synchronous>, transform_indices = @transform_2, window_bounds = array<i64: 1, 128>}, {pipeline_mode = #tpu.pipeline_mode<synchronous>, transform_indices = @transform_3, window_bounds = array<i64: 1, 128>}, {pipeline_mode = #tpu.pipeline_mode<synchronous>, transform_indices = @transform_4, window_bounds = array<i64: 128, 128>}]} {
    %c0 = arith.constant 0 : index
    %c0_0 = arith.constant 0 : index
    %0 = vector.load %arg1[%c0, %c0_0] : memref<128x1024xbf16, #tpu.memory_space<vmem>>, vector<128x1024xbf16>
    %c0_1 = arith.constant 0 : index
    %c0_2 = arith.constant 0 : index
    %1 = vector.load %arg2[%c0_1, %c0_2] : memref<1024x128xbf16, #tpu.memory_space<vmem>>, vector<1024x128xbf16>
    %cst = arith.constant dense<0.000000e+00> : vector<128x128xf32>
    %2 = tpu.matmul %0, %1, %cst {dimension_numbers = #tpu.dot_dimension_numbers<[1], [0], [0], [1], [0, 0, 1, 1], [], []>} : vector<128x1024xbf16>, vector<1024x128xbf16>, vector<128x128xf32> -> vector<128x128xf32>
    %c0_3 = arith.constant 0 : index
    %c0_4 = arith.constant 0 : index
    %3 = vector.load %arg3[%c0_3, %c0_4] : memref<1x128xf32, #tpu.memory_space<vmem>>, vector<1x128xf32>
    %c0_5 = arith.constant 0 : index
    %c0_6 = arith.constant 0 : index
    %4 = vector.load %arg4[%c0_5, %c0_6] : memref<1x128xf32, #tpu.memory_space<vmem>>, vector<1x128xf32>
    %cst_7 = arith.constant dense<0.000000e+00> : vector<128xf32>
    %5 = vector.multi_reduction <add>, %2, %cst_7 [0] : vector<128x128xf32> to vector<128xf32>
    %6 = vector.shape_cast %5 : vector<128xf32> to vector<1x128xf32>
    %cst_8 = arith.constant 1.280000e+02 : f32
    %7 = vector.broadcast %cst_8 : f32 to vector<1x128xf32>
    %8 = arith.divf %6, %7 : vector<1x128xf32>
    %9 = vector.broadcast %8 : vector<1x128xf32> to vector<128x128xf32>
    %10 = arith.subf %2, %9 : vector<128x128xf32>
    %11 = arith.mulf %10, %10 : vector<128x128xf32>
    %cst_9 = arith.constant dense<0.000000e+00> : vector<128xf32>
    %12 = vector.multi_reduction <add>, %11, %cst_9 [0] : vector<128x128xf32> to vector<128xf32>
    %13 = vector.shape_cast %12 : vector<128xf32> to vector<1x128xf32>
    %cst_10 = arith.constant 1.280000e+02 : f32
    %14 = vector.broadcast %cst_10 : f32 to vector<1x128xf32>
    %15 = arith.divf %13, %14 : vector<1x128xf32>
    %cst_11 = arith.constant 9.99999974E-6 : f32
    %16 = vector.broadcast %cst_11 : f32 to vector<1x128xf32>
    %17 = arith.addf %15, %16 : vector<1x128xf32>
    %18 = math.rsqrt %17 : vector<1x128xf32>
    %19 = arith.mulf %3, %18 : vector<1x128xf32>
    %20 = vector.broadcast %19 : vector<1x128xf32> to vector<128x128xf32>
    %21 = arith.mulf %10, %20 : vector<128x128xf32>
    %22 = vector.broadcast %4 : vector<1x128xf32> to vector<128x128xf32>
    %23 = arith.addf %21, %22 : vector<128x128xf32>
    %cst_12 = arith.constant 0.000000e+00 : f32
    %24 = vector.broadcast %cst_12 : f32 to vector<128x128xf32>
    %25 = arith.cmpf ogt, %23, %24 : vector<128x128xf32>
    %cst_13 = arith.constant 2.000000e-01 : f32
    %26 = vector.broadcast %cst_13 : f32 to vector<128x128xf32>
    %27 = arith.mulf %26, %23 : vector<128x128xf32>
    %28 = arith.select %25, %23, %27 : vector<128x128xi1>, vector<128x128xf32>
    %29 = arith.truncf %28 : vector<128x128xf32> to vector<128x128xbf16>
    %c0_14 = arith.constant 0 : index
    %c0_15 = arith.constant 0 : index
    %30 = vector.load %arg5[%c0_14, %c0_15] : memref<128x128xbf16, #tpu.memory_space<vmem>>, vector<128x128xbf16>
    tpu.vector_store %arg5[%c0_14, %c0_15], %29 {strides = array<i32>} : memref<128x128xbf16, #tpu.memory_space<vmem>>, vector<128x128xbf16>,
    return
  }
  func.func @transform_0(%arg0: i32) -> (i32, i32) {
    %c0_i32 = arith.constant 0 : i32
    %c0_i32_0 = arith.constant 0 : i32
    %c0_i32_1 = arith.constant 0 : i32
    return %c0_i32, %c0_i32_0 : i32, i32
  }
  func.func @transform_1(%arg0: i32) -> (i32, i32) {
    %c0_i32 = arith.constant 0 : i32
    %c0_i32_0 = arith.constant 0 : i32
    %c0_i32_1 = arith.constant 0 : i32
    return %c0_i32, %c0_i32_0 : i32, i32
  }
  func.func @transform_2(%arg0: i32) -> (i32, i32) {
    %c0_i32 = arith.constant 0 : i32
    %c0_i32_0 = arith.constant 0 : i32
    %c0_i32_1 = arith.constant 0 : i32
    return %c0_i32, %c0_i32_0 : i32, i32
  }
  func.func @transform_3(%arg0: i32) -> (i32, i32) {
    %c0_i32 = arith.constant 0 : i32
    %c0_i32_0 = arith.constant 0 : i32
    %c0_i32_1 = arith.constant 0 : i32
    return %c0_i32, %c0_i32_0 : i32, i32
  }
  func.func @transform_4(%arg0: i32) -> (i32, i32) {
    %c0_i32 = arith.constant 0 : i32
    %c0_i32_0 = arith.constant 0 : i32
    %c0_i32_1 = arith.constant 0 : i32
    return %c0_i32, %c0_i32_0 : i32, i32
  }
}

module attributes {stable_mosaic.version = 11 : i64} {
  func.func @_conv_bn_leaky_head_kernel(%arg0: i32, %arg1: memref<32x2048xbf16, #tpu.memory_space<vmem>>, %arg2: memref<2048x256xbf16, #tpu.memory_space<vmem>>, %arg3: memref<1x256xf32, #tpu.memory_space<vmem>>, %arg4: memref<1x256xf32, #tpu.memory_space<vmem>>, %arg5: memref<32x256xf32, #tpu.memory_space<vmem>>, %arg6: memref<2x32xf32, #tpu.memory_space<vmem>>, %arg7: memref<1x1xf32, #tpu.memory_space<vmem>>, %arg8: memref<2x1xf32, #tpu.memory_space<vmem>>) attributes {dimension_semantics = [#tpu.dimension_semantics<arbitrary>], iteration_bounds = array<i64: 1>, scalar_prefetch = 0 : i64, scratch_operands = 0 : i64, tpu.core_type = #tpu.core_type<tc>, window_params = [{pipeline_mode = #tpu.pipeline_mode<synchronous>, transform_indices = @transform_0, window_bounds = array<i64: 32, 2048>}, {pipeline_mode = #tpu.pipeline_mode<synchronous>, transform_indices = @transform_1, window_bounds = array<i64: 2048, 256>}, {pipeline_mode = #tpu.pipeline_mode<synchronous>, transform_indices = @transform_2, window_bounds = array<i64: 1, 256>}, {pipeline_mode = #tpu.pipeline_mode<synchronous>, transform_indices = @transform_3, window_bounds = array<i64: 1, 256>}, {pipeline_mode = #tpu.pipeline_mode<synchronous>, transform_indices = @transform_4, window_bounds = array<i64: 32, 256>}, {pipeline_mode = #tpu.pipeline_mode<synchronous>, transform_indices = @transform_5, window_bounds = array<i64: 2, 32>}, {pipeline_mode = #tpu.pipeline_mode<synchronous>, transform_indices = @transform_6, window_bounds = array<i64: 1, 1>}, {pipeline_mode = #tpu.pipeline_mode<synchronous>, transform_indices = @transform_7, window_bounds = array<i64: 2, 1>}]} {
    %c0 = arith.constant 0 : index
    %c0_0 = arith.constant 0 : index
    %0 = vector.load %arg1[%c0, %c0_0] : memref<32x2048xbf16, #tpu.memory_space<vmem>>, vector<32x2048xbf16>
    %c0_1 = arith.constant 0 : index
    %c0_2 = arith.constant 0 : index
    %1 = vector.load %arg2[%c0_1, %c0_2] : memref<2048x256xbf16, #tpu.memory_space<vmem>>, vector<2048x256xbf16>
    %cst = arith.constant dense<0.000000e+00> : vector<32x256xf32>
    %2 = tpu.matmul %0, %1, %cst {dimension_numbers = #tpu.dot_dimension_numbers<[1], [0], [0], [1], [0, 0, 1, 1], [], []>} : vector<32x2048xbf16>, vector<2048x256xbf16>, vector<32x256xf32> -> vector<32x256xf32>
    %c0_3 = arith.constant 0 : index
    %c0_4 = arith.constant 0 : index
    %3 = vector.load %arg3[%c0_3, %c0_4] : memref<1x256xf32, #tpu.memory_space<vmem>>, vector<1x256xf32>
    %c0_5 = arith.constant 0 : index
    %c0_6 = arith.constant 0 : index
    %4 = vector.load %arg4[%c0_5, %c0_6] : memref<1x256xf32, #tpu.memory_space<vmem>>, vector<1x256xf32>
    %cst_7 = arith.constant dense<0.000000e+00> : vector<256xf32>
    %5 = vector.multi_reduction <add>, %2, %cst_7 [0] : vector<32x256xf32> to vector<256xf32>
    %6 = vector.shape_cast %5 : vector<256xf32> to vector<1x256xf32>
    %cst_8 = arith.constant 3.200000e+01 : f32
    %7 = vector.broadcast %cst_8 : f32 to vector<1x256xf32>
    %8 = arith.divf %6, %7 : vector<1x256xf32>
    %9 = vector.broadcast %8 : vector<1x256xf32> to vector<32x256xf32>
    %10 = arith.subf %2, %9 : vector<32x256xf32>
    %11 = arith.mulf %10, %10 : vector<32x256xf32>
    %cst_9 = arith.constant dense<0.000000e+00> : vector<256xf32>
    %12 = vector.multi_reduction <add>, %11, %cst_9 [0] : vector<32x256xf32> to vector<256xf32>
    %13 = vector.shape_cast %12 : vector<256xf32> to vector<1x256xf32>
    %cst_10 = arith.constant 3.200000e+01 : f32
    %14 = vector.broadcast %cst_10 : f32 to vector<1x256xf32>
    %15 = arith.divf %13, %14 : vector<1x256xf32>
    %cst_11 = arith.constant 9.99999974E-6 : f32
    %16 = vector.broadcast %cst_11 : f32 to vector<1x256xf32>
    %17 = arith.addf %15, %16 : vector<1x256xf32>
    %18 = math.rsqrt %17 : vector<1x256xf32>
    %19 = arith.mulf %3, %18 : vector<1x256xf32>
    %20 = vector.broadcast %19 : vector<1x256xf32> to vector<32x256xf32>
    %21 = arith.mulf %10, %20 : vector<32x256xf32>
    %22 = vector.broadcast %4 : vector<1x256xf32> to vector<32x256xf32>
    %23 = arith.addf %21, %22 : vector<32x256xf32>
    %cst_12 = arith.constant 0.000000e+00 : f32
    %24 = vector.broadcast %cst_12 : f32 to vector<32x256xf32>
    %25 = arith.cmpf ogt, %23, %24 : vector<32x256xf32>
    %cst_13 = arith.constant 2.000000e-01 : f32
    %26 = vector.broadcast %cst_13 : f32 to vector<32x256xf32>
    %27 = arith.mulf %26, %23 : vector<32x256xf32>
    %28 = arith.select %25, %23, %27 : vector<32x256xi1>, vector<32x256xf32>
    %c0_14 = arith.constant 0 : index
    %c0_15 = arith.constant 0 : index
    %29 = vector.load %arg5[%c0_14, %c0_15] : memref<32x256xf32, #tpu.memory_space<vmem>>, vector<32x256xf32>
    %30 = arith.mulf %28, %29 : vector<32x256xf32>
    %c0_16 = arith.constant 0 : index
    %c0_17 = arith.constant 0 : index
    %31 = vector.load %arg6[%c0_16, %c0_17] : memref<2x32xf32, #tpu.memory_space<vmem>>, vector<2x32xf32>
    %cst_18 = arith.constant dense<0.000000e+00> : vector<2x256xf32>
    %32 = tpu.matmul %31, %30, %cst_18 {dimension_numbers = #tpu.dot_dimension_numbers<[1], [0], [0], [1], [0, 0, 1, 1], [], []>} : vector<2x32xf32>, vector<32x256xf32>, vector<2x256xf32> -> vector<2x256xf32>
    %cst_19 = arith.constant dense<0.000000e+00> : vector<2xf32>
    %33 = vector.multi_reduction <add>, %32, %cst_19 [1] : vector<2x256xf32> to vector<2xf32>
    %34 = vector.shape_cast %33 : vector<2xf32> to vector<2x1xf32>
    %c0_20 = arith.constant 0 : index
    %c0_21 = arith.constant 0 : index
    %35 = vector.load %arg7[%c0_20, %c0_21] : memref<1x1xf32, #tpu.memory_space<vmem>>, vector<1x1xf32>
    %36 = vector.broadcast %35 : vector<1x1xf32> to vector<2x1xf32>
    %37 = arith.addf %34, %36 : vector<2x1xf32>
    %38 = arith.negf %37 : vector<2x1xf32>
    %39 = math.exp %38 : vector<2x1xf32>
    %cst_22 = arith.constant 1.000000e+00 : f32
    %40 = vector.broadcast %cst_22 : f32 to vector<2x1xf32>
    %41 = arith.addf %40, %39 : vector<2x1xf32>
    %42 = arith.divf %40, %41 : vector<2x1xf32>
    %c0_23 = arith.constant 0 : index
    %c0_24 = arith.constant 0 : index
    %43 = vector.load %arg8[%c0_23, %c0_24] : memref<2x1xf32, #tpu.memory_space<vmem>>, vector<2x1xf32>
    tpu.vector_store %arg8[%c0_23, %c0_24], %42 {strides = array<i32>} : memref<2x1xf32, #tpu.memory_space<vmem>>, vector<2x1xf32>,
    return
  }
  func.func @transform_0(%arg0: i32) -> (i32, i32) {
    %c0_i32 = arith.constant 0 : i32
    %c0_i32_0 = arith.constant 0 : i32
    %c0_i32_1 = arith.constant 0 : i32
    return %c0_i32, %c0_i32_0 : i32, i32
  }
  func.func @transform_1(%arg0: i32) -> (i32, i32) {
    %c0_i32 = arith.constant 0 : i32
    %c0_i32_0 = arith.constant 0 : i32
    %c0_i32_1 = arith.constant 0 : i32
    return %c0_i32, %c0_i32_0 : i32, i32
  }
  func.func @transform_2(%arg0: i32) -> (i32, i32) {
    %c0_i32 = arith.constant 0 : i32
    %c0_i32_0 = arith.constant 0 : i32
    %c0_i32_1 = arith.constant 0 : i32
    return %c0_i32, %c0_i32_0 : i32, i32
  }
  func.func @transform_3(%arg0: i32) -> (i32, i32) {
    %c0_i32 = arith.constant 0 : i32
    %c0_i32_0 = arith.constant 0 : i32
    %c0_i32_1 = arith.constant 0 : i32
    return %c0_i32, %c0_i32_0 : i32, i32
  }
  func.func @transform_4(%arg0: i32) -> (i32, i32) {
    %c0_i32 = arith.constant 0 : i32
    %c0_i32_0 = arith.constant 0 : i32
    %c0_i32_1 = arith.constant 0 : i32
    return %c0_i32, %c0_i32_0 : i32, i32
  }
  func.func @transform_5(%arg0: i32) -> (i32, i32) {
    %c0_i32 = arith.constant 0 : i32
    %c0_i32_0 = arith.constant 0 : i32
    %c0_i32_1 = arith.constant 0 : i32
    return %c0_i32, %c0_i32_0 : i32, i32
  }
  func.func @transform_6(%arg0: i32) -> (i32, i32) {
    %c0_i32 = arith.constant 0 : i32
    %c0_i32_0 = arith.constant 0 : i32
    %c0_i32_1 = arith.constant 0 : i32
    return %c0_i32, %c0_i32_0 : i32, i32
  }
  func.func @transform_7(%arg0: i32) -> (i32, i32) {
    %c0_i32 = arith.constant 0 : i32
    %c0_i32_0 = arith.constant 0 : i32
    %c0_i32_1 = arith.constant 0 : i32
    return %c0_i32, %c0_i32_0 : i32, i32
  }
}

</mosaic_0001>

<bundles_post_ra>
// kernel: discriminator_forward.3
= control target key start
LH: loop header
LB: loop body
LE: loop exit
PB: predicated region body
PF: predicated region fallthrough
CT: control target
= control target key end

     0   :  { %s1096_s12 = smov 0   ;;  %s1266_s0 = inlined_call_operand.vmem [shape: bf16[512,128], index: 0, kind: input, shape index: {}]   ;;  %s1267_s1 = inlined_call_operand.vmem [shape: bf16[128,64], index: 1, kind: input, shape index: {}]   ;;  %s1268_s2 = inlined_call_operand.vmem [shape: f32[1,64], index: 2, kind: input, shape index: {}]   ;;  %s1269_s3 = inlined_call_operand.vmem [shape: bf16[512,64], index: 3, kind: output, shape index: {}]  }
   0x1 LB: > { %s848_s13 = sadd.s32 4294967295, %s1074_s12   ;;  %p852_p0 = scmp.ge.s32.totalorder %s1074_s12, 1  ;;  %s1074_s12 = sphi %s1096_s12, %s13_s12  }
   0x2   : > { %p138_p1 = scmp.lt.s32.totalorder %s1074_s12, 3 }
   0x4   : > { %p139_p2 = pnand %p852_p0, %p138_p1 }
   0x5   : > { %v1044_v0 = vld [vmem:[%s1267_s1] sm:$0xff] (!%p139_p2)   ;;  %s853_s16 = sshll.u32 (!%p139_p2), %s848_s13, 5  ;;  %v1045_v1 = vld [vmem:[%s1267_s1 + $0x8] sm:$0xff] (!%p139_p2)   ;;  %v1046_v2 = vld [vmem:[%s1267_s1 + $0x10] sm:$0xff] (!%p139_p2)   ;;  %vm759_vm0 = vcmask (!%p139_p2), 519168  }
   0x6   : > { %142 = sbr.rel (%p139_p2) target bundleno = 296 (0x128), region = 32  ;;  %p163_p3 = scmp.lt.s32.totalorder (!%p139_p2), %s853_s16, 63  ;;  %972 = vmatprep.subr.bf16.mxu0 (!%p139_p2), %v1044_v0  ;;  %1020 = vmatprep.subr.bf16.mxu1 (!%p139_p2), %v1044_v0  ;;  %v1047_v3 = vld [vmem:[%s1267_s1 + $0x18] sm:$0xff] (!%p139_p2)   ;;  %v1048_v6 = vld [vmem:[%s1267_s1 + $0x20] sm:$0xff] (!%p139_p2)   ;;  %v1049_v7 = vld [vmem:[%s1267_s1 + $0x28] sm:$0xff] (!%p139_p2)  }
   0x7   : > { %973 = vmatpush3.bf16.msra.mxu0 (!%p139_p2), %v1044_v0  ;;  %1028 = vmatpush3.bf16.msra.mxu1 (!%p139_p2), %v1044_v0  ;;  %v1050_v8 = vld [vmem:[%s1267_s1 + $0x30] sm:$0xff] (!%p139_p2)   ;;  %v1051_v9 = vld [vmem:[%s1267_s1 + $0x38] sm:$0xff] (!%p139_p2)   ;;  %v1157_v24 = vld [vmem:[%s1268_s2] ss:$0 sm:$0xff] (!%p139_p2) }
   0x8   : > { %974 = vmatprep.subr.bf16.mxu0 (!%p139_p2), %v1045_v1  ;;  %1021 = vmatprep.subr.bf16.mxu1 (!%p139_p2), %v1045_v1 }
   0xb   : > { %975 = vmatpush3.bf16.msra.mxu0 (!%p139_p2), %v1045_v1  ;;  %1029 = vmatpush3.bf16.msra.mxu1 (!%p139_p2), %v1045_v1 }
   0xc   : > { %976 = vmatprep.subr.bf16.mxu0 (!%p139_p2), %v1046_v2  ;;  %1022 = vmatprep.subr.bf16.mxu1 (!%p139_p2), %v1046_v2 }
   0xd   : > { %s1271_s16 = smov (!%p163_p3, %s853_s16), 63 }
   0xe   : > { %s854_s21 = sshll.u32 %s1271_s16, 2 }
   0xf   : > { %s1121_s24 = scalar_lea.vmem %s1266_s0, %s854_s21  ;;  %977 = vmatpush3.bf16.msra.mxu0 %v1046_v2  ;;  %1030 = vmatpush3.bf16.msra.mxu1 %v1046_v2  ;;  %s1168_s13 = scalar_lea.vmem %s1269_s3, %s854_s21 }
  0x10   : > { %v1052_v4 = vld [vmem:[%s1121_s24] sm:$0xff]   ;;  %978 = vmatprep.subr.bf16.mxu0 %v1047_v3  ;;  %1023 = vmatprep.subr.bf16.mxu1 %v1047_v3  ;;  %v1054_v10 = vld [vmem:[%s1121_s24 + $0x8] sm:$0xff]   ;;  %v1056_v12 = vld [vmem:[%s1121_s24 + $0x10] sm:$0xff]  }
  0x11   : > { %v1053_v5 = vld [vmem:[%s1121_s24 + $0x40] sm:$0xff]   ;;  %988 = vmatprep.mubr.bf16.mxu0 %v1052_v4  ;;  %v1055_v11 = vld [vmem:[%s1121_s24 + $0x48] sm:$0xff]   ;;  %v1057_v13 = vld [vmem:[%s1121_s24 + $0x50] sm:$0xff]  }
  0x12   : > { %1004 = vmatprep.mubr.bf16.mxu1 %v1053_v5  ;;  %v1058_v14 = vld [vmem:[%s1121_s24 + $0x18] sm:$0xff]   ;;  %v1060_v16 = vld [vmem:[%s1121_s24 + $0x20] sm:$0xff]   ;;  %v1062_v18 = vld [vmem:[%s1121_s24 + $0x28] sm:$0xff]  }
  0x13   : > { %979 = vmatpush3.bf16.msra.mxu0 %v1047_v3  ;;  %1031 = vmatpush3.bf16.msra.mxu1 %v1047_v3  ;;  %v1059_v15 = vld [vmem:[%s1121_s24 + $0x58] sm:$0xff]   ;;  %v1061_v17 = vld [vmem:[%s1121_s24 + $0x60] sm:$0xff]   ;;  %v1063_v19 = vld [vmem:[%s1121_s24 + $0x68] sm:$0xff]  }
  0x14   : > { %980 = vmatprep.subr.bf16.mxu0 %v1048_v6  ;;  %1024 = vmatprep.subr.bf16.mxu1 %v1048_v6  ;;  %v1064_v20 = vld [vmem:[%s1121_s24 + $0x30] sm:$0xff]   ;;  %v1066_v22 = vld [vmem:[%s1121_s24 + $0x38] sm:$0xff]  }
  0x15   : > { %v1065_v21 = vld [vmem:[%s1121_s24 + $0x70] sm:$0xff]   ;;  %v1067_v23 = vld [vmem:[%s1121_s24 + $0x78] sm:$0xff]  }
  0x17   : > { %981 = vmatpush3.bf16.msra.mxu0 %v1048_v6  ;;  %1032 = vmatpush3.bf16.msra.mxu1 %v1048_v6 }
  0x18   : > { %982 = vmatprep.subr.bf16.mxu0 %v1049_v7  ;;  %1025 = vmatprep.subr.bf16.mxu1 %v1049_v7 }
  0x1b   : > { %983 = vmatpush3.bf16.msra.mxu0 %v1049_v7  ;;  %1033 = vmatpush3.bf16.msra.mxu1 %v1049_v7 }
  0x1c   : > { %984 = vmatprep.subr.bf16.mxu0 %v1050_v8  ;;  %1026 = vmatprep.subr.bf16.mxu1 %v1050_v8 }
  0x1f   : > { %985 = vmatpush3.bf16.msra.mxu0 %v1050_v8  ;;  %1034 = vmatpush3.bf16.msra.mxu1 %v1050_v8 }
  0x20   : > { %986 = vmatprep.subr.bf16.mxu0 %v1051_v9  ;;  %1027 = vmatprep.subr.bf16.mxu1 %v1051_v9 }
  0x23   : > { %987 = vmatpush3.bf16.msra.mxu0 %v1051_v9  ;;  %1035 = vmatpush3.bf16.msra.mxu1 %v1051_v9 }
  0x26   : > { %989 = vmatmul.mubr.bf16.vlgmr.msra.gmra.mrb[0].mxu0 %v1054_v10  ;;  %1005 = vmatmul.mubr.bf16.vlgmr.msra.gmra.mrb[0].mxu1 %v1055_v11 }
  0x27   : > { %992 = vmatprep.mubr.bf16.mxu0 %v1056_v12  ;;  %1008 = vmatprep.mubr.bf16.mxu1 %v1057_v13 }
  0x2e   : > { %993 = vmatmul.mubr.bf16.gmra.mrb[4].mxu0 %v1058_v14  ;;  %1009 = vmatmul.mubr.bf16.gmra.mrb[4].mxu1 %v1059_v15 }
  0x2f   : > { %996 = vmatprep.mubr.bf16.mxu0 %v1060_v16  ;;  %1012 = vmatprep.mubr.bf16.mxu1 %v1061_v17 }
  0x36   : > { %997 = vmatmul.mubr.bf16.gmra.mrb[8].mxu0 %v1062_v18  ;;  %1013 = vmatmul.mubr.bf16.gmra.mrb[8].mxu1 %v1063_v19 }
  0x37   : > { %1000 = vmatprep.mubr.bf16.mxu0 %v1064_v20  ;;  %1016 = vmatprep.mubr.bf16.mxu1 %v1065_v21 }
  0x3e   : > { %1001 = vmatmul.mubr.bf16.gmra.mrb[12].mxu0 %v1066_v22  ;;  %1017 = vmatmul.mubr.bf16.gmra.mrb[12].mxu1 %v1067_v23 }
  0xf9   : > { %v990_v25 = vpop.f32.mrb[0].mxu0  ;;  %v1006_v26 = vpop.f32.mrb[0].mxu1 }
  0xfa   : > { %v417_v27 = vadd.f32 %v990_v25, %v1157_v24  ;;  %v481_v28 = vadd.f32 %v1006_v26, %v1157_v24  ;;  %v408_v29 = vpop.f32.mrb[1].mxu0  ;;  %v472_v30 = vpop.f32.mrb[1].mxu1 }
  0xfb   : > { %v409_v31 = vadd.f32 %v1157_v24, %v408_v29  ;;  %v473_v32 = vadd.f32 %v1157_v24, %v472_v30  ;;  %v991_v33 = vpop.f32.mrb[2].mxu0  ;;  %v1007_v34 = vpop.f32.mrb[2].mxu1 }
  0xfc   : > { %vm537_vm1 = vcmp.gt.f32.partialorder %v417_v27, 0.0  ;;  %v569_v35 = vmul.f32 0.2, %v417_v27  ;;  %vm553_vm2 = vcmp.gt.f32.partialorder %v481_v28, 0.0  ;;  %v585_v36 = vmul.f32 0.2, %v481_v28 }
  0xfd   : > { %vm535_vm3 = vcmp.gt.f32.partialorder %v409_v31, 0.0  ;;  %v567_v37 = vmul.f32 0.2, %v409_v31  ;;  %vm551_vm4 = vcmp.gt.f32.partialorder %v473_v32, 0.0  ;;  %v583_v38 = vmul.f32 0.2, %v473_v32 }
  0xfe   : > { %v601_v39 = vsel %vm537_vm1, %v417_v27, %v569_v35  ;;  %v617_v40 = vsel %vm553_vm2, %v481_v28, %v585_v36  ;;  %v420_v41 = vadd.f32 %v991_v33, %v1157_v24  ;;  %v484_v42 = vadd.f32 %v1007_v34, %v1157_v24  ;;  %v411_v43 = vpop.f32.mrb[3].mxu0  ;;  %v475_v44 = vpop.f32.mrb[3].mxu1 }
  0xff   : > { %v918_v45 = vpack.c.bf16 %v601_v39, %v601_v39  ;;  %v934_v46 = vpack.c.bf16 %v617_v40, %v617_v40  ;;  %v599_v47 = vsel %vm535_vm3, %v409_v31, %v567_v37  ;;  %v615_v48 = vsel %vm551_vm4, %v473_v32, %v583_v38 }
 0x100   : > { %v916_v49 = vpack.c.bf16 %v599_v47, %v599_v47  ;;  %v932_v50 = vpack.c.bf16 %v615_v48, %v615_v48  ;;  %vm538_vm5 = vcmp.gt.f32.partialorder %v420_v41, 0.0  ;;  %v570_v51 = vmul.f32 0.2, %v420_v41 }
 0x101   : > { %762 = vst.msk [vmem:[%s1168_s13 + $0x8] sm:$0xf] %vm759_vm0, %v918_v45  ;;  %778 = vst.msk [vmem:[%s1168_s13 + $0x48] sm:$0xf] %vm759_vm0, %v934_v46  ;;  %vm554_vm6 = vcmp.gt.f32.partialorder %v484_v42, 0.0  ;;  %v412_v53 = vadd.f32 %v1157_v24, %v411_v43  ;;  %v476_v54 = vadd.f32 %v1157_v24, %v475_v44  ;;  %v994_v55 = vpop.f32.mrb[4].mxu0 }
 0x102   : > { %v586_v52 = vmul.f32 0.2, %v484_v42  ;;  %v1010_v56 = vpop.f32.mrb[4].mxu1  ;;  %760 = vst.msk [vmem:[%s1168_s13] sm:$0xf] %vm759_vm0, %v916_v49  ;;  %v602_v57 = vsel %vm538_vm5, %v420_v41, %v570_v51  ;;  %v433_v58 = vadd.f32 %v994_v55, %v1157_v24  ;;  %v424_v60 = vpop.f32.mrb[5].mxu0 }
 0x103   : > { %776 = vst.msk [vmem:[%s1168_s13 + $0x40] sm:$0xf] %vm759_vm0, %v932_v50  ;;  %v497_v59 = vadd.f32 %v1010_v56, %v1157_v24  ;;  %v488_v61 = vpop.f32.mrb[5].mxu1  ;;  %v919_v62 = vpack.c.bf16 %v602_v57, %v602_v57  ;;  %vm536_vm7 = vcmp.gt.f32.partialorder %v412_v53, 0.0  ;;  %v568_v0 = vmul.f32 0.2, %v412_v53 }
 0x104   : > { %v618_v63 = vsel %vm554_vm6, %v484_v42, %v586_v52  ;;  %v995_v1 = vpop.f32.mrb[6].mxu0  ;;  %v1011_v2 = vpop.f32.mrb[6].mxu1  ;;  %vm552_vm8 = vcmp.gt.f32.partialorder %v476_v54, 0.0  ;;  %v584_v4 = vmul.f32 0.2, %v476_v54  ;;  %vm541_vm9 = vcmp.gt.f32.partialorder %v433_v58, 0.0 }
 0x105   : > { %v935_v3 = vpack.c.bf16 %v618_v63, %v618_v63  ;;  %v427_v5 = vpop.f32.mrb[7].mxu0  ;;  %v491_v6 = vpop.f32.mrb[7].mxu1  ;;  %763 = vst.msk [vmem:[%s1168_s13 + $0xc] sm:$0xf] %vm759_vm0, %v919_v62  ;;  %v600_v7 = vsel %vm536_vm7, %v412_v53, %v568_v0  ;;  %v573_v8 = vmul.f32 0.2, %v433_v58  ;;  %v425_v12 = vadd.f32 %v1157_v24, %v424_v60 }
 0x106   : > { %vm557_vm10 = vcmp.gt.f32.partialorder %v497_v59, 0.0  ;;  %v589_v9 = vmul.f32 0.2, %v497_v59  ;;  %v917_v10 = vpack.c.bf16 %v600_v7, %v600_v7  ;;  %v616_v11 = vsel %vm552_vm8, %v476_v54, %v584_v4 }
 0x107   : > { %779 = vst.msk [vmem:[%s1168_s13 + $0x4c] sm:$0xf] %vm759_vm0, %v935_v3  ;;  %v489_v13 = vadd.f32 %v1157_v24, %v488_v61  ;;  %v933_v14 = vpack.c.bf16 %v616_v11, %v616_v11  ;;  %v605_v15 = vsel %vm541_vm9, %v433_v58, %v573_v8  ;;  %v436_v17 = vadd.f32 %v995_v1, %v1157_v24 }
 0x108   : > { %v621_v16 = vsel %vm557_vm10, %v497_v59, %v589_v9  ;;  %761 = vst.msk [vmem:[%s1168_s13 + $0x4] sm:$0xf] %vm759_vm0, %v917_v10  ;;  %v922_v18 = vpack.c.bf16 %v605_v15, %v605_v15  ;;  %vm539_vm11 = vcmp.gt.f32.partialorder %v425_v12, 0.0  ;;  %v571_v20 = vmul.f32 0.2, %v425_v12 }
 0x109   : > { %v938_v19 = vpack.c.bf16 %v621_v16, %v621_v16  ;;  %777 = vst.msk [vmem:[%s1168_s13 + $0x44] sm:$0xf] %vm759_vm0, %v933_v14  ;;  %vm555_vm12 = vcmp.gt.f32.partialorder %v489_v13, 0.0  ;;  %v587_v21 = vmul.f32 0.2, %v489_v13  ;;  %vm542_vm13 = vcmp.gt.f32.partialorder %v436_v17, 0.0 }
 0x10a   : > { %v574_v22 = vmul.f32 0.2, %v436_v17  ;;  %766 = vst.msk [vmem:[%s1168_s13 + $0x18] sm:$0xf] %vm759_vm0, %v922_v18  ;;  %v603_v23 = vsel %vm539_vm11, %v425_v12, %v571_v20  ;;  %v500_v25 = vadd.f32 %v1011_v2, %v1157_v24  ;;  %v428_v26 = vadd.f32 %v1157_v24, %v427_v5  ;;  %v998_v28 = vpop.f32.mrb[8].mxu0  ;;  %v1014_v29 = vpop.f32.mrb[8].mxu1 }
 0x10b   : > { %782 = vst.msk [vmem:[%s1168_s13 + $0x58] sm:$0xf] %vm759_vm0, %v938_v19  ;;  %v492_v27 = vadd.f32 %v1157_v24, %v491_v6  ;;  %v920_v30 = vpack.c.bf16 %v603_v23, %v603_v23  ;;  %v619_v31 = vsel %vm555_vm12, %v489_v13, %v587_v21  ;;  %v449_v33 = vadd.f32 %v998_v28, %v1157_v24  ;;  %v440_v34 = vpop.f32.mrb[9].mxu0  ;;  %v504_v35 = vpop.f32.mrb[9].mxu1 }
 0x10c   : > { %v606_v32 = vsel %vm542_vm13, %v436_v17, %v574_v22  ;;  %v936_v36 = vpack.c.bf16 %v619_v31, %v619_v31  ;;  %vm558_vm14 = vcmp.gt.f32.partialorder %v500_v25, 0.0  ;;  %v590_v38 = vmul.f32 0.2, %v500_v25  ;;  %v999_v39 = vpop.f32.mrb[10].mxu0  ;;  %v1015_v40 = vpop.f32.mrb[10].mxu1 }
 0x10d   : > { %v923_v37 = vpack.c.bf16 %v606_v32, %v606_v32  ;;  %764 = vst.msk [vmem:[%s1168_s13 + $0x10] sm:$0xf] %vm759_vm0, %v920_v30  ;;  %vm540_vm15 = vcmp.gt.f32.partialorder %v428_v26, 0.0  ;;  %v572_v41 = vmul.f32 0.2, %v428_v26  ;;  %vm556_vm1 = vcmp.gt.f32.partialorder %v492_v27, 0.0 }
 0x10e   : > { %v588_v42 = vmul.f32 0.2, %v492_v27  ;;  %780 = vst.msk [vmem:[%s1168_s13 + $0x50] sm:$0xf] %vm759_vm0, %v936_v36  ;;  %v622_v43 = vsel %vm558_vm14, %v500_v25, %v590_v38  ;;  %vm545_vm2 = vcmp.gt.f32.partialorder %v449_v33, 0.0  ;;  %v513_v45 = vadd.f32 %v1014_v29, %v1157_v24  ;;  %v443_v46 = vpop.f32.mrb[11].mxu0 }
 0x10f   : > { %767 = vst.msk [vmem:[%s1168_s13 + $0x1c] sm:$0xf] %vm759_vm0, %v923_v37  ;;  %v577_v44 = vmul.f32 0.2, %v449_v33  ;;  %v507_v47 = vpop.f32.mrb[11].mxu1  ;;  %v939_v48 = vpack.c.bf16 %v622_v43, %v622_v43  ;;  %v604_v49 = vsel %vm540_vm15, %v428_v26, %v572_v41  ;;  %v441_v51 = vadd.f32 %v1157_v24, %v440_v34 }
 0x110   : > { %v620_v50 = vsel %vm556_vm1, %v492_v27, %v588_v42  ;;  %v921_v52 = vpack.c.bf16 %v604_v49, %v604_v49  ;;  %vm561_vm3 = vcmp.gt.f32.partialorder %v513_v45, 0.0  ;;  %v593_v56 = vmul.f32 0.2, %v513_v45 }
 0x111   : > { %v937_v53 = vpack.c.bf16 %v620_v50, %v620_v50  ;;  %v609_v54 = vsel %vm545_vm2, %v449_v33, %v577_v44  ;;  %783 = vst.msk [vmem:[%s1168_s13 + $0x5c] sm:$0xf] %vm759_vm0, %v939_v48  ;;  %vm543_vm4 = vcmp.gt.f32.partialorder %v441_v51, 0.0  ;;  %v575_v57 = vmul.f32 0.2, %v441_v51  ;;  %v1002_v58 = vpop.f32.mrb[12].mxu0 }
 0x112   : > { %v926_v55 = vpack.c.bf16 %v609_v54, %v609_v54  ;;  %765 = vst.msk [vmem:[%s1168_s13 + $0x14] sm:$0xf] %vm759_vm0, %v921_v52  ;;  %v505_v59 = vadd.f32 %v1157_v24, %v504_v35  ;;  %v452_v60 = vadd.f32 %v999_v39, %v1157_v24  ;;  %v516_v61 = vadd.f32 %v1015_v40, %v1157_v24  ;;  %v1018_v63 = vpop.f32.mrb[12].mxu1  ;;  %v456_v0 = vpop.f32.mrb[13].mxu0 }
 0x113   : > { %781 = vst.msk [vmem:[%s1168_s13 + $0x54] sm:$0xf] %vm759_vm0, %v937_v53  ;;  %v444_v62 = vadd.f32 %v1157_v24, %v443_v46  ;;  %v625_v1 = vsel %vm561_vm3, %v513_v45, %v593_v56  ;;  %v607_v2 = vsel %vm543_vm4, %v441_v51, %v575_v57  ;;  %v508_v3 = vadd.f32 %v1157_v24, %v507_v47  ;;  %v520_v5 = vpop.f32.mrb[13].mxu1  ;;  %v1003_v6 = vpop.f32.mrb[14].mxu0 }
 0x114   : > { %770 = vst.msk [vmem:[%s1168_s13 + $0x28] sm:$0xf] %vm759_vm0, %v926_v55  ;;  %v465_v4 = vadd.f32 %v1002_v58, %v1157_v24  ;;  %v942_v7 = vpack.c.bf16 %v625_v1, %v625_v1  ;;  %v924_v8 = vpack.c.bf16 %v607_v2, %v607_v2  ;;  %vm559_vm5 = vcmp.gt.f32.partialorder %v505_v59, 0.0  ;;  %v1019_v10 = vpop.f32.mrb[14].mxu1  ;;  %v459_v11 = vpop.f32.mrb[15].mxu0 }
 0x115   : > { %v591_v9 = vmul.f32 0.2, %v505_v59  ;;  %vm546_vm6 = vcmp.gt.f32.partialorder %v452_v60, 0.0  ;;  %v578_v12 = vmul.f32 0.2, %v452_v60  ;;  %vm562_vm7 = vcmp.gt.f32.partialorder %v516_v61, 0.0 }
 0x116   : > { %v594_v13 = vmul.f32 0.2, %v516_v61  ;;  %786 = vst.msk [vmem:[%s1168_s13 + $0x68] sm:$0xf] %vm759_vm0, %v942_v7  ;;  %768 = vst.msk [vmem:[%s1168_s13 + $0x20] sm:$0xf] %vm759_vm0, %v924_v8  ;;  %v529_v28 = vadd.f32 %v1018_v63, %v1157_v24  ;;  %v457_v30 = vadd.f32 %v1157_v24, %v456_v0  ;;  %v521_v31 = vadd.f32 %v1157_v24, %v520_v5 }
 0x117   : > { %v623_v14 = vsel %vm559_vm5, %v505_v59, %v591_v9  ;;  %vm544_vm8 = vcmp.gt.f32.partialorder %v444_v62, 0.0  ;;  %v576_v15 = vmul.f32 0.2, %v444_v62  ;;  %vm560_vm9 = vcmp.gt.f32.partialorder %v508_v3, 0.0  ;;  %v523_v16 = vpop.f32.mrb[15].mxu1 }
 0x118   : > { %v940_v17 = vpack.c.bf16 %v623_v14, %v623_v14  ;;  %v610_v18 = vsel %vm546_vm6, %v452_v60, %v578_v12  ;;  %v626_v19 = vsel %vm562_vm7, %v516_v61, %v594_v13  ;;  %v592_v20 = vmul.f32 0.2, %v508_v3 }
 0x119   : > { %v927_v21 = vpack.c.bf16 %v610_v18, %v610_v18  ;;  %v943_v22 = vpack.c.bf16 %v626_v19, %v626_v19  ;;  %v608_v23 = vsel %vm544_vm8, %v444_v62, %v576_v15  ;;  %vm549_vm10 = vcmp.gt.f32.partialorder %v465_v4, 0.0 }
 0x11a   : > { %784 = vst.msk [vmem:[%s1168_s13 + $0x60] sm:$0xf] %vm759_vm0, %v940_v17  ;;  %v925_v25 = vpack.c.bf16 %v608_v23, %v608_v23  ;;  %v624_v26 = vsel %vm560_vm9, %v508_v3, %v592_v20  ;;  %v581_v27 = vmul.f32 0.2, %v465_v4  ;;  %v468_v32 = vadd.f32 %v1003_v6, %v1157_v24 }
 0x11b   : > { %771 = vst.msk [vmem:[%s1168_s13 + $0x2c] sm:$0xf] %vm759_vm0, %v927_v21  ;;  %787 = vst.msk [vmem:[%s1168_s13 + $0x6c] sm:$0xf] %vm759_vm0, %v943_v22  ;;  %v941_v29 = vpack.c.bf16 %v624_v26, %v624_v26  ;;  %vm565_vm11 = vcmp.gt.f32.partialorder %v529_v28, 0.0  ;;  %v532_v35 = vadd.f32 %v1019_v10, %v1157_v24  ;;  %vm547_vm12 = vcmp.gt.f32.partialorder %v457_v30, 0.0 }
 0x11c   : > { %769 = vst.msk [vmem:[%s1168_s13 + $0x24] sm:$0xf] %vm759_vm0, %v925_v25  ;;  %v613_v33 = vsel %vm549_vm10, %v465_v4, %v581_v27  ;;  %v597_v34 = vmul.f32 0.2, %v529_v28  ;;  %v579_v37 = vmul.f32 0.2, %v457_v30  ;;  %v460_v47 = vadd.f32 %v1157_v24, %v459_v11 }
 0x11d   : > { %785 = vst.msk [vmem:[%s1168_s13 + $0x64] sm:$0xf] %vm759_vm0, %v941_v29  ;;  %v930_v36 = vpack.c.bf16 %v613_v33, %v613_v33  ;;  %vm563_vm13 = vcmp.gt.f32.partialorder %v521_v31, 0.0  ;;  %v595_v39 = vmul.f32 0.2, %v521_v31  ;;  %vm550_vm14 = vcmp.gt.f32.partialorder %v468_v32, 0.0 }
 0x11e   : > { %v629_v38 = vsel %vm565_vm11, %v529_v28, %v597_v34  ;;  %v582_v40 = vmul.f32 0.2, %v468_v32  ;;  %v611_v42 = vsel %vm547_vm12, %v457_v30, %v579_v37  ;;  %vm566_vm15 = vcmp.gt.f32.partialorder %v532_v35, 0.0 }
 0x11f   : > { %774 = vst.msk [vmem:[%s1168_s13 + $0x38] sm:$0xf] %vm759_vm0, %v930_v36  ;;  %v946_v41 = vpack.c.bf16 %v629_v38, %v629_v38  ;;  %v598_v43 = vmul.f32 0.2, %v532_v35  ;;  %v928_v44 = vpack.c.bf16 %v611_v42, %v611_v42  ;;  %v627_v45 = vsel %vm563_vm13, %v521_v31, %v595_v39 }
 0x120   : > { %v614_v46 = vsel %vm550_vm14, %v468_v32, %v582_v40  ;;  %v944_v48 = vpack.c.bf16 %v627_v45, %v627_v45  ;;  %v524_v51 = vadd.f32 %v1157_v24, %v523_v16  ;;  %vm548_vm1 = vcmp.gt.f32.partialorder %v460_v47, 0.0 }
 0x121   : > { %790 = vst.msk [vmem:[%s1168_s13 + $0x78] sm:$0xf] %vm759_vm0, %v946_v41  ;;  %v931_v49 = vpack.c.bf16 %v614_v46, %v614_v46  ;;  %v630_v50 = vsel %vm566_vm15, %v532_v35, %v598_v43  ;;  %772 = vst.msk [vmem:[%s1168_s13 + $0x30] sm:$0xf] %vm759_vm0, %v928_v44  ;;  %v580_v53 = vmul.f32 0.2, %v460_v47 }
 0x122   : > { %v947_v52 = vpack.c.bf16 %v630_v50, %v630_v50  ;;  %788 = vst.msk [vmem:[%s1168_s13 + $0x70] sm:$0xf] %vm759_vm0, %v944_v48  ;;  %vm564_vm2 = vcmp.gt.f32.partialorder %v524_v51, 0.0  ;;  %v596_v54 = vmul.f32 0.2, %v524_v51 }
 0x123   : > { %775 = vst.msk [vmem:[%s1168_s13 + $0x3c] sm:$0xf] %vm759_vm0, %v931_v49  ;;  %v612_v55 = vsel %vm548_vm1, %v460_v47, %v580_v53 }
 0x124   : > { %791 = vst.msk [vmem:[%s1168_s13 + $0x7c] sm:$0xf] %vm759_vm0, %v947_v52  ;;  %v929_v56 = vpack.c.bf16 %v612_v55, %v612_v55  ;;  %v628_v57 = vsel %vm564_vm2, %v524_v51, %v596_v54 }
 0x125   : > { %v945_v58 = vpack.c.bf16 %v628_v57, %v628_v57 }
 0x126   : > { %773 = vst.msk [vmem:[%s1168_s13 + $0x34] sm:$0xf] %vm759_vm0, %v929_v56 }
 0x127   : > { %789 = vst.msk [vmem:[%s1168_s13 + $0x74] sm:$0xf] %vm759_vm0, %v945_v58 }
 0x128 PF: > { %s13_s12 = sadd.s32 1, %s1074_s12  }
 0x129   : > { %p10_p4 = scmp.ge.s32.totalorder %s13_s12, 4  }
 0x12b   :  { %12 = sbr.rel (!%p10_p4) target bundleno = 1 (0x1), region = 62 }

// kernel: discriminator_forward.4
= control target key start
LH: loop header
LB: loop body
LE: loop exit
PB: predicated region body
PF: predicated region fallthrough
CT: control target
= control target key end

     0   :  { %s2713_s1 = inlined_call_operand.vmem [shape: bf16[1024,128], index: 1, kind: input, shape index: {}]   ;;  %s2714_s0 = inlined_call_operand.vmem [shape: bf16[128,1024], index: 0, kind: input, shape index: {}]   ;;  %s2715_s2 = inlined_call_operand.vmem [shape: f32[1,128], index: 2, kind: input, shape index: {}]   ;;  %s2716_s3 = inlined_call_operand.vmem [shape: f32[1,128], index: 3, kind: input, shape index: {}]   ;;  %s2717_s4 = inlined_call_operand.vmem [shape: bf16[128,128], index: 4, kind: output, shape index: {}]  }
   0x1   :  { %v2024_v0 = vld [vmem:[%s2713_s1 + $0x40] sm:$0xff]   ;;  %v2028_v4 = vld [vmem:[%s2713_s1 + $0x48] sm:$0xff]   ;;  %v2032_v8 = vld [vmem:[%s2713_s1 + $0x50] sm:$0xff]  }
   0x2   :  { %v2025_v1 = vld [vmem:[%s2713_s1 + $0xc0] sm:$0xff]   ;;  %1768 = vmatprep.subr.bf16.mxu0 %v2024_v0  ;;  %v2029_v5 = vld [vmem:[%s2713_s1 + $0xc8] sm:$0xff]   ;;  %v2033_v9 = vld [vmem:[%s2713_s1 + $0xd0] sm:$0xff]  }
   0x3   :  { %v2026_v2 = vld [vmem:[%s2713_s1] sm:$0xff]   ;;  %1832 = vmatprep.subr.bf16.mxu1 %v2025_v1  ;;  %v2030_v6 = vld [vmem:[%s2713_s1 + $0x8] sm:$0xff]   ;;  %v2034_v10 = vld [vmem:[%s2713_s1 + $0x10] sm:$0xff]  }
   0x4   :  { %v2027_v3 = vld [vmem:[%s2713_s1 + $0x80] sm:$0xff]   ;;  %1769 = vmatpush3.bf16.msra.mxu0 %v2026_v2  ;;  %v2031_v7 = vld [vmem:[%s2713_s1 + $0x88] sm:$0xff]   ;;  %v2035_v11 = vld [vmem:[%s2713_s1 + $0x90] sm:$0xff]  }
   0x5   :  { %1833 = vmatpush3.bf16.msra.mxu1 %v2027_v3  ;;  %1770 = vmatprep.subr.bf16.mxu0 %v2028_v4  ;;  %v2036_v12 = vld [vmem:[%s2713_s1 + $0x58] sm:$0xff]   ;;  %v2040_v16 = vld [vmem:[%s2713_s1 + $0x60] sm:$0xff]   ;;  %v2044_v20 = vld [vmem:[%s2713_s1 + $0x68] sm:$0xff]  }
   0x6   :  { %1834 = vmatprep.subr.bf16.mxu1 %v2029_v5  ;;  %v2037_v13 = vld [vmem:[%s2713_s1 + $0xd8] sm:$0xff]   ;;  %v2041_v17 = vld [vmem:[%s2713_s1 + $0xe0] sm:$0xff]   ;;  %v2045_v21 = vld [vmem:[%s2713_s1 + $0xe8] sm:$0xff]  }
   0x7   :  { %v2038_v14 = vld [vmem:[%s2713_s1 + $0x18] sm:$0xff]   ;;  %v2042_v18 = vld [vmem:[%s2713_s1 + $0x20] sm:$0xff]   ;;  %v2046_v22 = vld [vmem:[%s2713_s1 + $0x28] sm:$0xff]  }
   0x8   :  { %1771 = vmatpush3.bf16.msra.mxu0 %v2030_v6  ;;  %v2039_v15 = vld [vmem:[%s2713_s1 + $0x98] sm:$0xff]   ;;  %v2043_v19 = vld [vmem:[%s2713_s1 + $0xa0] sm:$0xff]   ;;  %v2047_v23 = vld [vmem:[%s2713_s1 + $0xa8] sm:$0xff]  }
   0x9   :  { %1835 = vmatpush3.bf16.msra.mxu1 %v2031_v7  ;;  %1772 = vmatprep.subr.bf16.mxu0 %v2032_v8  ;;  %v2048_v24 = vld [vmem:[%s2713_s1 + $0x70] sm:$0xff]   ;;  %v2052_v28 = vld [vmem:[%s2713_s1 + $0x78] sm:$0xff]   ;;  %v18_v32 = vld [vmem:[%s2714_s0] sm:$0xff] }
   0xa   :  { %1836 = vmatprep.subr.bf16.mxu1 %v2033_v9  ;;  %v2049_v25 = vld [vmem:[%s2713_s1 + $0xf0] sm:$0xff]   ;;  %v2053_v29 = vld [vmem:[%s2713_s1 + $0xf8] sm:$0xff]   ;;  %v22_v33 = vld [vmem:[%s2714_s0 + $0x20] sm:$0xff] }
   0xb   :  { %v2050_v26 = vld [vmem:[%s2713_s1 + $0x30] sm:$0xff]   ;;  %v2054_v30 = vld [vmem:[%s2713_s1 + $0x38] sm:$0xff]   ;;  %v19_v34 = vld [vmem:[%s2714_s0 + $0x8] sm:$0xff]  ;;  %v1560_v35 = vcombine.low %v18_v32, %v22_v33  ;;  %v1561_v36 = vcombine.high %v18_v32, %v22_v33 }
   0xc   :  { %1773 = vmatpush3.bf16.msra.mxu0 %v2034_v10  ;;  %v2051_v27 = vld [vmem:[%s2713_s1 + $0xb0] sm:$0xff]   ;;  %v2055_v31 = vld [vmem:[%s2713_s1 + $0xb8] sm:$0xff]   ;;  %v23_v37 = vld [vmem:[%s2714_s0 + $0x28] sm:$0xff] }
   0xd   :  { %1837 = vmatpush3.bf16.msra.mxu1 %v2035_v11  ;;  %1774 = vmatprep.subr.bf16.mxu0 %v2036_v12  ;;  %v1562_v38 = vcombine.low %v19_v34, %v23_v37  ;;  %v1563_v39 = vcombine.high %v19_v34, %v23_v37  ;;  %v2056_v40 = vld [vmem:[%s2713_s1 + $0x140] sm:$0xff]   ;;  %v27_v47 = vld [vmem:[%s2714_s0 + $0x48] sm:$0xff]  ;;  %v2064_v62 = vld [vmem:[%s2713_s1 + $0x150] sm:$0xff]  }
   0xe   :  { %1838 = vmatprep.subr.bf16.mxu1 %v2037_v13  ;;  %946 = vmatprep.mubr.bf16.mxu0 %v1561_v36  ;;  %v2057_v41 = vld [vmem:[%s2713_s1 + $0x100] sm:$0xff]   ;;  %v31_v48 = vld [vmem:[%s2714_s0 + $0x68] sm:$0xff]  ;;  %v2065_v63 = vld [vmem:[%s2713_s1 + $0x110] sm:$0xff]  }
   0xf   :  { %1043 = vmatprep.mubr.bf16.mxu1 %v1563_v39  ;;  %v2058_v42 = vld [vmem:[%s2713_s1 + $0x1c0] sm:$0xff]   ;;  %v1571_v49 = vcombine.high %v27_v47, %v31_v48  ;;  %v2060_v50 = vld [vmem:[%s2713_s1 + $0x148] sm:$0xff]   ;;  %v1570_v53 = vcombine.low %v27_v47, %v31_v48  ;;  %v2066_v0 = vld [vmem:[%s2713_s1 + $0x1d0] sm:$0xff]  }
  0x10   :  { %1775 = vmatpush3.bf16.msra.mxu0 %v2038_v14  ;;  %v2059_v43 = vld [vmem:[%s2713_s1 + $0x180] sm:$0xff]   ;;  %v2061_v52 = vld [vmem:[%s2713_s1 + $0x108] sm:$0xff]   ;;  %v2067_v1 = vld [vmem:[%s2713_s1 + $0x190] sm:$0xff]  }
  0x11   :  { %1839 = vmatpush3.bf16.msra.mxu1 %v2039_v15  ;;  %1776 = vmatprep.subr.bf16.mxu0 %v2040_v16  ;;  %v26_v44 = vld [vmem:[%s2714_s0 + $0x40] sm:$0xff]  ;;  %v2062_v54 = vld [vmem:[%s2713_s1 + $0x1c8] sm:$0xff]   ;;  %v2068_v10 = vld [vmem:[%s2713_s1 + $0x158] sm:$0xff]  }
  0x12   :  { %1840 = vmatprep.subr.bf16.mxu1 %v2041_v17  ;;  %v30_v45 = vld [vmem:[%s2714_s0 + $0x60] sm:$0xff]  ;;  %v2063_v55 = vld [vmem:[%s2713_s1 + $0x188] sm:$0xff]   ;;  %v2069_v11 = vld [vmem:[%s2713_s1 + $0x118] sm:$0xff]  }
  0x13   :  { %v1569_v46 = vcombine.high %v26_v44, %v30_v45  ;;  %v1568_v51 = vcombine.low %v26_v44, %v30_v45  ;;  %v34_v56 = vld [vmem:[%s2714_s0 + $0x80] sm:$0xff]  ;;  %v35_v58 = vld [vmem:[%s2714_s0 + $0x88] sm:$0xff]  ;;  %v2070_v12 = vld [vmem:[%s2713_s1 + $0x1d8] sm:$0xff]  }
  0x14   :  { %1777 = vmatpush3.bf16.msra.mxu0 %v2042_v18  ;;  %v38_v57 = vld [vmem:[%s2714_s0 + $0xa0] sm:$0xff]  ;;  %v39_v59 = vld [vmem:[%s2714_s0 + $0xa8] sm:$0xff]  ;;  %v2071_v13 = vld [vmem:[%s2713_s1 + $0x198] sm:$0xff]  }
  0x15   :  { %1841 = vmatpush3.bf16.msra.mxu1 %v2043_v19  ;;  %1778 = vmatprep.subr.bf16.mxu0 %v2044_v20  ;;  %v1577_v60 = vcombine.high %v34_v56, %v38_v57  ;;  %v1579_v61 = vcombine.high %v35_v58, %v39_v59  ;;  %v1576_v2 = vcombine.low %v34_v56, %v38_v57  ;;  %v42_v3 = vld [vmem:[%s2714_s0 + $0xc0] sm:$0xff]  ;;  %v43_v5 = vld [vmem:[%s2714_s0 + $0xc8] sm:$0xff]  ;;  %v2081_v39 = vld [vmem:[%s2713_s1 + $0x130] sm:$0xff]  }
  0x16   :  { %1842 = vmatprep.subr.bf16.mxu1 %v2045_v21  ;;  %v46_v4 = vld [vmem:[%s2714_s0 + $0xe0] sm:$0xff]  ;;  %v1578_v6 = vcombine.low %v35_v58, %v39_v59  ;;  %v47_v8 = vld [vmem:[%s2714_s0 + $0xe8] sm:$0xff]  ;;  %v2085_v48 = vld [vmem:[%s2713_s1 + $0x138] sm:$0xff]  }
  0x17   :  { %v1585_v7 = vcombine.high %v42_v3, %v46_v4  ;;  %v1587_v9 = vcombine.high %v43_v5, %v47_v8  ;;  %v50_v14 = vld [vmem:[%s2714_s0 + $0x100] sm:$0xff]  ;;  %v51_v16 = vld [vmem:[%s2714_s0 + $0x108] sm:$0xff]  ;;  %v1584_v19 = vcombine.low %v42_v3, %v46_v4  ;;  %v1586_v21 = vcombine.low %v43_v5, %v47_v8  ;;  %v29_v8 = vld [vmem:[%s2714_s0 + $0x58] sm:$0xff] }
  0x18   :  { %1779 = vmatpush3.bf16.msra.mxu0 %v2046_v22  ;;  %v54_v15 = vld [vmem:[%s2714_s0 + $0x120] sm:$0xff]  ;;  %v55_v17 = vld [vmem:[%s2714_s0 + $0x128] sm:$0xff] }
  0x19   :  { %1843 = vmatpush3.bf16.msra.mxu1 %v2047_v23  ;;  %1780 = vmatprep.subr.bf16.mxu0 %v2048_v24  ;;  %v2072_v18 = vld [vmem:[%s2713_s1 + $0x160] sm:$0xff]   ;;  %v1593_v22 = vcombine.high %v50_v14, %v54_v15  ;;  %v1595_v24 = vcombine.high %v51_v16, %v55_v17  ;;  %v2078_v32 = vld [vmem:[%s2713_s1 + $0x1e8] sm:$0xff]   ;;  %v1592_v34 = vcombine.low %v50_v14, %v54_v15  ;;  %v36_v14 = vld [vmem:[%s2714_s0 + $0x90] sm:$0xff] }
  0x1a   :  { %1844 = vmatprep.subr.bf16.mxu1 %v2049_v25  ;;  %v2073_v20 = vld [vmem:[%s2713_s1 + $0x120] sm:$0xff]   ;;  %v2079_v33 = vld [vmem:[%s2713_s1 + $0x1a8] sm:$0xff]   ;;  %v40_v15 = vld [vmem:[%s2714_s0 + $0xb0] sm:$0xff] }
  0x1b   :  { %v2074_v23 = vld [vmem:[%s2713_s1 + $0x1e0] sm:$0xff]   ;;  %v67_v44 = vld [vmem:[%s2714_s0 + $0x188] sm:$0xff] }
  0x1c   :  { %1781 = vmatpush3.bf16.msra.mxu0 %v2050_v26  ;;  %v2075_v25 = vld [vmem:[%s2713_s1 + $0x1a0] sm:$0xff]   ;;  %v71_v45 = vld [vmem:[%s2714_s0 + $0x1a8] sm:$0xff] }
  0x1d   :  { %1845 = vmatpush3.bf16.msra.mxu1 %v2051_v27  ;;  %1782 = vmatprep.subr.bf16.mxu0 %v2052_v28  ;;  %v58_v26 = vld [vmem:[%s2714_s0 + $0x140] sm:$0xff]  ;;  %v2076_v28 = vld [vmem:[%s2713_s1 + $0x168] sm:$0xff]   ;;  %v1610_v59 = vcombine.low %v67_v44, %v71_v45 }
  0x1e   :  { %1846 = vmatprep.subr.bf16.mxu1 %v2053_v29  ;;  %v62_v27 = vld [vmem:[%s2714_s0 + $0x160] sm:$0xff]  ;;  %v59_v29 = vld [vmem:[%s2714_s0 + $0x148] sm:$0xff] }
  0x1f   :  { %v1601_v36 = vcombine.high %v58_v26, %v62_v27  ;;  %v1600_v47 = vcombine.low %v58_v26, %v62_v27  ;;  %v75_v56 = vld [vmem:[%s2714_s0 + $0x1c8] sm:$0xff]  ;;  %v1580_v26 = vcombine.low %v36_v14, %v40_v15 }
  0x20   :  { %1783 = vmatpush3.bf16.msra.mxu0 %v2054_v30  ;;  %v63_v30 = vld [vmem:[%s2714_s0 + $0x168] sm:$0xff] }
  0x21   :  { %1847 = vmatpush3.bf16.msra.mxu1 %v2055_v31  ;;  %1896 = vmatprep.subr.bf16.mxu0 %v2056_v40  ;;  %v2077_v31 = vld [vmem:[%s2713_s1 + $0x128] sm:$0xff]   ;;  %v1603_v37 = vcombine.high %v59_v29, %v63_v30  ;;  %v2082_v40 = vld [vmem:[%s2713_s1 + $0x1f0] sm:$0xff]  }
  0x22   :  { %1960 = vmatprep.subr.bf16.mxu1 %v2058_v42  ;;  %v70_v42 = vld [vmem:[%s2714_s0 + $0x1a0] sm:$0xff]  ;;  %v79_v57 = vld [vmem:[%s2714_s0 + $0x1e8] sm:$0xff] }
  0x23   :  { %947 = vmatmul.mubr.bf16.vlgmr.msra.gmra.mrb[0].mxu0 %v1560_v35  ;;  %v1594_v35 = vcombine.low %v51_v16, %v55_v17  ;;  %v1618_v3 = vcombine.low %v75_v56, %v79_v57  ;;  %v37_v16 = vld [vmem:[%s2714_s0 + $0x98] sm:$0xff] }
  0x24   :  { %1044 = vmatmul.mubr.bf16.vlgmr.msra.gmra.mrb[0].mxu1 %v1562_v38  ;;  %1897 = vmatpush3.bf16.msra.mxu0 %v2057_v41  ;;  %v2080_v38 = vld [vmem:[%s2713_s1 + $0x170] sm:$0xff]   ;;  %v66_v41 = vld [vmem:[%s2714_s0 + $0x180] sm:$0xff]  ;;  %v41_v17 = vld [vmem:[%s2714_s0 + $0xb8] sm:$0xff] }
  0x25   :  { %1961 = vmatpush3.bf16.msra.mxu1 %v2059_v43  ;;  %954 = vmatprep.mubr.bf16.mxu0 %v1569_v46  ;;  %v2083_v43 = vld [vmem:[%s2713_s1 + $0x1b0] sm:$0xff]   ;;  %v2084_v46 = vld [vmem:[%s2713_s1 + $0x178] sm:$0xff]   ;;  %v1608_v58 = vcombine.low %v66_v41, %v70_v42  ;;  %v1582_v27 = vcombine.low %v37_v16, %v41_v17 }
  0x26   :  { %1051 = vmatprep.mubr.bf16.mxu1 %v1571_v49  ;;  %1898 = vmatprep.subr.bf16.mxu0 %v2060_v50  ;;  %v1602_v49 = vcombine.low %v59_v29, %v63_v30  ;;  %v1609_v50 = vcombine.high %v66_v41, %v70_v42  ;;  %v52_v30 = vld [vmem:[%s2714_s0 + $0x110] sm:$0xff]  ;;  %v65_v41 = vld [vmem:[%s2714_s0 + $0x178] sm:$0xff] }
  0x27   :  { %1962 = vmatprep.subr.bf16.mxu1 %v2062_v54  ;;  %v74_v54 = vld [vmem:[%s2714_s0 + $0x1c0] sm:$0xff] }
  0x28   :  { %1899 = vmatpush3.bf16.msra.mxu0 %v2061_v52  ;;  %v1611_v52 = vcombine.high %v67_v44, %v71_v45 }
  0x29   :  { %1963 = vmatpush3.bf16.msra.mxu1 %v2063_v55  ;;  %1900 = vmatprep.subr.bf16.mxu0 %v2064_v62  ;;  %v78_v55 = vld [vmem:[%s2714_s0 + $0x1e0] sm:$0xff]  ;;  %v20_v62 = vld [vmem:[%s2714_s0 + $0x10] sm:$0xff] }
  0x2a   :  { %1964 = vmatprep.subr.bf16.mxu1 %v2066_v0  ;;  %v21_v0 = vld [vmem:[%s2714_s0 + $0x18] sm:$0xff] }
  0x2b   :  { %955 = vmatmul.mubr.bf16.gmra.mrb[4].mxu0 %v1568_v51  ;;  %v2086_v51 = vld [vmem:[%s2713_s1 + $0x1f8] sm:$0xff]  }
  0x2c   :  { %1052 = vmatmul.mubr.bf16.gmra.mrb[4].mxu1 %v1570_v53  ;;  %962 = vmatprep.mubr.bf16.mxu0 %v1577_v60  ;;  %v2087_v53 = vld [vmem:[%s2713_s1 + $0x1b8] sm:$0xff]   ;;  %v1617_v60 = vcombine.high %v74_v54, %v78_v55 }
  0x2d   :  { %1059 = vmatprep.mubr.bf16.mxu1 %v1579_v61  ;;  %1901 = vmatpush3.bf16.msra.mxu0 %v2065_v63  ;;  %v1619_v61 = vcombine.high %v75_v56, %v79_v57  ;;  %v24_v63 = vld [vmem:[%s2714_s0 + $0x30] sm:$0xff]  ;;  %v77_v56 = vld [vmem:[%s2714_s0 + $0x1d8] sm:$0xff] }
  0x2e   :  { %1965 = vmatpush3.bf16.msra.mxu1 %v2067_v1  ;;  %1902 = vmatprep.subr.bf16.mxu0 %v2068_v10  ;;  %v25_v1 = vld [vmem:[%s2714_s0 + $0x38] sm:$0xff]  ;;  %v1565_v4 = vcombine.high %v20_v62, %v24_v63  ;;  %v1564_v10 = vcombine.low %v20_v62, %v24_v63 }
  0x2f   :  { %1966 = vmatprep.subr.bf16.mxu1 %v2070_v12  ;;  %v1567_v5 = vcombine.high %v21_v0, %v25_v1  ;;  %v81_v57 = vld [vmem:[%s2714_s0 + $0x1f8] sm:$0xff] }
  0x30   :  { %v1622_v63 = vcombine.low %v77_v56, %v81_v57 }
  0x31   :  { %1903 = vmatpush3.bf16.msra.mxu0 %v2069_v11  ;;  %v1566_v11 = vcombine.low %v21_v0, %v25_v1 }
  0x32   :  { %1967 = vmatpush3.bf16.msra.mxu1 %v2071_v13  ;;  %1904 = vmatprep.subr.bf16.mxu0 %v2072_v18 }
  0x33   :  { %963 = vmatmul.mubr.bf16.gmra.mrb[8].mxu0 %v1576_v2  ;;  %1968 = vmatprep.subr.bf16.mxu1 %v2074_v23  ;;  %v1616_v2 = vcombine.low %v74_v54, %v78_v55  ;;  %v48_v23 = vld [vmem:[%s2714_s0 + $0xf0] sm:$0xff] }
  0x34   :  { %1060 = vmatmul.mubr.bf16.gmra.mrb[8].mxu1 %v1578_v6  ;;  %970 = vmatprep.mubr.bf16.mxu0 %v1585_v7  ;;  %v28_v6 = vld [vmem:[%s2714_s0 + $0x50] sm:$0xff] }
  0x35   :  { %1067 = vmatprep.mubr.bf16.mxu1 %v1587_v9  ;;  %1905 = vmatpush3.bf16.msra.mxu0 %v2073_v20  ;;  %v32_v7 = vld [vmem:[%s2714_s0 + $0x70] sm:$0xff]  ;;  %v33_v9 = vld [vmem:[%s2714_s0 + $0x78] sm:$0xff]  ;;  %v1581_v20 = vcombine.high %v36_v14, %v40_v15 }
  0x36   :  { %1969 = vmatpush3.bf16.msra.mxu1 %v2075_v25  ;;  %1906 = vmatprep.subr.bf16.mxu0 %v2076_v28  ;;  %v1573_v12 = vcombine.high %v28_v6, %v32_v7  ;;  %v1575_v13 = vcombine.high %v29_v8, %v33_v9  ;;  %v1572_v18 = vcombine.low %v28_v6, %v32_v7  ;;  %v49_v25 = vld [vmem:[%s2714_s0 + $0xf8] sm:$0xff]  ;;  %v76_v54 = vld [vmem:[%s2714_s0 + $0x1d0] sm:$0xff] }
  0x37   :  { %1970 = vmatprep.subr.bf16.mxu1 %v2078_v32  ;;  %v53_v32 = vld [vmem:[%s2714_s0 + $0x118] sm:$0xff]  ;;  %v80_v55 = vld [vmem:[%s2714_s0 + $0x1f0] sm:$0xff] }
  0x38   :  { %v1620_v62 = vcombine.low %v76_v54, %v80_v55 }
  0x39   :  { %1907 = vmatpush3.bf16.msra.mxu0 %v2077_v31  ;;  %v56_v31 = vld [vmem:[%s2714_s0 + $0x130] sm:$0xff] }
  0x3a   :  { %1971 = vmatpush3.bf16.msra.mxu1 %v2079_v33  ;;  %1908 = vmatprep.subr.bf16.mxu0 %v2080_v38  ;;  %v57_v33 = vld [vmem:[%s2714_s0 + $0x138] sm:$0xff]  ;;  %v60_v38 = vld [vmem:[%s2714_s0 + $0x150] sm:$0xff]  ;;  %v1596_v42 = vcombine.low %v52_v30, %v56_v31 }
  0x3b   :  { %971 = vmatmul.mubr.bf16.gmra.mrb[12].mxu0 %v1584_v19  ;;  %1972 = vmatprep.subr.bf16.mxu1 %v2082_v40  ;;  %v1574_v19 = vcombine.low %v29_v8, %v33_v9  ;;  %v61_v40 = vld [vmem:[%s2714_s0 + $0x158] sm:$0xff] }
  0x3c   :  { %1068 = vmatmul.mubr.bf16.gmra.mrb[12].mxu1 %v1586_v21  ;;  %978 = vmatprep.mubr.bf16.mxu0 %v1593_v22  ;;  %v1583_v21 = vcombine.high %v37_v16, %v41_v17  ;;  %v44_v22 = vld [vmem:[%s2714_s0 + $0xd0] sm:$0xff]  ;;  %v1607_v45 = vcombine.high %v61_v40, %v65_v41 }
  0x3d   :  { %1075 = vmatprep.mubr.bf16.mxu1 %v1595_v24  ;;  %1909 = vmatpush3.bf16.msra.mxu0 %v2081_v39  ;;  %v45_v24 = vld [vmem:[%s2714_s0 + $0xd8] sm:$0xff]  ;;  %v1589_v28 = vcombine.high %v44_v22, %v48_v23  ;;  %v64_v39 = vld [vmem:[%s2714_s0 + $0x170] sm:$0xff] }
  0x3e   :  { %1973 = vmatpush3.bf16.msra.mxu1 %v2083_v43  ;;  %1910 = vmatprep.subr.bf16.mxu0 %v2084_v46  ;;  %v1591_v29 = vcombine.high %v45_v24, %v49_v25  ;;  %v1598_v43 = vcombine.low %v53_v32, %v57_v33  ;;  %v1605_v44 = vcombine.high %v60_v38, %v64_v39  ;;  %v68_v46 = vld [vmem:[%s2714_s0 + $0x190] sm:$0xff] }
  0x3f   :  { %1974 = vmatprep.subr.bf16.mxu1 %v2086_v51  ;;  %v1606_v51 = vcombine.low %v61_v40, %v65_v41 }
  0x41   :  { %1911 = vmatpush3.bf16.msra.mxu0 %v2085_v48  ;;  %v69_v48 = vld [vmem:[%s2714_s0 + $0x198] sm:$0xff] }
  0x42   :  { %1975 = vmatpush3.bf16.msra.mxu1 %v2087_v53 }
  0x43   :  { %979 = vmatmul.mubr.bf16.gmra.mrb[16].mxu0 %v1592_v34  ;;  %v1588_v34 = vcombine.low %v44_v22, %v48_v23 }
  0x44   :  { %1076 = vmatmul.mubr.bf16.gmra.mrb[16].mxu1 %v1594_v35  ;;  %986 = vmatprep.mubr.bf16.mxu0 %v1601_v36  ;;  %v1590_v35 = vcombine.low %v45_v24, %v49_v25  ;;  %v1597_v36 = vcombine.high %v52_v30, %v56_v31 }
  0x45   :  { %1083 = vmatprep.mubr.bf16.mxu1 %v1603_v37  ;;  %v1599_v37 = vcombine.high %v53_v32, %v57_v33 }
  0x4b   :  { %987 = vmatmul.mubr.bf16.gmra.mrb[20].mxu0 %v1600_v47  ;;  %v72_v47 = vld [vmem:[%s2714_s0 + $0x1b0] sm:$0xff] }
  0x4c   :  { %1084 = vmatmul.mubr.bf16.gmra.mrb[20].mxu1 %v1602_v49  ;;  %994 = vmatprep.mubr.bf16.mxu0 %v1609_v50  ;;  %v73_v49 = vld [vmem:[%s2714_s0 + $0x1b8] sm:$0xff]  ;;  %v1604_v50 = vcombine.low %v60_v38, %v64_v39 }
  0x4d   :  { %1091 = vmatprep.mubr.bf16.mxu1 %v1611_v52  ;;  %v1613_v52 = vcombine.high %v68_v46, %v72_v47  ;;  %v1615_v53 = vcombine.high %v69_v48, %v73_v49 }
  0x53   :  { %995 = vmatmul.mubr.bf16.gmra.mrb[24].mxu0 %v1608_v58  ;;  %v1612_v58 = vcombine.low %v68_v46, %v72_v47 }
  0x54   :  { %1092 = vmatmul.mubr.bf16.gmra.mrb[24].mxu1 %v1610_v59  ;;  %1002 = vmatprep.mubr.bf16.mxu0 %v1617_v60  ;;  %v1614_v59 = vcombine.low %v69_v48, %v73_v49  ;;  %v1621_v60 = vcombine.high %v76_v54, %v80_v55 }
  0x55   :  { %1099 = vmatprep.mubr.bf16.mxu1 %v1619_v61  ;;  %v1623_v61 = vcombine.high %v77_v56, %v81_v57 }
  0x5b   :  { %1003 = vmatmul.mubr.bf16.gmra.mrb[28].mxu0 %v1616_v2 }
  0x5c   :  { %1100 = vmatmul.mubr.bf16.gmra.mrb[28].mxu1 %v1618_v3  ;;  %1140 = vmatprep.mubr.bf16.mxu0 %v1565_v4 }
  0x5d   :  { %1237 = vmatprep.mubr.bf16.mxu1 %v1567_v5 }
  0x63   :  { %1141 = vmatmul.mubr.bf16.vlgmr.msra.gmra.mrb[32].mxu0 %v1564_v10 }
  0x64   :  { %1238 = vmatmul.mubr.bf16.vlgmr.msra.gmra.mrb[32].mxu1 %v1566_v11  ;;  %1148 = vmatprep.mubr.bf16.mxu0 %v1573_v12 }
  0x65   :  { %1245 = vmatprep.mubr.bf16.mxu1 %v1575_v13 }
  0x6b   :  { %1149 = vmatmul.mubr.bf16.gmra.mrb[36].mxu0 %v1572_v18 }
  0x6c   :  { %1246 = vmatmul.mubr.bf16.gmra.mrb[36].mxu1 %v1574_v19  ;;  %1156 = vmatprep.mubr.bf16.mxu0 %v1581_v20 }
  0x6d   :  { %1253 = vmatprep.mubr.bf16.mxu1 %v1583_v21 }
  0x73   :  { %1157 = vmatmul.mubr.bf16.gmra.mrb[40].mxu0 %v1580_v26 }
  0x74   :  { %1254 = vmatmul.mubr.bf16.gmra.mrb[40].mxu1 %v1582_v27  ;;  %1164 = vmatprep.mubr.bf16.mxu0 %v1589_v28 }
  0x75   :  { %1261 = vmatprep.mubr.bf16.mxu1 %v1591_v29 }
  0x7b   :  { %1165 = vmatmul.mubr.bf16.gmra.mrb[44].mxu0 %v1588_v34 }
  0x7c   :  { %1262 = vmatmul.mubr.bf16.gmra.mrb[44].mxu1 %v1590_v35  ;;  %1172 = vmatprep.mubr.bf16.mxu0 %v1597_v36 }
  0x7d   :  { %1269 = vmatprep.mubr.bf16.mxu1 %v1599_v37 }
  0x83   :  { %1173 = vmatmul.mubr.bf16.gmra.mrb[48].mxu0 %v1596_v42 }
  0x84   :  { %1270 = vmatmul.mubr.bf16.gmra.mrb[48].mxu1 %v1598_v43  ;;  %1180 = vmatprep.mubr.bf16.mxu0 %v1605_v44 }
  0x85   :  { %1277 = vmatprep.mubr.bf16.mxu1 %v1607_v45 }
  0x8b   :  { %1181 = vmatmul.mubr.bf16.gmra.mrb[52].mxu0 %v1604_v50 }
  0x8c   :  { %1278 = vmatmul.mubr.bf16.gmra.mrb[52].mxu1 %v1606_v51  ;;  %1188 = vmatprep.mubr.bf16.mxu0 %v1613_v52 }
  0x8d   :  { %1285 = vmatprep.mubr.bf16.mxu1 %v1615_v53 }
  0x93   :  { %1189 = vmatmul.mubr.bf16.gmra.mrb[56].mxu0 %v1612_v58 }
  0x94   :  { %1286 = vmatmul.mubr.bf16.gmra.mrb[56].mxu1 %v1614_v59  ;;  %1196 = vmatprep.mubr.bf16.mxu0 %v1621_v60 }
  0x95   :  { %1293 = vmatprep.mubr.bf16.mxu1 %v1623_v61 }
  0x9b   :  { %1197 = vmatmul.mubr.bf16.gmra.mrb[60].mxu0 %v1620_v62 }
  0x9c   :  { %1294 = vmatmul.mubr.bf16.gmra.mrb[60].mxu1 %v1622_v63 }
  0xf6   :  { %v1784_v0 = vpop.f32.mrb[0].mxu0 }
  0xf7   :  { %v1848_v1 = vpop.f32.mrb[0].mxu1  ;;  %v1785_v2 = vpop.f32.mrb[1].mxu0 }
  0xf8   :  { %v1786_v3 = vadd.f32 %v1785_v2, %v1784_v0  ;;  %v1849_v4 = vpop.f32.mrb[1].mxu1  ;;  %v1787_v5 = vpop.f32.mrb[2].mxu0 }
  0xf9   :  { %v1850_v6 = vadd.f32 %v1849_v4, %v1848_v1  ;;  %v1851_v7 = vpop.f32.mrb[2].mxu1  ;;  %v1788_v8 = vpop.f32.mrb[3].mxu0 }
  0xfa   :  { %v1789_v9 = vadd.f32 %v1788_v8, %v1787_v5  ;;  %v1852_v10 = vpop.f32.mrb[3].mxu1 }
  0xfb   :  { %v2499_v11 = vadd.f32 %v1850_v6, %v1786_v3  ;;  %v1853_v12 = vadd.f32 %v1852_v10, %v1851_v7 }
  0xfd   :  { %v2501_v13 = vadd.f32 %v1853_v12, %v1789_v9 }
  0xfe   :  { %v1790_v14 = vpop.f32.mrb[4].mxu0 }
  0xff   :  { %v1854_v15 = vpop.f32.mrb[4].mxu1  ;;  %v1791_v16 = vpop.f32.mrb[5].mxu0 }
 0x100   :  { %v1792_v17 = vadd.f32 %v1791_v16, %v1790_v14  ;;  %v1855_v18 = vpop.f32.mrb[5].mxu1  ;;  %v1793_v19 = vpop.f32.mrb[6].mxu0 }
 0x101   :  { %v1856_v20 = vadd.f32 %v1855_v18, %v1854_v15  ;;  %v1857_v21 = vpop.f32.mrb[6].mxu1  ;;  %v1794_v22 = vpop.f32.mrb[7].mxu0 }
 0x102   :  { %v1795_v23 = vadd.f32 %v1794_v22, %v1793_v19  ;;  %v1858_v24 = vpop.f32.mrb[7].mxu1 }
 0x103   :  { %v2503_v25 = vadd.f32 %v1856_v20, %v1792_v17  ;;  %v1859_v26 = vadd.f32 %v1858_v24, %v1857_v21 }
 0x105   :  { %v2505_v27 = vadd.f32 %v1859_v26, %v1795_v23 }
 0x106   :  { %v1796_v28 = vpop.f32.mrb[8].mxu0 }
 0x107   :  { %v1860_v29 = vpop.f32.mrb[8].mxu1  ;;  %v1797_v30 = vpop.f32.mrb[9].mxu0 }
 0x108   :  { %v1798_v31 = vadd.f32 %v1797_v30, %v1796_v28  ;;  %v1861_v32 = vpop.f32.mrb[9].mxu1  ;;  %v1799_v33 = vpop.f32.mrb[10].mxu0 }
 0x109   :  { %v1862_v34 = vadd.f32 %v1861_v32, %v1860_v29  ;;  %v1863_v35 = vpop.f32.mrb[10].mxu1  ;;  %v1800_v36 = vpop.f32.mrb[11].mxu0 }
 0x10a   :  { %v1801_v37 = vadd.f32 %v1800_v36, %v1799_v33  ;;  %v1864_v38 = vpop.f32.mrb[11].mxu1 }
 0x10b   :  { %v2507_v39 = vadd.f32 %v1862_v34, %v1798_v31  ;;  %v1865_v40 = vadd.f32 %v1864_v38, %v1863_v35 }
 0x10d   :  { %v2509_v41 = vadd.f32 %v1865_v40, %v1801_v37 }
 0x10e   :  { %v1802_v42 = vpop.f32.mrb[12].mxu0 }
 0x10f   :  { %v1866_v43 = vpop.f32.mrb[12].mxu1  ;;  %v1803_v44 = vpop.f32.mrb[13].mxu0 }
 0x110   :  { %v1804_v45 = vadd.f32 %v1803_v44, %v1802_v42  ;;  %v1867_v46 = vpop.f32.mrb[13].mxu1  ;;  %v1805_v47 = vpop.f32.mrb[14].mxu0 }
 0x111   :  { %v1868_v48 = vadd.f32 %v1867_v46, %v1866_v43  ;;  %v1869_v49 = vpop.f32.mrb[14].mxu1  ;;  %v1806_v50 = vpop.f32.mrb[15].mxu0 }
 0x112   :  { %v1807_v51 = vadd.f32 %v1806_v50, %v1805_v47  ;;  %v1870_v52 = vpop.f32.mrb[15].mxu1 }
 0x113   :  { %v2511_v53 = vadd.f32 %v1868_v48, %v1804_v45  ;;  %v1871_v54 = vadd.f32 %v1870_v52, %v1869_v49 }
 0x115   :  { %v2513_v55 = vadd.f32 %v1871_v54, %v1807_v51 }
 0x116   :  { %v1808_v56 = vpop.f32.mrb[16].mxu0 }
 0x117   :  { %v1872_v57 = vpop.f32.mrb[16].mxu1  ;;  %v1809_v58 = vpop.f32.mrb[17].mxu0 }
 0x118   :  { %v1810_v59 = vadd.f32 %v1809_v58, %v1808_v56  ;;  %v1873_v60 = vpop.f32.mrb[17].mxu1  ;;  %v1811_v61 = vpop.f32.mrb[18].mxu0 }
 0x119   :  { %v1874_v62 = vadd.f32 %v1873_v60, %v1872_v57  ;;  %v1875_v63 = vpop.f32.mrb[18].mxu1  ;;  %v1812_v0 = vpop.f32.mrb[19].mxu0 }
 0x11a   :  { %v1813_v1 = vadd.f32 %v1812_v0, %v1811_v61  ;;  %v1876_v2 = vpop.f32.mrb[19].mxu1 }
 0x11b   :  { %v2515_v3 = vadd.f32 %v1874_v62, %v1810_v59  ;;  %v1877_v4 = vadd.f32 %v1876_v2, %v1875_v63 }
 0x11d   :  { %v2517_v5 = vadd.f32 %v1877_v4, %v1813_v1 }
 0x11e   :  { %v1814_v6 = vpop.f32.mrb[20].mxu0 }
 0x11f   :  { %v1878_v7 = vpop.f32.mrb[20].mxu1  ;;  %v1815_v8 = vpop.f32.mrb[21].mxu0 }
 0x120   :  { %v1816_v9 = vadd.f32 %v1815_v8, %v1814_v6  ;;  %v1879_v10 = vpop.f32.mrb[21].mxu1  ;;  %v1817_v12 = vpop.f32.mrb[22].mxu0 }
 0x121   :  { %v1880_v14 = vadd.f32 %v1879_v10, %v1878_v7  ;;  %v1881_v15 = vpop.f32.mrb[22].mxu1  ;;  %v1818_v16 = vpop.f32.mrb[23].mxu0 }
 0x122   :  { %v1819_v17 = vadd.f32 %v1818_v16, %v1817_v12  ;;  %v1882_v18 = vpop.f32.mrb[23].mxu1 }
 0x123   :  { %v2519_v19 = vadd.f32 %v1880_v14, %v1816_v9  ;;  %v1883_v20 = vadd.f32 %v1882_v18, %v1881_v15 }
 0x125   :  { %v2521_v21 = vadd.f32 %v1883_v20, %v1819_v17 }
 0x126   :  { %v1820_v22 = vpop.f32.mrb[24].mxu0 }
 0x127   :  { %v1884_v23 = vpop.f32.mrb[24].mxu1  ;;  %v1821_v24 = vpop.f32.mrb[25].mxu0 }
 0x128   :  { %v1822_v26 = vadd.f32 %v1821_v24, %v1820_v22  ;;  %v1885_v28 = vpop.f32.mrb[25].mxu1  ;;  %v1823_v29 = vpop.f32.mrb[26].mxu0 }
 0x129   :  { %v1886_v30 = vadd.f32 %v1885_v28, %v1884_v23  ;;  %v1887_v31 = vpop.f32.mrb[26].mxu1  ;;  %v1824_v32 = vpop.f32.mrb[27].mxu0 }
 0x12a   :  { %v1825_v33 = vadd.f32 %v1824_v32, %v1823_v29  ;;  %v1888_v34 = vpop.f32.mrb[27].mxu1 }
 0x12b   :  { %v2523_v35 = vadd.f32 %v1886_v30, %v1822_v26  ;;  %v1889_v36 = vadd.f32 %v1888_v34, %v1887_v31 }
 0x12d   :  { %v2525_v37 = vadd.f32 %v1889_v36, %v1825_v33 }
 0x12e   :  { %v1826_v38 = vpop.f32.mrb[28].mxu0 }
 0x12f   :  { %v1890_v40 = vpop.f32.mrb[28].mxu1  ;;  %v1827_v42 = vpop.f32.mrb[29].mxu0 }
 0x130   :  { %v1828_v43 = vadd.f32 %v1827_v42, %v1826_v38  ;;  %v1891_v44 = vpop.f32.mrb[29].mxu1  ;;  %v1829_v45 = vpop.f32.mrb[30].mxu0 }
 0x131   :  { %v1892_v46 = vadd.f32 %v1891_v44, %v1890_v40  ;;  %v1893_v47 = vpop.f32.mrb[30].mxu1  ;;  %v1830_v48 = vpop.f32.mrb[31].mxu0 }
 0x132   :  { %v1831_v49 = vadd.f32 %v1830_v48, %v1829_v45  ;;  %v1894_v50 = vpop.f32.mrb[31].mxu1 }
 0x133   :  { %v2527_v51 = vadd.f32 %v1892_v46, %v1828_v43  ;;  %v1895_v52 = vadd.f32 %v1894_v50, %v1893_v47 }
 0x135   :  { %v2529_v54 = vadd.f32 %v1895_v52, %v1831_v49 }
 0x136   :  { %v1912_v56 = vpop.f32.mrb[32].mxu0 }
 0x137   :  { %v1976_v57 = vpop.f32.mrb[32].mxu1  ;;  %v1913_v58 = vpop.f32.mrb[33].mxu0 }
 0x138   :  { %v1914_v59 = vadd.f32 %v1913_v58, %v1912_v56  ;;  %v1977_v60 = vpop.f32.mrb[33].mxu1  ;;  %v1915_v61 = vpop.f32.mrb[34].mxu0 }
 0x139   :  { %v1978_v62 = vadd.f32 %v1977_v60, %v1976_v57  ;;  %v1979_v63 = vpop.f32.mrb[34].mxu1  ;;  %v1916_v0 = vpop.f32.mrb[35].mxu0 }
 0x13a   :  { %v1143_v1 = vadd.f32 %v1914_v59, %v2499_v11  ;;  %v1917_v2 = vadd.f32 %v1916_v0, %v1915_v61  ;;  %v1980_v4 = vpop.f32.mrb[35].mxu1 }
 0x13b   :  { %v1981_v6 = vadd.f32 %v1980_v4, %v1979_v63 }
 0x13c   :  { %v2532_v7 = vadd.f32 %v1978_v62, %v1143_v1  ;;  %v1146_v8 = vadd.f32 %v1917_v2, %v2501_v13 }
 0x13e   :  { %v2535_v9 = vadd.f32 %v1981_v6, %v1146_v8  ;;  %v1918_v10 = vpop.f32.mrb[36].mxu0 }
 0x13f   :  { %v1982_v12 = vpop.f32.mrb[36].mxu1  ;;  %v1919_v14 = vpop.f32.mrb[37].mxu0 }
 0x140   :  { %v1304_v15 = vadd.f32 %v2535_v9, %v2532_v7  ;;  %v1920_v16 = vadd.f32 %v1919_v14, %v1918_v10  ;;  %v1983_v17 = vpop.f32.mrb[37].mxu1  ;;  %v1921_v18 = vpop.f32.mrb[38].mxu0 }
 0x141   :  { %v1984_v20 = vadd.f32 %v1983_v17, %v1982_v12  ;;  %v1985_v11 = vpop.f32.mrb[38].mxu1  ;;  %v1922_v22 = vpop.f32.mrb[39].mxu0 }
 0x142   :  { %v1151_v23 = vadd.f32 %v1920_v16, %v2503_v25  ;;  %v1923_v24 = vadd.f32 %v1922_v22, %v1921_v18  ;;  %v1986_v26 = vpop.f32.mrb[39].mxu1 }
 0x143   :  { %v1987_v28 = vadd.f32 %v1986_v26, %v1985_v11 }
 0x144   :  { %v2540_v13 = vadd.f32 %v1984_v20, %v1151_v23  ;;  %v1154_v29 = vadd.f32 %v1923_v24, %v2505_v27 }
 0x146   :  { %v1305_v30 = vadd.f32 %v1304_v15, %v2540_v13  ;;  %v2544_v31 = vadd.f32 %v1987_v28, %v1154_v29  ;;  %v1924_v32 = vpop.f32.mrb[40].mxu0 }
 0x147   :  { %v1988_v33 = vpop.f32.mrb[40].mxu1  ;;  %v1925_v34 = vpop.f32.mrb[41].mxu0 }
 0x148   :  { %v1306_v36 = vadd.f32 %v1305_v30, %v2544_v31  ;;  %v1926_v38 = vadd.f32 %v1925_v34, %v1924_v32  ;;  %v1989_v40 = vpop.f32.mrb[41].mxu1  ;;  %v1927_v42 = vpop.f32.mrb[42].mxu0 }
 0x149   :  { %v1990_v25 = vadd.f32 %v1989_v40, %v1988_v33  ;;  %v1991_v43 = vpop.f32.mrb[42].mxu1  ;;  %v1928_v44 = vpop.f32.mrb[43].mxu0 }
 0x14a   :  { %v1159_v45 = vadd.f32 %v1926_v38, %v2507_v39  ;;  %v1929_v46 = vadd.f32 %v1928_v44, %v1927_v42  ;;  %v1992_v47 = vpop.f32.mrb[43].mxu1 }
 0x14b   :  { %v1993_v27 = vadd.f32 %v1992_v47, %v1991_v43 }
 0x14c   :  { %v2548_v48 = vadd.f32 %v1990_v25, %v1159_v45  ;;  %v1162_v49 = vadd.f32 %v1929_v46, %v2509_v41 }
 0x14e   :  { %v1307_v50 = vadd.f32 %v1306_v36, %v2548_v48  ;;  %v2552_v52 = vadd.f32 %v1993_v27, %v1162_v49  ;;  %v1930_v56 = vpop.f32.mrb[44].mxu0 }
 0x14f   :  { %v1994_v57 = vpop.f32.mrb[44].mxu1  ;;  %v1931_v58 = vpop.f32.mrb[45].mxu0 }
 0x150   :  { %v1308_v59 = vadd.f32 %v1307_v50, %v2552_v52  ;;  %v1932_v60 = vadd.f32 %v1931_v58, %v1930_v56  ;;  %v1995_v61 = vpop.f32.mrb[45].mxu1  ;;  %v1933_v62 = vpop.f32.mrb[46].mxu0 }
 0x151   :  { %v1996_v39 = vadd.f32 %v1995_v61, %v1994_v57  ;;  %v1997_v63 = vpop.f32.mrb[46].mxu1  ;;  %v1934_v0 = vpop.f32.mrb[47].mxu0 }
 0x152   :  { %v1167_v1 = vadd.f32 %v1932_v60, %v2511_v53  ;;  %v1935_v2 = vadd.f32 %v1934_v0, %v1933_v62  ;;  %v1998_v4 = vpop.f32.mrb[47].mxu1 }
 0x153   :  { %v1999_v41 = vadd.f32 %v1998_v4, %v1997_v63 }
 0x154   :  { %v2556_v6 = vadd.f32 %v1996_v39, %v1167_v1  ;;  %v1170_v8 = vadd.f32 %v1935_v2, %v2513_v55 }
 0x156   :  { %v1309_v10 = vadd.f32 %v1308_v59, %v2556_v6  ;;  %v2560_v12 = vadd.f32 %v1999_v41, %v1170_v8  ;;  %v1936_v14 = vpop.f32.mrb[48].mxu0 }
 0x157   :  { %v2000_v15 = vpop.f32.mrb[48].mxu1  ;;  %v1937_v16 = vpop.f32.mrb[49].mxu0 }
 0x158   :  { %v1310_v17 = vadd.f32 %v1309_v10, %v2560_v12  ;;  %v1938_v18 = vadd.f32 %v1937_v16, %v1936_v14  ;;  %v2001_v20 = vpop.f32.mrb[49].mxu1  ;;  %v1939_v11 = vpop.f32.mrb[50].mxu0 }
 0x159   :  { %v2002_v53 = vadd.f32 %v2001_v20, %v2000_v15  ;;  %v2003_v22 = vpop.f32.mrb[50].mxu1  ;;  %v1940_v23 = vpop.f32.mrb[51].mxu0 }
 0x15a   :  { %v1175_v24 = vadd.f32 %v1938_v18, %v2515_v3  ;;  %v1941_v26 = vadd.f32 %v1940_v23, %v1939_v11  ;;  %v2004_v28 = vpop.f32.mrb[51].mxu1 }
 0x15b   :  { %v2005_v55 = vadd.f32 %v2004_v28, %v2003_v22 }
 0x15c   :  { %v2564_v29 = vadd.f32 %v2002_v53, %v1175_v24  ;;  %v1178_v30 = vadd.f32 %v1941_v26, %v2517_v5 }
 0x15e   :  { %v1311_v32 = vadd.f32 %v1310_v17, %v2564_v29  ;;  %v2568_v33 = vadd.f32 %v2005_v55, %v1178_v30  ;;  %v1942_v34 = vpop.f32.mrb[52].mxu0 }
 0x15f   :  { %v2006_v36 = vpop.f32.mrb[52].mxu1  ;;  %v1943_v38 = vpop.f32.mrb[53].mxu0 }
 0x160   :  { %v1312_v40 = vadd.f32 %v1311_v32, %v2568_v33  ;;  %v1944_v42 = vadd.f32 %v1943_v38, %v1942_v34  ;;  %v2007_v25 = vpop.f32.mrb[53].mxu1  ;;  %v1945_v43 = vpop.f32.mrb[54].mxu0 }
 0x161   :  { %v2008_v3 = vadd.f32 %v2007_v25, %v2006_v36  ;;  %v2009_v44 = vpop.f32.mrb[54].mxu1  ;;  %v1946_v45 = vpop.f32.mrb[55].mxu0 }
 0x162   :  { %v1183_v46 = vadd.f32 %v1944_v42, %v2519_v19  ;;  %v1947_v47 = vadd.f32 %v1946_v45, %v1945_v43  ;;  %v2010_v27 = vpop.f32.mrb[55].mxu1 }
 0x163   :  { %v2011_v5 = vadd.f32 %v2010_v27, %v2009_v44 }
 0x164   :  { %v1280_v49 = vadd.f32 %v2008_v3, %v1183_v46  ;;  %v1186_v50 = vadd.f32 %v1947_v47, %v2521_v21 }
 0x166   :  { %v1313_v56 = vadd.f32 %v1312_v40, %v1280_v49  ;;  %v1283_v57 = vadd.f32 %v2011_v5, %v1186_v50  ;;  %v1948_v58 = vpop.f32.mrb[56].mxu0 }
 0x167   :  { %v2012_v59 = vpop.f32.mrb[56].mxu1  ;;  %v1949_v60 = vpop.f32.mrb[57].mxu0 }
 0x168   :  { %v1314_v61 = vadd.f32 %v1313_v56, %v1283_v57  ;;  %v1950_v62 = vadd.f32 %v1949_v60, %v1948_v58  ;;  %v2013_v39 = vpop.f32.mrb[57].mxu1  ;;  %v1951_v63 = vpop.f32.mrb[58].mxu0 }
 0x169   :  { %v2014_v0 = vadd.f32 %v2013_v39, %v2012_v59  ;;  %v2015_v1 = vpop.f32.mrb[58].mxu1  ;;  %v1952_v2 = vpop.f32.mrb[59].mxu0 }
 0x16a   :  { %v1191_v19 = vadd.f32 %v1950_v62, %v2523_v35  ;;  %v1953_v4 = vadd.f32 %v1952_v2, %v1951_v63  ;;  %v2016_v41 = vpop.f32.mrb[59].mxu1 }
 0x16b   :  { %v2017_v8 = vadd.f32 %v2016_v41, %v2015_v1 }
 0x16c   :  { %v1288_v10 = vadd.f32 %v2014_v0, %v1191_v19  ;;  %v1194_v21 = vadd.f32 %v1953_v4, %v2525_v37 }
 0x16e   :  { %v1315_v14 = vadd.f32 %v1314_v61, %v1288_v10  ;;  %v1291_v15 = vadd.f32 %v2017_v8, %v1194_v21  ;;  %v1954_v16 = vpop.f32.mrb[60].mxu0 }
 0x16f   :  { %v2018_v17 = vpop.f32.mrb[60].mxu1  ;;  %v1955_v18 = vpop.f32.mrb[61].mxu0 }
 0x170   :  { %v1316_v20 = vadd.f32 %v1315_v14, %v1291_v15  ;;  %v1956_v11 = vadd.f32 %v1955_v18, %v1954_v16  ;;  %v2019_v53 = vpop.f32.mrb[61].mxu1  ;;  %v1957_v22 = vpop.f32.mrb[62].mxu0 }
 0x171   :  { %v2020_v23 = vadd.f32 %v2019_v53, %v2018_v17  ;;  %v2021_v24 = vpop.f32.mrb[62].mxu1  ;;  %v1958_v26 = vpop.f32.mrb[63].mxu0 }
 0x172   :  { %v1199_v35 = vadd.f32 %v1956_v11, %v2527_v51  ;;  %v1959_v28 = vadd.f32 %v1958_v26, %v1957_v22  ;;  %v2022_v55 = vpop.f32.mrb[63].mxu1 }
 0x173   :  { %v2023_v30 = vadd.f32 %v2022_v55, %v2021_v24 }
 0x174   :  { %v1296_v32 = vadd.f32 %v2020_v23, %v1199_v35  ;;  %v1202_v37 = vadd.f32 %v1959_v28, %v2529_v54 }
 0x176   :  { %v1317_v34 = vadd.f32 %v1316_v20, %v1296_v32  ;;  %v1299_v36 = vadd.f32 %v2023_v30, %v1202_v37 }
 0x178   :  { %v1318_v38 = vadd.f32 %v1317_v34, %v1299_v36 }
 0x17a   :  { %v1319_v40 = vrot.slane %v1318_v38, 4 }
 0x17c   :  { %v1320_v42 = vadd.f32 %v1319_v40, %v1318_v38  ;;  %v1302_v40 = vld [vmem:[%s2715_s2] sm:$0x1] }
 0x17e   :  { %v1321_v25 = vrot.slane %v1320_v42, 2 }
 0x180   :  { %v1322_v43 = vadd.f32 %v1321_v25, %v1320_v42 }
 0x182   :  { %v1323_v3 = vrot.slane %v1322_v43, 1 }
 0x184   :  { %v1324_v44 = vadd.f32 %v1323_v3, %v1322_v43 }
 0x186   :  { %v1326_v45 = vmul.f32 0.0078125, %v1324_v44 }
 0x188   :  { %v2578_v46 = vsub.f32 %v2532_v7, %v1326_v45  ;;  %v2581_v51 = vsub.f32 %v2535_v9, %v1326_v45  ;;  %v2584_v47 = vsub.f32 %v2540_v13, %v1326_v45  ;;  %v2587_v54 = vsub.f32 %v2544_v31, %v1326_v45 }
 0x189   :  { %v2590_v27 = vsub.f32 %v2548_v48, %v1326_v45  ;;  %v2593_v5 = vsub.f32 %v2552_v52, %v1326_v45  ;;  %v2596_v50 = vsub.f32 %v2556_v6, %v1326_v45  ;;  %v2599_v7 = vsub.f32 %v2560_v12, %v1326_v45 }
 0x18a   :  { %v2602_v9 = vsub.f32 %v2564_v29, %v1326_v45  ;;  %v2605_v13 = vsub.f32 %v2568_v33, %v1326_v45  ;;  %v2607_v31 = vsub.f32 %v1280_v49, %v1326_v45  ;;  %v2609_v56 = vsub.f32 %v1283_v57, %v1326_v45 }
 0x18b   :  { %v2611_v48 = vsub.f32 %v1288_v10, %v1326_v45  ;;  %v2613_v52 = vsub.f32 %v1291_v15, %v1326_v45  ;;  %v2615_v58 = vsub.f32 %v1296_v32, %v1326_v45  ;;  %v2617_v6 = vsub.f32 %v1299_v36, %v1326_v45 }
 0x18c   :  { %v1343_v12 = vmul.f32 %v2578_v46, %v2578_v46  ;;  %v1344_v29 = vmul.f32 %v2581_v51, %v2581_v51  ;;  %v1345_v33 = vmul.f32 %v2584_v47, %v2584_v47  ;;  %v1346_v57 = vmul.f32 %v2587_v54, %v2587_v54 }
 0x18d   :  { %v1347_v60 = vmul.f32 %v2590_v27, %v2590_v27  ;;  %v1348_v62 = vmul.f32 %v2593_v5, %v2593_v5  ;;  %v1349_v63 = vmul.f32 %v2596_v50, %v2596_v50  ;;  %v1350_v1 = vmul.f32 %v2599_v7, %v2599_v7 }
 0x18e   :  { %v1359_v49 = vadd.f32 %v1344_v29, %v1343_v12  ;;  %v1351_v19 = vmul.f32 %v2602_v9, %v2602_v9  ;;  %v1352_v41 = vmul.f32 %v2605_v13, %v2605_v13  ;;  %v1353_v10 = vmul.f32 %v2607_v31, %v2607_v31 }
 0x18f   :  { %v1354_v14 = vmul.f32 %v2609_v56, %v2609_v56  ;;  %v1355_v16 = vmul.f32 %v2611_v48, %v2611_v48  ;;  %v1356_v18 = vmul.f32 %v2613_v52, %v2613_v52  ;;  %v1357_v11 = vmul.f32 %v2615_v58, %v2615_v58 }
 0x190   :  { %v1360_v59 = vadd.f32 %v1359_v49, %v1345_v33  ;;  %v1358_v22 = vmul.f32 %v2617_v6, %v2617_v6  ;;  %v1385_v36 = vlaneseq  ;;  %v1688_v33 = vld [vmem:[%s2716_s3] ss:$0 sm:$0xff] }
 0x192   :  { %v1361_v61 = vadd.f32 %v1360_v59, %v1346_v57  ;;  %v1386_v38 = vshrl.u32 %v1385_v36, 7 }
 0x194   :  { %v1362_v39 = vadd.f32 %v1361_v61, %v1347_v60  ;;  %v1387_v42 = vsub.s32 0, %v1386_v38 }
 0x196   :  { %v1363_v0 = vadd.f32 %v1362_v39, %v1348_v62 }
 0x198   :  { %v1364_v2 = vadd.f32 %v1363_v0, %v1349_v63 }
 0x19a   :  { %v1365_v4 = vadd.f32 %v1364_v2, %v1350_v1 }
 0x19c   :  { %v1366_v8 = vadd.f32 %v1365_v4, %v1351_v19 }
 0x19e   :  { %v1367_v21 = vadd.f32 %v1366_v8, %v1352_v41 }
 0x1a0   :  { %v1368_v15 = vadd.f32 %v1367_v21, %v1353_v10 }
 0x1a2   :  { %v1369_v17 = vadd.f32 %v1368_v15, %v1354_v14 }
 0x1a4   :  { %v1370_v20 = vadd.f32 %v1369_v17, %v1355_v16 }
 0x1a6   :  { %v1371_v53 = vadd.f32 %v1370_v20, %v1356_v18 }
 0x1a8   :  { %v1372_v23 = vadd.f32 %v1371_v53, %v1357_v11 }
 0x1aa   :  { %v1373_v24 = vadd.f32 %v1372_v23, %v1358_v22 }
 0x1ac   :  { %v1374_v26 = vrot.slane %v1373_v24, 4 }
 0x1ae   :  { %v1375_v35 = vadd.f32 %v1374_v26, %v1373_v24 }
 0x1b0   :  { %v1376_v28 = vrot.slane %v1375_v35, 2 }
 0x1b2   :  { %v1377_v55 = vadd.f32 %v1376_v28, %v1375_v35 }
 0x1b4   :  { %v1378_v30 = vrot.slane %v1377_v55, 1 }
 0x1b6   :  { %v1379_v32 = vadd.f32 %v1378_v30, %v1377_v55 }
 0x1b8   :  { %v1380_v37 = vmul.f32 0.0078125, %v1379_v32 }
 0x1ba   :  { %v1381_v34 = vadd.f32 1e-05, %v1380_v37 }
 0x1bc   :  { %2088 = vrsqrt.f32 %v1381_v34 }
 0x1c6   :  { %v2089_v25 = vpop.eup %2088 }
 0x1c7   :  { %v1383_v43 = vmul.f32 %v2089_v25, %v1302_v40 }
 0x1c9   :  { %v1388_v3 = vrot.slane %v1383_v43, %v1387_v42 }
 0x1cb   :  { %v1390_v44 = vmul.f32 %v1388_v3, %v2578_v46  ;;  %v1391_v45 = vmul.f32 %v1388_v3, %v2581_v51  ;;  %v1392_v12 = vmul.f32 %v1388_v3, %v2584_v47  ;;  %v1393_v29 = vmul.f32 %v1388_v3, %v2587_v54 }
 0x1cc   :  { %v1394_v49 = vmul.f32 %v1388_v3, %v2590_v27  ;;  %v1395_v57 = vmul.f32 %v1388_v3, %v2593_v5  ;;  %v1396_v59 = vmul.f32 %v1388_v3, %v2596_v50  ;;  %v1397_v60 = vmul.f32 %v1388_v3, %v2599_v7 }
 0x1cd   :  { %v1398_v46 = vmul.f32 %v1388_v3, %v2602_v9  ;;  %v1399_v51 = vmul.f32 %v1388_v3, %v2605_v13  ;;  %v1400_v47 = vmul.f32 %v1388_v3, %v2607_v31  ;;  %v1401_v54 = vmul.f32 %v1388_v3, %v2609_v56 }
 0x1ce   :  { %v1402_v61 = vmul.f32 %v1388_v3, %v2611_v48  ;;  %v1403_v62 = vmul.f32 %v1388_v3, %v2613_v52  ;;  %v1404_v27 = vmul.f32 %v1388_v3, %v2615_v58  ;;  %v1405_v5 = vmul.f32 %v1388_v3, %v2617_v6 }
 0x1cf   :  { %v1412_v39 = vadd.f32 %v1688_v33, %v1390_v44  ;;  %v1413_v50 = vadd.f32 %v1688_v33, %v1391_v45  ;;  %v1414_v63 = vadd.f32 %v1688_v33, %v1392_v12  ;;  %v1415_v7 = vadd.f32 %v1688_v33, %v1393_v29 }
 0x1d0   :  { %v1416_v0 = vadd.f32 %v1688_v33, %v1394_v49  ;;  %v1417_v9 = vadd.f32 %v1688_v33, %v1395_v57  ;;  %v1418_v1 = vadd.f32 %v1688_v33, %v1396_v59  ;;  %v1419_v13 = vadd.f32 %v1688_v33, %v1397_v60 }
 0x1d1   :  { %v1420_v2 = vadd.f32 %v1688_v33, %v1398_v46  ;;  %v1421_v31 = vadd.f32 %v1688_v33, %v1399_v51  ;;  %v1422_v19 = vadd.f32 %v1688_v33, %v1400_v47  ;;  %v1423_v56 = vadd.f32 %v1688_v33, %v1401_v54 }
 0x1d2   :  { %v1424_v4 = vadd.f32 %v1688_v33, %v1402_v61  ;;  %v1425_v48 = vadd.f32 %v1688_v33, %v1403_v62  ;;  %v1426_v41 = vadd.f32 %v1688_v33, %v1404_v27  ;;  %v1427_v52 = vadd.f32 %v1688_v33, %v1405_v5 }
 0x1d3   :  { %vm1428_vm0 = vcmp.gt.f32.partialorder %v1412_v39, 0.0  ;;  %vm1429_vm1 = vcmp.gt.f32.partialorder %v1413_v50, 0.0  ;;  %vm1430_vm2 = vcmp.gt.f32.partialorder %v1414_v63, 0.0  ;;  %vm1431_vm3 = vcmp.gt.f32.partialorder %v1415_v7, 0.0 }
 0x1d4   :  { %vm1432_vm4 = vcmp.gt.f32.partialorder %v1416_v0, 0.0  ;;  %vm1433_vm5 = vcmp.gt.f32.partialorder %v1417_v9, 0.0  ;;  %vm1434_vm6 = vcmp.gt.f32.partialorder %v1418_v1, 0.0  ;;  %vm1435_vm7 = vcmp.gt.f32.partialorder %v1419_v13, 0.0 }
 0x1d5   :  { %vm1436_vm8 = vcmp.gt.f32.partialorder %v1420_v2, 0.0  ;;  %vm1437_vm9 = vcmp.gt.f32.partialorder %v1421_v31, 0.0  ;;  %vm1438_vm10 = vcmp.gt.f32.partialorder %v1422_v19, 0.0  ;;  %vm1439_vm11 = vcmp.gt.f32.partialorder %v1423_v56, 0.0 }
 0x1d6   :  { %vm1440_vm12 = vcmp.gt.f32.partialorder %v1424_v4, 0.0  ;;  %vm1441_vm13 = vcmp.gt.f32.partialorder %v1425_v48, 0.0  ;;  %vm1442_vm14 = vcmp.gt.f32.partialorder %v1426_v41, 0.0  ;;  %vm1443_vm15 = vcmp.gt.f32.partialorder %v1427_v52, 0.0 }
 0x1d7   :  { %v1444_v58 = vmul.f32 0.2, %v1412_v39  ;;  %v1445_v6 = vmul.f32 0.2, %v1413_v50  ;;  %v1446_v8 = vmul.f32 0.2, %v1414_v63 }
 0x1d8   :  { %v1447_v10 = vmul.f32 0.2, %v1415_v7  ;;  %v1448_v21 = vmul.f32 0.2, %v1416_v0  ;;  %v1449_v14 = vmul.f32 0.2, %v1417_v9 }
 0x1d9   :  { %v1450_v15 = vmul.f32 0.2, %v1418_v1  ;;  %v1451_v16 = vmul.f32 0.2, %v1419_v13  ;;  %v1452_v17 = vmul.f32 0.2, %v1420_v2  ;;  %v1460_v18 = vsel %vm1428_vm0, %v1412_v39, %v1444_v58 }
 0x1da   :  { %v1453_v20 = vmul.f32 0.2, %v1421_v31  ;;  %v1454_v11 = vmul.f32 0.2, %v1422_v19  ;;  %v1455_v53 = vmul.f32 0.2, %v1423_v56  ;;  %v1461_v22 = vsel %vm1429_vm1, %v1413_v50, %v1445_v6 }
 0x1db   :  { %v1456_v23 = vmul.f32 0.2, %v1424_v4  ;;  %v1457_v24 = vmul.f32 0.2, %v1425_v48  ;;  %v1458_v26 = vmul.f32 0.2, %v1426_v41  ;;  %v1462_v35 = vsel %vm1430_vm2, %v1414_v63, %v1446_v8 }
 0x1dc   :  { %v1459_v28 = vmul.f32 0.2, %v1427_v52  ;;  %v1463_v55 = vsel %vm1431_vm3, %v1415_v7, %v1447_v10  ;;  %v1464_v30 = vsel %vm1432_vm4, %v1416_v0, %v1448_v21  ;;  %v1465_v32 = vsel %vm1433_vm5, %v1417_v9, %v1449_v14 }
 0x1dd   :  { %v1466_v37 = vsel %vm1434_vm6, %v1418_v1, %v1450_v15  ;;  %v1467_v34 = vsel %vm1435_vm7, %v1419_v13, %v1451_v16  ;;  %v1468_v36 = vsel %vm1436_vm8, %v1420_v2, %v1452_v17  ;;  %v1469_v38 = vsel %vm1437_vm9, %v1421_v31, %v1453_v20 }
 0x1de   :  { %v1470_v40 = vsel %vm1438_vm10, %v1422_v19, %v1454_v11  ;;  %v1471_v42 = vsel %vm1439_vm11, %v1423_v56, %v1455_v53  ;;  %v1472_v25 = vsel %vm1440_vm12, %v1424_v4, %v1456_v23  ;;  %v1473_v43 = vsel %vm1441_vm13, %v1425_v48, %v1457_v24 }
 0x1df   :  { %v1474_v3 = vsel %vm1442_vm14, %v1426_v41, %v1458_v26  ;;  %v1475_v44 = vsel %vm1443_vm15, %v1427_v52, %v1459_v28  ;;  %v1724_v45 = vpack.c.bf16 %v1461_v22, %v1460_v18  ;;  %v1729_v12 = vpack.c.bf16 %v1463_v55, %v1462_v35 }
 0x1e0   :  { %v1734_v29 = vpack.c.bf16 %v1465_v32, %v1464_v30  ;;  %v1739_v33 = vpack.c.bf16 %v1467_v34, %v1466_v37  ;;  %v1744_v49 = vpack.c.bf16 %v1469_v38, %v1468_v36  ;;  %v1749_v57 = vpack.c.bf16 %v1471_v42, %v1470_v40 }
 0x1e1   :  { %1725 = vst [vmem:[%s2717_s4] sm:$0xff] %v1724_v45   ;;  %1761 = vst [vmem:[%s2717_s4 + $0x8] sm:$0xff] %v1729_v12   ;;  %v1754_v59 = vpack.c.bf16 %v1473_v43, %v1472_v25  ;;  %v1759_v60 = vpack.c.bf16 %v1475_v44, %v1474_v3 }
 0x1e2   :  { %1762 = vst [vmem:[%s2717_s4 + $0x10] sm:$0xff] %v1734_v29   ;;  %1763 = vst [vmem:[%s2717_s4 + $0x18] sm:$0xff] %v1739_v33  }
 0x1e3   :  { %1764 = vst [vmem:[%s2717_s4 + $0x20] sm:$0xff] %v1744_v49   ;;  %1765 = vst [vmem:[%s2717_s4 + $0x28] sm:$0xff] %v1749_v57  }
 0x1e4   :  { %1766 = vst [vmem:[%s2717_s4 + $0x30] sm:$0xff] %v1754_v59   ;;  %1767 = vst [vmem:[%s2717_s4 + $0x38] sm:$0xff] %v1759_v60  }

// kernel: discriminator_forward.5
= control target key start
LH: loop header
LB: loop body
LE: loop exit
PB: predicated region body
PF: predicated region fallthrough
CT: control target
= control target key end

     0   :  { %vm2341_vm8 = vcmask 261120   ;;  %vm2416_vm9 = vcmask 1041408   ;;  %vm2436_vm10 = vcmask 1024   ;;  %s4204_s1 = inlined_call_operand.vmem [shape: bf16[2048,256], index: 1, kind: input, shape index: {}]   ;;  %s4205_s0 = inlined_call_operand.vmem [shape: bf16[32,2048], index: 0, kind: input, shape index: {}]   ;;  %s4206_s2 = inlined_call_operand.vmem [shape: f32[1,256], index: 2, kind: input, shape index: {}]   ;;  %s4207_s3 = inlined_call_operand.vmem [shape: f32[1,256], index: 3, kind: input, shape index: {}]   ;;  %s4208_s4 = inlined_call_operand.vmem [shape: f32[32,256], index: 4, kind: input, shape index: {}]   ;;  %s4209_s5 = inlined_call_operand.vmem [shape: f32[2,32], index: 5, kind: input, shape index: {}]   ;;  %s4210_s6 = inlined_call_operand.<no memory space> [shape: f32[1,1], index: 6, kind: input, shape index: {}]   ;;  %s4211_s7 = inlined_call_operand.vmem [shape: f32[2,1], index: 7, kind: output, shape index: {}]  }
   0x1   :  { %v2799_v0 = vld [vmem:[%s4204_s1 + $0x4] ss:$8 sps:$4 sm:$0xff]   ;;  %v2803_v2 = vld [vmem:[%s4204_s1] ss:$8 sps:$4 sm:$0xff]   ;;  %v2805_v4 = vld [vmem:[%s4204_s1 + $0x14] ss:$8 sps:$4 sm:$0xff]  }
   0x2   :  { %v2801_v1 = vld [vmem:[%s4204_s1 + $0x404] ss:$8 sps:$4 sm:$0xff]   ;;  %1756 = vmatprep.subr.bf16.mxu1 %v2799_v0  ;;  %v2804_v3 = vld [vmem:[%s4204_s1 + $0x400] ss:$8 sps:$4 sm:$0xff]   ;;  %v2807_v5 = vld [vmem:[%s4204_s1 + $0x414] ss:$8 sps:$4 sm:$0xff]  }
   0x3   :  { %1968 = vmatprep.subr.bf16.mxu0 %v2801_v1  ;;  %1757 = vmatpush1.bf16.msra.mxu1 %v2803_v2  ;;  %v2809_v6 = vld [vmem:[%s4204_s1 + $0x10] ss:$8 sps:$4 sm:$0xff]   ;;  %v2811_v8 = vld [vmem:[%s4204_s1 + $0x24] ss:$8 sps:$4 sm:$0xff]   ;;  %v2815_v10 = vld [vmem:[%s4204_s1 + $0x20] ss:$8 sps:$4 sm:$0xff]  }
   0x4   :  { %1969 = vmatpush1.bf16.msra.mxu0 %v2804_v3  ;;  %1758 = vmatprep.subr.bf16.mxu1 %v2805_v4  ;;  %v2810_v7 = vld [vmem:[%s4204_s1 + $0x410] ss:$8 sps:$4 sm:$0xff]   ;;  %v2813_v9 = vld [vmem:[%s4204_s1 + $0x424] ss:$8 sps:$4 sm:$0xff]   ;;  %v2816_v11 = vld [vmem:[%s4204_s1 + $0x420] ss:$8 sps:$4 sm:$0xff]  }
   0x5   :  { %1970 = vmatprep.subr.bf16.mxu0 %v2807_v5  ;;  %v2817_v12 = vld [vmem:[%s4204_s1 + $0x34] ss:$8 sps:$4 sm:$0xff]   ;;  %v2821_v14 = vld [vmem:[%s4204_s1 + $0x30] ss:$8 sps:$4 sm:$0xff]   ;;  %v2823_v16 = vld [vmem:[%s4204_s1 + $0x44] ss:$8 sps:$4 sm:$0xff]  }
   0x6   :  { %v2819_v13 = vld [vmem:[%s4204_s1 + $0x434] ss:$8 sps:$4 sm:$0xff]   ;;  %v2822_v15 = vld [vmem:[%s4204_s1 + $0x430] ss:$8 sps:$4 sm:$0xff]   ;;  %v2825_v17 = vld [vmem:[%s4204_s1 + $0x444] ss:$8 sps:$4 sm:$0xff]  }
   0x7   :  { %1759 = vmatpush1.bf16.msra.mxu1 %v2809_v6  ;;  %v2827_v18 = vld [vmem:[%s4204_s1 + $0x40] ss:$8 sps:$4 sm:$0xff]   ;;  %v2829_v20 = vld [vmem:[%s4204_s1 + $0x54] ss:$8 sps:$4 sm:$0xff]   ;;  %v2833_v22 = vld [vmem:[%s4204_s1 + $0x50] ss:$8 sps:$4 sm:$0xff]  }
   0x8   :  { %1971 = vmatpush1.bf16.msra.mxu0 %v2810_v7  ;;  %1760 = vmatprep.subr.bf16.mxu1 %v2811_v8  ;;  %v2828_v19 = vld [vmem:[%s4204_s1 + $0x440] ss:$8 sps:$4 sm:$0xff]   ;;  %v2831_v21 = vld [vmem:[%s4204_s1 + $0x454] ss:$8 sps:$4 sm:$0xff]   ;;  %v2834_v23 = vld [vmem:[%s4204_s1 + $0x450] ss:$8 sps:$4 sm:$0xff]  }
   0x9   :  { %1972 = vmatprep.subr.bf16.mxu0 %v2813_v9  ;;  %v2835_v24 = vld [vmem:[%s4204_s1 + $0x64] ss:$8 sps:$4 sm:$0xff]   ;;  %v2839_v26 = vld [vmem:[%s4204_s1 + $0x60] ss:$8 sps:$4 sm:$0xff]   ;;  %v2841_v28 = vld [vmem:[%s4204_s1 + $0x74] ss:$8 sps:$4 sm:$0xff]  }
   0xa   :  { %v2837_v25 = vld [vmem:[%s4204_s1 + $0x464] ss:$8 sps:$4 sm:$0xff]   ;;  %v2840_v27 = vld [vmem:[%s4204_s1 + $0x460] ss:$8 sps:$4 sm:$0xff]   ;;  %v2843_v29 = vld [vmem:[%s4204_s1 + $0x474] ss:$8 sps:$4 sm:$0xff]  }
   0xb   :  { %1761 = vmatpush1.bf16.msra.mxu1 %v2815_v10  ;;  %v2845_v30 = vld [vmem:[%s4204_s1 + $0x70] ss:$8 sps:$4 sm:$0xff]   ;;  %v2847_v32 = vld [vmem:[%s4204_s1 + $0x84] ss:$8 sps:$4 sm:$0xff]   ;;  %v2851_v34 = vld [vmem:[%s4204_s1 + $0x80] ss:$8 sps:$4 sm:$0xff]  }
   0xc   :  { %1973 = vmatpush1.bf16.msra.mxu0 %v2816_v11  ;;  %1762 = vmatprep.subr.bf16.mxu1 %v2817_v12  ;;  %v2846_v31 = vld [vmem:[%s4204_s1 + $0x470] ss:$8 sps:$4 sm:$0xff]   ;;  %v2849_v33 = vld [vmem:[%s4204_s1 + $0x484] ss:$8 sps:$4 sm:$0xff]   ;;  %v2852_v35 = vld [vmem:[%s4204_s1 + $0x480] ss:$8 sps:$4 sm:$0xff]  }
   0xd   :  { %1974 = vmatprep.subr.bf16.mxu0 %v2819_v13  ;;  %v2853_v36 = vld [vmem:[%s4204_s1 + $0x94] ss:$8 sps:$4 sm:$0xff]   ;;  %v2857_v38 = vld [vmem:[%s4204_s1 + $0x90] ss:$8 sps:$4 sm:$0xff]   ;;  %v2859_v40 = vld [vmem:[%s4204_s1 + $0xa4] ss:$8 sps:$4 sm:$0xff]  }
   0xe   :  { %v2855_v37 = vld [vmem:[%s4204_s1 + $0x494] ss:$8 sps:$4 sm:$0xff]   ;;  %v2858_v39 = vld [vmem:[%s4204_s1 + $0x490] ss:$8 sps:$4 sm:$0xff]   ;;  %v2861_v41 = vld [vmem:[%s4204_s1 + $0x4a4] ss:$8 sps:$4 sm:$0xff]  }
   0xf   :  { %1763 = vmatpush1.bf16.msra.mxu1 %v2821_v14  ;;  %v2863_v42 = vld [vmem:[%s4204_s1 + $0xa0] ss:$8 sps:$4 sm:$0xff]   ;;  %v2865_v44 = vld [vmem:[%s4204_s1 + $0xb4] ss:$8 sps:$4 sm:$0xff]   ;;  %v2869_v46 = vld [vmem:[%s4204_s1 + $0xb0] ss:$8 sps:$4 sm:$0xff]  }
  0x10   :  { %1975 = vmatpush1.bf16.msra.mxu0 %v2822_v15  ;;  %1764 = vmatprep.subr.bf16.mxu1 %v2823_v16  ;;  %v2864_v43 = vld [vmem:[%s4204_s1 + $0x4a0] ss:$8 sps:$4 sm:$0xff]   ;;  %v2867_v45 = vld [vmem:[%s4204_s1 + $0x4b4] ss:$8 sps:$4 sm:$0xff]   ;;  %v2870_v47 = vld [vmem:[%s4204_s1 + $0x4b0] ss:$8 sps:$4 sm:$0xff]  }
  0x11   :  { %1976 = vmatprep.subr.bf16.mxu0 %v2825_v17  ;;  %v28_v48 = vld [vmem:[%s4205_s0] sm:$0xff]  ;;  %v2877_v58 = vld [vmem:[%s4204_s1 + $0xd4] ss:$8 sps:$4 sm:$0xff]   ;;  %v2881_v60 = vld [vmem:[%s4204_s1 + $0xd0] ss:$8 sps:$4 sm:$0xff]  }
  0x12   :  { %v36_v49 = vld [vmem:[%s4205_s0 + $0x40] sm:$0xff]  ;;  %v2879_v59 = vld [vmem:[%s4204_s1 + $0x4d4] ss:$8 sps:$4 sm:$0xff]   ;;  %v2882_v61 = vld [vmem:[%s4204_s1 + $0x4d0] ss:$8 sps:$4 sm:$0xff]  }
  0x13   :  { %1765 = vmatpush1.bf16.msra.mxu1 %v2827_v18  ;;  %v2871_v50 = vld [vmem:[%s4204_s1 + $0xc4] ss:$8 sps:$4 sm:$0xff]   ;;  %v2443_v52 = vcombine.high %v28_v48, %v36_v49  ;;  %v2875_v56 = vld [vmem:[%s4204_s1 + $0xc0] ss:$8 sps:$4 sm:$0xff]   ;;  %v2889_v2 = vld [vmem:[%s4204_s1 + $0xf4] ss:$8 sps:$4 sm:$0xff]   ;;  %v2442_v8 = vcombine.low %v28_v48, %v36_v49 }
  0x14   :  { %1977 = vmatpush1.bf16.msra.mxu0 %v2828_v19  ;;  %1766 = vmatprep.subr.bf16.mxu1 %v2829_v20  ;;  %v2873_v51 = vld [vmem:[%s4204_s1 + $0x4c4] ss:$8 sps:$4 sm:$0xff]   ;;  %v2876_v57 = vld [vmem:[%s4204_s1 + $0x4c0] ss:$8 sps:$4 sm:$0xff]   ;;  %v2891_v3 = vld [vmem:[%s4204_s1 + $0x4f4] ss:$8 sps:$4 sm:$0xff]  }
  0x15   :  { %1978 = vmatprep.subr.bf16.mxu0 %v2831_v21  ;;  %v32_v53 = vld [vmem:[%s4205_s0 + $0x20] sm:$0xff]  ;;  %1788 = vmatprep.mubr.bf16.mxu1 %v2443_v52  ;;  %v2893_v4 = vld [vmem:[%s4204_s1 + $0xf0] ss:$8 sps:$4 sm:$0xff]   ;;  %v2903_v12 = vld [vmem:[%s4204_s1 + $0x114] ss:$8 sps:$4 sm:$0xff]  }
  0x16   :  { %v40_v54 = vld [vmem:[%s4205_s0 + $0x60] sm:$0xff]  ;;  %v2894_v5 = vld [vmem:[%s4204_s1 + $0x4f0] ss:$8 sps:$4 sm:$0xff]   ;;  %v2906_v13 = vld [vmem:[%s4204_s1 + $0x514] ss:$8 sps:$4 sm:$0xff]  }
  0x17   :  { %1767 = vmatpush1.bf16.msra.mxu1 %v2833_v22  ;;  %v2451_v55 = vcombine.high %v32_v53, %v40_v54  ;;  %v2883_v62 = vld [vmem:[%s4204_s1 + $0xe4] ss:$8 sps:$4 sm:$0xff]   ;;  %v2887_v0 = vld [vmem:[%s4204_s1 + $0xe0] ss:$8 sps:$4 sm:$0xff]   ;;  %v2450_v10 = vcombine.low %v32_v53, %v40_v54  ;;  %v2901_v14 = vld [vmem:[%s4204_s1 + $0x110] ss:$8 sps:$4 sm:$0xff]  }
  0x18   :  { %1979 = vmatpush1.bf16.msra.mxu0 %v2834_v23  ;;  %1768 = vmatprep.subr.bf16.mxu1 %v2835_v24  ;;  %v2885_v63 = vld [vmem:[%s4204_s1 + $0x4e4] ss:$8 sps:$4 sm:$0xff]   ;;  %v2888_v1 = vld [vmem:[%s4204_s1 + $0x4e0] ss:$8 sps:$4 sm:$0xff]   ;;  %v2904_v15 = vld [vmem:[%s4204_s1 + $0x510] ss:$8 sps:$4 sm:$0xff]  }
  0x19   :  { %1980 = vmatprep.subr.bf16.mxu0 %v2837_v25  ;;  %2000 = vmatprep.mubr.bf16.mxu0 %v2451_v55  ;;  %v2897_v6 = vld [vmem:[%s4204_s1 + $0x104] ss:$8 sps:$4 sm:$0xff]   ;;  %v2895_v9 = vld [vmem:[%s4204_s1 + $0x100] ss:$8 sps:$4 sm:$0xff]   ;;  %v2915_v20 = vld [vmem:[%s4204_s1 + $0x134] ss:$8 sps:$4 sm:$0xff]  }
  0x1a   :  { %v2900_v7 = vld [vmem:[%s4204_s1 + $0x504] ss:$8 sps:$4 sm:$0xff]   ;;  %v2898_v11 = vld [vmem:[%s4204_s1 + $0x500] ss:$8 sps:$4 sm:$0xff]   ;;  %v2918_v21 = vld [vmem:[%s4204_s1 + $0x534] ss:$8 sps:$4 sm:$0xff]  }
  0x1b   :  { %1769 = vmatpush1.bf16.msra.mxu1 %v2839_v26  ;;  %v2909_v16 = vld [vmem:[%s4204_s1 + $0x124] ss:$8 sps:$4 sm:$0xff]   ;;  %v2907_v18 = vld [vmem:[%s4204_s1 + $0x120] ss:$8 sps:$4 sm:$0xff]   ;;  %v2913_v22 = vld [vmem:[%s4204_s1 + $0x130] ss:$8 sps:$4 sm:$0xff]  }
  0x1c   :  { %1981 = vmatpush1.bf16.msra.mxu0 %v2840_v27  ;;  %1770 = vmatprep.subr.bf16.mxu1 %v2841_v28  ;;  %v2912_v17 = vld [vmem:[%s4204_s1 + $0x524] ss:$8 sps:$4 sm:$0xff]   ;;  %v2910_v19 = vld [vmem:[%s4204_s1 + $0x520] ss:$8 sps:$4 sm:$0xff]   ;;  %v2916_v23 = vld [vmem:[%s4204_s1 + $0x530] ss:$8 sps:$4 sm:$0xff]  }
  0x1d   :  { %1982 = vmatprep.subr.bf16.mxu0 %v2843_v29  ;;  %v2921_v24 = vld [vmem:[%s4204_s1 + $0x144] ss:$8 sps:$4 sm:$0xff]   ;;  %v2919_v26 = vld [vmem:[%s4204_s1 + $0x140] ss:$8 sps:$4 sm:$0xff]   ;;  %v2927_v28 = vld [vmem:[%s4204_s1 + $0x154] ss:$8 sps:$4 sm:$0xff]  }
  0x1e   :  { %v2924_v25 = vld [vmem:[%s4204_s1 + $0x544] ss:$8 sps:$4 sm:$0xff]   ;;  %v2922_v27 = vld [vmem:[%s4204_s1 + $0x540] ss:$8 sps:$4 sm:$0xff]   ;;  %v2930_v29 = vld [vmem:[%s4204_s1 + $0x554] ss:$8 sps:$4 sm:$0xff]  }
  0x1f   :  { %1771 = vmatpush1.bf16.msra.mxu1 %v2845_v30  ;;  %v44_v30 = vld [vmem:[%s4205_s0 + $0x80] sm:$0xff]  ;;  %v3554_v49 = vld [vmem:[%s4205_s0 + $0x28] sm:$0xff]  ;;  %v2940_v52 = vld [vmem:[%s4204_s1 + $0x570] ss:$8 sps:$4 sm:$0xff]  }
  0x20   :  { %1983 = vmatpush1.bf16.msra.mxu0 %v2846_v31  ;;  %1772 = vmatprep.subr.bf16.mxu1 %v2847_v32  ;;  %v52_v31 = vld [vmem:[%s4205_s0 + $0xc0] sm:$0xff]  ;;  %v2925_v32 = vld [vmem:[%s4204_s1 + $0x150] ss:$8 sps:$4 sm:$0xff]  }
  0x21   :  { %1984 = vmatprep.subr.bf16.mxu0 %v2849_v33  ;;  %v2459_v33 = vcombine.high %v44_v30, %v52_v31  ;;  %v2945_v54 = vld [vmem:[%s4204_s1 + $0x184] ss:$8 sps:$4 sm:$0xff]  }
  0x22   :  { %v2948_v55 = vld [vmem:[%s4204_s1 + $0x584] ss:$8 sps:$4 sm:$0xff]  }
  0x23   :  { %1773 = vmatpush1.bf16.msra.mxu1 %v2851_v34  ;;  %v2928_v34 = vld [vmem:[%s4204_s1 + $0x550] ss:$8 sps:$4 sm:$0xff]  }
  0x24   :  { %1985 = vmatpush1.bf16.msra.mxu0 %v2852_v35  ;;  %1774 = vmatprep.subr.bf16.mxu1 %v2853_v36  ;;  %v48_v35 = vld [vmem:[%s4205_s0 + $0xa0] sm:$0xff] }
  0x25   :  { %1986 = vmatprep.subr.bf16.mxu0 %v2855_v37  ;;  %v56_v36 = vld [vmem:[%s4205_s0 + $0xe0] sm:$0xff]  ;;  %v2458_v37 = vcombine.low %v44_v30, %v52_v31  ;;  %v2999_v30 = vld [vmem:[%s4204_s1 + $0x214] ss:$8 sps:$4 sm:$0xff]  }
  0x26   :  { %v3002_v31 = vld [vmem:[%s4204_s1 + $0x614] ss:$8 sps:$4 sm:$0xff]  }
  0x27   :  { %1775 = vmatpush1.bf16.msra.mxu1 %v2857_v38  ;;  %v2933_v38 = vld [vmem:[%s4204_s1 + $0x164] ss:$8 sps:$4 sm:$0xff]  }
  0x28   :  { %1987 = vmatpush1.bf16.msra.mxu0 %v2858_v39  ;;  %1776 = vmatprep.subr.bf16.mxu1 %v2859_v40  ;;  %v2467_v39 = vcombine.high %v48_v35, %v56_v36  ;;  %v2466_v40 = vcombine.low %v48_v35, %v56_v36  ;;  %v2997_v36 = vld [vmem:[%s4204_s1 + $0x210] ss:$8 sps:$4 sm:$0xff]  }
  0x29   :  { %1988 = vmatprep.subr.bf16.mxu0 %v2861_v41  ;;  %v2936_v41 = vld [vmem:[%s4204_s1 + $0x564] ss:$8 sps:$4 sm:$0xff]  }
  0x2b   :  { %1777 = vmatpush1.bf16.msra.mxu1 %v2863_v42  ;;  %v2931_v42 = vld [vmem:[%s4204_s1 + $0x160] ss:$8 sps:$4 sm:$0xff]  }
  0x2c   :  { %1989 = vmatpush1.bf16.msra.mxu0 %v2864_v43  ;;  %1778 = vmatprep.subr.bf16.mxu1 %v2865_v44  ;;  %v2934_v43 = vld [vmem:[%s4204_s1 + $0x560] ss:$8 sps:$4 sm:$0xff]  }
  0x2d   :  { %1990 = vmatprep.subr.bf16.mxu0 %v2867_v45  ;;  %v3536_v44 = vld [vmem:[%s4205_s0 + $0x8] sm:$0xff] }
  0x2e   :  { %v3541_v45 = vld [vmem:[%s4205_s0 + $0x48] sm:$0xff] }
  0x2f   :  { %1779 = vmatpush1.bf16.msra.mxu1 %v2869_v46  ;;  %v2939_v46 = vld [vmem:[%s4204_s1 + $0x174] ss:$8 sps:$4 sm:$0xff]   ;;  %v2445_v48 = vcombine.high %v3536_v44, %v3541_v45 }
  0x30   :  { %1991 = vmatpush1.bf16.msra.mxu0 %v2870_v47  ;;  %1780 = vmatprep.subr.bf16.mxu1 %v2871_v50  ;;  %v2942_v47 = vld [vmem:[%s4204_s1 + $0x574] ss:$8 sps:$4 sm:$0xff]   ;;  %v3559_v50 = vld [vmem:[%s4205_s0 + $0x68] sm:$0xff] }
  0x31   :  { %1992 = vmatprep.subr.bf16.mxu0 %v2873_v51  ;;  %v2937_v51 = vld [vmem:[%s4204_s1 + $0x170] ss:$8 sps:$4 sm:$0xff]   ;;  %v2453_v53 = vcombine.high %v3554_v49, %v3559_v50 }
  0x33   :  { %1781 = vmatpush1.bf16.msra.mxu1 %v2875_v56  ;;  %v2943_v56 = vld [vmem:[%s4204_s1 + $0x180] ss:$8 sps:$4 sm:$0xff]  }
  0x34   :  { %1993 = vmatpush1.bf16.msra.mxu0 %v2876_v57  ;;  %1782 = vmatprep.subr.bf16.mxu1 %v2877_v58  ;;  %v2946_v57 = vld [vmem:[%s4204_s1 + $0x580] ss:$8 sps:$4 sm:$0xff]   ;;  %v2951_v58 = vld [vmem:[%s4204_s1 + $0x194] ss:$8 sps:$4 sm:$0xff]  }
  0x35   :  { %1994 = vmatprep.subr.bf16.mxu0 %v2879_v59  ;;  %v2954_v59 = vld [vmem:[%s4204_s1 + $0x594] ss:$8 sps:$4 sm:$0xff]  }
  0x37   :  { %1783 = vmatpush1.bf16.msra.mxu1 %v2881_v60  ;;  %v2949_v60 = vld [vmem:[%s4204_s1 + $0x190] ss:$8 sps:$4 sm:$0xff]  }
  0x38   :  { %1995 = vmatpush1.bf16.msra.mxu0 %v2882_v61  ;;  %1784 = vmatprep.subr.bf16.mxu1 %v2883_v62  ;;  %v2952_v61 = vld [vmem:[%s4204_s1 + $0x590] ss:$8 sps:$4 sm:$0xff]   ;;  %v2957_v62 = vld [vmem:[%s4204_s1 + $0x1a4] ss:$8 sps:$4 sm:$0xff]  }
  0x39   :  { %1996 = vmatprep.subr.bf16.mxu0 %v2885_v63  ;;  %v2960_v63 = vld [vmem:[%s4204_s1 + $0x5a4] ss:$8 sps:$4 sm:$0xff]  }
  0x3b   :  { %1785 = vmatpush1.bf16.msra.mxu1 %v2887_v0  ;;  %v2955_v0 = vld [vmem:[%s4204_s1 + $0x1a0] ss:$8 sps:$4 sm:$0xff]  }
  0x3c   :  { %1997 = vmatpush1.bf16.msra.mxu0 %v2888_v1  ;;  %1786 = vmatprep.subr.bf16.mxu1 %v2889_v2  ;;  %v2958_v1 = vld [vmem:[%s4204_s1 + $0x5a0] ss:$8 sps:$4 sm:$0xff]   ;;  %v2963_v2 = vld [vmem:[%s4204_s1 + $0x1b4] ss:$8 sps:$4 sm:$0xff]  }
  0x3d   :  { %1998 = vmatprep.subr.bf16.mxu0 %v2891_v3  ;;  %v2966_v3 = vld [vmem:[%s4204_s1 + $0x5b4] ss:$8 sps:$4 sm:$0xff]  }
  0x3f   :  { %1787 = vmatpush1.bf16.msra.mxu1 %v2893_v4  ;;  %v2961_v4 = vld [vmem:[%s4204_s1 + $0x1b0] ss:$8 sps:$4 sm:$0xff]  }
  0x40   :  { %1999 = vmatpush1.bf16.msra.mxu0 %v2894_v5  ;;  %1809 = vmatprep.subr.bf16.mxu1 %v2897_v6  ;;  %v2964_v5 = vld [vmem:[%s4204_s1 + $0x5b0] ss:$8 sps:$4 sm:$0xff]   ;;  %v2969_v6 = vld [vmem:[%s4204_s1 + $0x1c4] ss:$8 sps:$4 sm:$0xff]  }
  0x41   :  { %2021 = vmatprep.subr.bf16.mxu0 %v2900_v7  ;;  %v2972_v7 = vld [vmem:[%s4204_s1 + $0x5c4] ss:$8 sps:$4 sm:$0xff]  }
  0x42   :  { %1789 = vmatmul.mubr.bf16.vlgmr.msra.gmra.mrb[0].mxu1 %v2442_v8  ;;  %v2967_v8 = vld [vmem:[%s4204_s1 + $0x1c0] ss:$8 sps:$4 sm:$0xff]  }
  0x43   :  { %2001 = vmatmul.mubr.bf16.vlgmr.msra.gmra.mrb[0].mxu0 %v2450_v10  ;;  %1810 = vmatpush1.bf16.msra.mxu1 %v2895_v9  ;;  %v2970_v9 = vld [vmem:[%s4204_s1 + $0x5c0] ss:$8 sps:$4 sm:$0xff]   ;;  %v2975_v10 = vld [vmem:[%s4204_s1 + $0x1d4] ss:$8 sps:$4 sm:$0xff]  }
  0x44   :  { %2022 = vmatpush1.bf16.msra.mxu0 %v2898_v11  ;;  %1811 = vmatprep.subr.bf16.mxu1 %v2903_v12  ;;  %v2978_v11 = vld [vmem:[%s4204_s1 + $0x5d4] ss:$8 sps:$4 sm:$0xff]   ;;  %v2973_v12 = vld [vmem:[%s4204_s1 + $0x1d0] ss:$8 sps:$4 sm:$0xff]  }
  0x45   :  { %2023 = vmatprep.subr.bf16.mxu0 %v2906_v13  ;;  %1798 = vmatprep.mubr.bf16.mxu1 %v2459_v33  ;;  %v2976_v13 = vld [vmem:[%s4204_s1 + $0x5d0] ss:$8 sps:$4 sm:$0xff]   ;;  %v57_v33 = vld [vmem:[%s4205_s0 + $0xe8] sm:$0xff] }
  0x46   :  { %2010 = vmatprep.mubr.bf16.mxu0 %v2467_v39  ;;  %v3008_v39 = vld [vmem:[%s4204_s1 + $0x624] ss:$8 sps:$4 sm:$0xff]  }
  0x47   :  { %1812 = vmatpush1.bf16.msra.mxu1 %v2901_v14  ;;  %v2981_v14 = vld [vmem:[%s4204_s1 + $0x1e4] ss:$8 sps:$4 sm:$0xff]  }
  0x48   :  { %2024 = vmatpush1.bf16.msra.mxu0 %v2904_v15  ;;  %1813 = vmatprep.subr.bf16.mxu1 %v2909_v16  ;;  %v2984_v15 = vld [vmem:[%s4204_s1 + $0x5e4] ss:$8 sps:$4 sm:$0xff]   ;;  %v2979_v16 = vld [vmem:[%s4204_s1 + $0x1e0] ss:$8 sps:$4 sm:$0xff]  }
  0x49   :  { %2025 = vmatprep.subr.bf16.mxu0 %v2912_v17  ;;  %v2982_v17 = vld [vmem:[%s4204_s1 + $0x5e0] ss:$8 sps:$4 sm:$0xff]  }
  0x4a   :  { %1799 = vmatmul.mubr.bf16.gmra.mrb[4].mxu1 %v2458_v37  ;;  %v3000_v37 = vld [vmem:[%s4204_s1 + $0x610] ss:$8 sps:$4 sm:$0xff]  }
  0x4b   :  { %1814 = vmatpush1.bf16.msra.mxu1 %v2907_v18  ;;  %2011 = vmatmul.mubr.bf16.gmra.mrb[4].mxu0 %v2466_v40  ;;  %v2987_v18 = vld [vmem:[%s4204_s1 + $0x1f4] ss:$8 sps:$4 sm:$0xff]   ;;  %v3003_v40 = vld [vmem:[%s4204_s1 + $0x220] ss:$8 sps:$4 sm:$0xff]  }
  0x4c   :  { %2026 = vmatpush1.bf16.msra.mxu0 %v2910_v19  ;;  %1815 = vmatprep.subr.bf16.mxu1 %v2915_v20  ;;  %v2990_v19 = vld [vmem:[%s4204_s1 + $0x5f4] ss:$8 sps:$4 sm:$0xff]   ;;  %v2985_v20 = vld [vmem:[%s4204_s1 + $0x1f0] ss:$8 sps:$4 sm:$0xff]  }
  0x4d   :  { %2027 = vmatprep.subr.bf16.mxu0 %v2918_v21  ;;  %1841 = vmatprep.mubr.bf16.mxu1 %v2445_v48  ;;  %v2988_v21 = vld [vmem:[%s4204_s1 + $0x5f0] ss:$8 sps:$4 sm:$0xff]   ;;  %v3011_v48 = vld [vmem:[%s4204_s1 + $0x234] ss:$8 sps:$4 sm:$0xff]  }
  0x4e   :  { %2053 = vmatprep.mubr.bf16.mxu0 %v2453_v53  ;;  %v3012_v53 = vld [vmem:[%s4204_s1 + $0x630] ss:$8 sps:$4 sm:$0xff]  }
  0x4f   :  { %1816 = vmatpush1.bf16.msra.mxu1 %v2913_v22  ;;  %v2993_v22 = vld [vmem:[%s4204_s1 + $0x204] ss:$8 sps:$4 sm:$0xff]  }
  0x50   :  { %2028 = vmatpush1.bf16.msra.mxu0 %v2916_v23  ;;  %1817 = vmatprep.subr.bf16.mxu1 %v2921_v24  ;;  %v2996_v23 = vld [vmem:[%s4204_s1 + $0x604] ss:$8 sps:$4 sm:$0xff]   ;;  %v2991_v24 = vld [vmem:[%s4204_s1 + $0x200] ss:$8 sps:$4 sm:$0xff]  }
  0x51   :  { %2029 = vmatprep.subr.bf16.mxu0 %v2924_v25  ;;  %v2994_v25 = vld [vmem:[%s4204_s1 + $0x600] ss:$8 sps:$4 sm:$0xff]  }
  0x53   :  { %1818 = vmatpush1.bf16.msra.mxu1 %v2919_v26  ;;  %v45_v26 = vld [vmem:[%s4205_s0 + $0x88] sm:$0xff] }
  0x54   :  { %2030 = vmatpush1.bf16.msra.mxu0 %v2922_v27  ;;  %1819 = vmatprep.subr.bf16.mxu1 %v2927_v28  ;;  %v2444_v27 = vcombine.low %v3536_v44, %v3541_v45  ;;  %v2452_v28 = vcombine.low %v3554_v49, %v3559_v50  ;;  %v3725_v45 = vld [vmem:[%s4205_s0 + $0x50] sm:$0xff] }
  0x55   :  { %2031 = vmatprep.subr.bf16.mxu0 %v2930_v29  ;;  %v53_v29 = vld [vmem:[%s4205_s0 + $0xc8] sm:$0xff]  ;;  %v3014_v49 = vld [vmem:[%s4204_s1 + $0x634] ss:$8 sps:$4 sm:$0xff]  }
  0x57   :  { %1820 = vmatpush1.bf16.msra.mxu1 %v2925_v32  ;;  %v49_v32 = vld [vmem:[%s4205_s0 + $0xa8] sm:$0xff] }
  0x58   :  { %2032 = vmatpush1.bf16.msra.mxu0 %v2928_v34  ;;  %1821 = vmatprep.subr.bf16.mxu1 %v2933_v38  ;;  %v2461_v34 = vcombine.high %v45_v26, %v53_v29  ;;  %v2469_v35 = vcombine.high %v49_v32, %v57_v33  ;;  %v3005_v38 = vld [vmem:[%s4204_s1 + $0x224] ss:$8 sps:$4 sm:$0xff]   ;;  %v2468_v44 = vcombine.low %v49_v32, %v57_v33  ;;  %v3075_v32 = vld [vmem:[%s4204_s1 + $0x2e0] ss:$8 sps:$4 sm:$0xff]  }
  0x59   :  { %2033 = vmatprep.subr.bf16.mxu0 %v2936_v41  ;;  %v3006_v41 = vld [vmem:[%s4204_s1 + $0x620] ss:$8 sps:$4 sm:$0xff]  }
  0x5a   :  { %v3078_v33 = vld [vmem:[%s4204_s1 + $0x6e0] ss:$8 sps:$4 sm:$0xff]  }
  0x5b   :  { %1822 = vmatpush1.bf16.msra.mxu1 %v2931_v42  ;;  %v3720_v42 = vld [vmem:[%s4205_s0 + $0x10] sm:$0xff] }
  0x5c   :  { %2034 = vmatpush1.bf16.msra.mxu0 %v2934_v43  ;;  %1823 = vmatprep.subr.bf16.mxu1 %v2939_v46  ;;  %v2460_v43 = vcombine.low %v45_v26, %v53_v29  ;;  %v3730_v46 = vld [vmem:[%s4205_s0 + $0x30] sm:$0xff]  ;;  %v2447_v50 = vcombine.high %v3720_v42, %v3725_v45 }
  0x5d   :  { %2035 = vmatprep.subr.bf16.mxu0 %v2942_v47  ;;  %v3735_v47 = vld [vmem:[%s4205_s0 + $0x70] sm:$0xff] }
  0x5e   :  { %v3071_v26 = vld [vmem:[%s4204_s1 + $0x2d4] ss:$8 sps:$4 sm:$0xff]   ;;  %v3072_v29 = vld [vmem:[%s4204_s1 + $0x6d0] ss:$8 sps:$4 sm:$0xff]  }
  0x5f   :  { %1824 = vmatpush1.bf16.msra.mxu1 %v2937_v51  ;;  %v2455_v51 = vcombine.high %v3730_v46, %v3735_v47 }
  0x60   :  { %2036 = vmatpush1.bf16.msra.mxu0 %v2940_v52  ;;  %1825 = vmatprep.subr.bf16.mxu1 %v2945_v54  ;;  %v3009_v52 = vld [vmem:[%s4204_s1 + $0x230] ss:$8 sps:$4 sm:$0xff]   ;;  %v3017_v54 = vld [vmem:[%s4204_s1 + $0x244] ss:$8 sps:$4 sm:$0xff]  }
  0x61   :  { %2037 = vmatprep.subr.bf16.mxu0 %v2948_v55  ;;  %v3020_v55 = vld [vmem:[%s4204_s1 + $0x644] ss:$8 sps:$4 sm:$0xff]  }
  0x63   :  { %1826 = vmatpush1.bf16.msra.mxu1 %v2943_v56  ;;  %v3015_v56 = vld [vmem:[%s4204_s1 + $0x240] ss:$8 sps:$4 sm:$0xff]  }
  0x64   :  { %2038 = vmatpush1.bf16.msra.mxu0 %v2946_v57  ;;  %1827 = vmatprep.subr.bf16.mxu1 %v2951_v58  ;;  %v3018_v57 = vld [vmem:[%s4204_s1 + $0x640] ss:$8 sps:$4 sm:$0xff]   ;;  %v3023_v58 = vld [vmem:[%s4204_s1 + $0x254] ss:$8 sps:$4 sm:$0xff]  }
  0x65   :  { %2039 = vmatprep.subr.bf16.mxu0 %v2954_v59  ;;  %v3026_v59 = vld [vmem:[%s4204_s1 + $0x654] ss:$8 sps:$4 sm:$0xff]  }
  0x67   :  { %1828 = vmatpush1.bf16.msra.mxu1 %v2949_v60  ;;  %v3021_v60 = vld [vmem:[%s4204_s1 + $0x250] ss:$8 sps:$4 sm:$0xff]  }
  0x68   :  { %2040 = vmatpush1.bf16.msra.mxu0 %v2952_v61  ;;  %1829 = vmatprep.subr.bf16.mxu1 %v2957_v62  ;;  %v3024_v61 = vld [vmem:[%s4204_s1 + $0x650] ss:$8 sps:$4 sm:$0xff]   ;;  %v3029_v62 = vld [vmem:[%s4204_s1 + $0x264] ss:$8 sps:$4 sm:$0xff]  }
  0x69   :  { %2041 = vmatprep.subr.bf16.mxu0 %v2960_v63  ;;  %v3032_v63 = vld [vmem:[%s4204_s1 + $0x664] ss:$8 sps:$4 sm:$0xff]  }
  0x6b   :  { %1830 = vmatpush1.bf16.msra.mxu1 %v2955_v0  ;;  %v3027_v0 = vld [vmem:[%s4204_s1 + $0x260] ss:$8 sps:$4 sm:$0xff]  }
  0x6c   :  { %2042 = vmatpush1.bf16.msra.mxu0 %v2958_v1  ;;  %1831 = vmatprep.subr.bf16.mxu1 %v2963_v2  ;;  %v3030_v1 = vld [vmem:[%s4204_s1 + $0x660] ss:$8 sps:$4 sm:$0xff]   ;;  %v3035_v2 = vld [vmem:[%s4204_s1 + $0x274] ss:$8 sps:$4 sm:$0xff]  }
  0x6d   :  { %2043 = vmatprep.subr.bf16.mxu0 %v2966_v3  ;;  %v3038_v3 = vld [vmem:[%s4204_s1 + $0x674] ss:$8 sps:$4 sm:$0xff]  }
  0x6f   :  { %1832 = vmatpush1.bf16.msra.mxu1 %v2961_v4  ;;  %v3033_v4 = vld [vmem:[%s4204_s1 + $0x270] ss:$8 sps:$4 sm:$0xff]  }
  0x70   :  { %2044 = vmatpush1.bf16.msra.mxu0 %v2964_v5  ;;  %1833 = vmatprep.subr.bf16.mxu1 %v2969_v6  ;;  %v3036_v5 = vld [vmem:[%s4204_s1 + $0x670] ss:$8 sps:$4 sm:$0xff]   ;;  %v3041_v6 = vld [vmem:[%s4204_s1 + $0x284] ss:$8 sps:$4 sm:$0xff]  }
  0x71   :  { %2045 = vmatprep.subr.bf16.mxu0 %v2972_v7  ;;  %v3044_v7 = vld [vmem:[%s4204_s1 + $0x684] ss:$8 sps:$4 sm:$0xff]  }
  0x73   :  { %1834 = vmatpush1.bf16.msra.mxu1 %v2967_v8  ;;  %v3039_v8 = vld [vmem:[%s4204_s1 + $0x280] ss:$8 sps:$4 sm:$0xff]  }
  0x74   :  { %2046 = vmatpush1.bf16.msra.mxu0 %v2970_v9  ;;  %1835 = vmatprep.subr.bf16.mxu1 %v2975_v10  ;;  %v3042_v9 = vld [vmem:[%s4204_s1 + $0x680] ss:$8 sps:$4 sm:$0xff]   ;;  %v3047_v10 = vld [vmem:[%s4204_s1 + $0x294] ss:$8 sps:$4 sm:$0xff]  }
  0x75   :  { %2047 = vmatprep.subr.bf16.mxu0 %v2978_v11  ;;  %v3050_v11 = vld [vmem:[%s4204_s1 + $0x694] ss:$8 sps:$4 sm:$0xff]  }
  0x77   :  { %1836 = vmatpush1.bf16.msra.mxu1 %v2973_v12  ;;  %v3045_v12 = vld [vmem:[%s4204_s1 + $0x290] ss:$8 sps:$4 sm:$0xff]  }
  0x78   :  { %2048 = vmatpush1.bf16.msra.mxu0 %v2976_v13  ;;  %1837 = vmatprep.subr.bf16.mxu1 %v2981_v14  ;;  %v3048_v13 = vld [vmem:[%s4204_s1 + $0x690] ss:$8 sps:$4 sm:$0xff]   ;;  %v3053_v14 = vld [vmem:[%s4204_s1 + $0x2a4] ss:$8 sps:$4 sm:$0xff]  }
  0x79   :  { %2049 = vmatprep.subr.bf16.mxu0 %v2984_v15  ;;  %v3056_v15 = vld [vmem:[%s4204_s1 + $0x6a4] ss:$8 sps:$4 sm:$0xff]  }
  0x7b   :  { %1838 = vmatpush1.bf16.msra.mxu1 %v2979_v16  ;;  %v3051_v16 = vld [vmem:[%s4204_s1 + $0x2a0] ss:$8 sps:$4 sm:$0xff]  }
  0x7c   :  { %2050 = vmatpush1.bf16.msra.mxu0 %v2982_v17  ;;  %1839 = vmatprep.subr.bf16.mxu1 %v2987_v18  ;;  %v3054_v17 = vld [vmem:[%s4204_s1 + $0x6a0] ss:$8 sps:$4 sm:$0xff]   ;;  %v3059_v18 = vld [vmem:[%s4204_s1 + $0x2b4] ss:$8 sps:$4 sm:$0xff]  }
  0x7d   :  { %2051 = vmatprep.subr.bf16.mxu0 %v2990_v19  ;;  %v3062_v19 = vld [vmem:[%s4204_s1 + $0x6b4] ss:$8 sps:$4 sm:$0xff]  }
  0x7f   :  { %1840 = vmatpush1.bf16.msra.mxu1 %v2985_v20  ;;  %v3057_v20 = vld [vmem:[%s4204_s1 + $0x2b0] ss:$8 sps:$4 sm:$0xff]  }
  0x80   :  { %2052 = vmatpush1.bf16.msra.mxu0 %v2988_v21  ;;  %1862 = vmatprep.subr.bf16.mxu1 %v2993_v22  ;;  %v3060_v21 = vld [vmem:[%s4204_s1 + $0x6b0] ss:$8 sps:$4 sm:$0xff]   ;;  %v3065_v22 = vld [vmem:[%s4204_s1 + $0x2c4] ss:$8 sps:$4 sm:$0xff]  }
  0x81   :  { %2074 = vmatprep.subr.bf16.mxu0 %v2996_v23  ;;  %v3068_v23 = vld [vmem:[%s4204_s1 + $0x6c4] ss:$8 sps:$4 sm:$0xff]  }
  0x82   :  { %1842 = vmatmul.mubr.bf16.vlgmr.msra.gmra.mrb[0].mxu1 %v2444_v27  ;;  %v3074_v27 = vld [vmem:[%s4204_s1 + $0x6d4] ss:$8 sps:$4 sm:$0xff]  }
  0x83   :  { %2054 = vmatmul.mubr.bf16.vlgmr.msra.gmra.mrb[0].mxu0 %v2452_v28  ;;  %1863 = vmatpush1.bf16.msra.mxu1 %v2991_v24  ;;  %v3063_v24 = vld [vmem:[%s4204_s1 + $0x2c0] ss:$8 sps:$4 sm:$0xff]   ;;  %v3069_v28 = vld [vmem:[%s4204_s1 + $0x2d0] ss:$8 sps:$4 sm:$0xff]  }
  0x84   :  { %2075 = vmatpush1.bf16.msra.mxu0 %v2994_v25  ;;  %1864 = vmatprep.subr.bf16.mxu1 %v2999_v30  ;;  %v3066_v25 = vld [vmem:[%s4204_s1 + $0x6c0] ss:$8 sps:$4 sm:$0xff]   ;;  %v3077_v30 = vld [vmem:[%s4204_s1 + $0x2e4] ss:$8 sps:$4 sm:$0xff]  }
  0x85   :  { %2076 = vmatprep.subr.bf16.mxu0 %v3002_v31  ;;  %1851 = vmatprep.mubr.bf16.mxu1 %v2461_v34  ;;  %v3080_v31 = vld [vmem:[%s4204_s1 + $0x6e4] ss:$8 sps:$4 sm:$0xff]   ;;  %v3083_v34 = vld [vmem:[%s4204_s1 + $0x2f4] ss:$8 sps:$4 sm:$0xff]  }
  0x86   :  { %2063 = vmatprep.mubr.bf16.mxu0 %v2469_v35  ;;  %v3086_v35 = vld [vmem:[%s4204_s1 + $0x6f4] ss:$8 sps:$4 sm:$0xff]  }
  0x87   :  { %1865 = vmatpush1.bf16.msra.mxu1 %v2997_v36  ;;  %v3081_v36 = vld [vmem:[%s4204_s1 + $0x2f0] ss:$8 sps:$4 sm:$0xff]  }
  0x88   :  { %2077 = vmatpush1.bf16.msra.mxu0 %v3000_v37  ;;  %1866 = vmatprep.subr.bf16.mxu1 %v3005_v38  ;;  %v3084_v37 = vld [vmem:[%s4204_s1 + $0x6f0] ss:$8 sps:$4 sm:$0xff]   ;;  %v3089_v38 = vld [vmem:[%s4204_s1 + $0x304] ss:$8 sps:$4 sm:$0xff]  }
  0x89   :  { %2078 = vmatprep.subr.bf16.mxu0 %v3008_v39  ;;  %v3092_v39 = vld [vmem:[%s4204_s1 + $0x704] ss:$8 sps:$4 sm:$0xff]  }
  0x8a   :  { %1852 = vmatmul.mubr.bf16.gmra.mrb[4].mxu1 %v2460_v43  ;;  %v2454_v43 = vcombine.low %v3730_v46, %v3735_v47  ;;  %v3095_v46 = vld [vmem:[%s4204_s1 + $0x314] ss:$8 sps:$4 sm:$0xff]  }
  0x8b   :  { %2064 = vmatmul.mubr.bf16.gmra.mrb[4].mxu0 %v2468_v44  ;;  %1867 = vmatpush1.bf16.msra.mxu1 %v3003_v40  ;;  %v46_v40 = vld [vmem:[%s4205_s0 + $0x90] sm:$0xff] }
  0x8c   :  { %2079 = vmatpush1.bf16.msra.mxu0 %v3006_v41  ;;  %1868 = vmatprep.subr.bf16.mxu1 %v3011_v48  ;;  %v2446_v41 = vcombine.low %v3720_v42, %v3725_v45  ;;  %v54_v44 = vld [vmem:[%s4205_s0 + $0xd0] sm:$0xff]  ;;  %v3087_v42 = vld [vmem:[%s4204_s1 + $0x300] ss:$8 sps:$4 sm:$0xff]  }
  0x8d   :  { %2080 = vmatprep.subr.bf16.mxu0 %v3014_v49  ;;  %1894 = vmatprep.mubr.bf16.mxu1 %v2447_v50  ;;  %v50_v48 = vld [vmem:[%s4205_s0 + $0xb0] sm:$0xff]  ;;  %v3090_v45 = vld [vmem:[%s4204_s1 + $0x700] ss:$8 sps:$4 sm:$0xff]   ;;  %v2463_v50 = vcombine.high %v46_v40, %v54_v44 }
  0x8e   :  { %2106 = vmatprep.mubr.bf16.mxu0 %v2455_v51  ;;  %v58_v49 = vld [vmem:[%s4205_s0 + $0xf0] sm:$0xff] }
  0x8f   :  { %1869 = vmatpush1.bf16.msra.mxu1 %v3009_v52  ;;  %v3098_v47 = vld [vmem:[%s4204_s1 + $0x714] ss:$8 sps:$4 sm:$0xff]   ;;  %v2471_v51 = vcombine.high %v50_v48, %v58_v49  ;;  %v3093_v52 = vld [vmem:[%s4204_s1 + $0x310] ss:$8 sps:$4 sm:$0xff]  }
  0x90   :  { %2081 = vmatpush1.bf16.msra.mxu0 %v3012_v53  ;;  %1870 = vmatprep.subr.bf16.mxu1 %v3017_v54  ;;  %v3096_v53 = vld [vmem:[%s4204_s1 + $0x710] ss:$8 sps:$4 sm:$0xff]   ;;  %v3101_v54 = vld [vmem:[%s4204_s1 + $0x324] ss:$8 sps:$4 sm:$0xff]  }
  0x91   :  { %2082 = vmatprep.subr.bf16.mxu0 %v3020_v55  ;;  %v3104_v55 = vld [vmem:[%s4204_s1 + $0x724] ss:$8 sps:$4 sm:$0xff]  }
  0x93   :  { %1871 = vmatpush1.bf16.msra.mxu1 %v3015_v56  ;;  %v3946_v56 = vld [vmem:[%s4205_s0 + $0x18] sm:$0xff] }
  0x94   :  { %2083 = vmatpush1.bf16.msra.mxu0 %v3018_v57  ;;  %1872 = vmatprep.subr.bf16.mxu1 %v3023_v58  ;;  %v2462_v57 = vcombine.low %v46_v40, %v54_v44  ;;  %v2470_v58 = vcombine.low %v50_v48, %v58_v49  ;;  %v3159_v40 = vld [vmem:[%s4204_s1 + $0x3c0] ss:$8 sps:$4 sm:$0xff]   ;;  %v3170_v44 = vld [vmem:[%s4204_s1 + $0x7d4] ss:$8 sps:$4 sm:$0xff]   ;;  %v3165_v48 = vld [vmem:[%s4204_s1 + $0x3d0] ss:$8 sps:$4 sm:$0xff]  }
  0x95   :  { %2084 = vmatprep.subr.bf16.mxu0 %v3026_v59  ;;  %v3951_v59 = vld [vmem:[%s4205_s0 + $0x58] sm:$0xff] }
  0x96   :  { %v3168_v49 = vld [vmem:[%s4204_s1 + $0x7d0] ss:$8 sps:$4 sm:$0xff]  }
  0x97   :  { %1873 = vmatpush1.bf16.msra.mxu1 %v3021_v60  ;;  %v3956_v60 = vld [vmem:[%s4205_s0 + $0x38] sm:$0xff] }
  0x98   :  { %2085 = vmatpush1.bf16.msra.mxu0 %v3024_v61  ;;  %1874 = vmatprep.subr.bf16.mxu1 %v3029_v62  ;;  %v3961_v61 = vld [vmem:[%s4205_s0 + $0x78] sm:$0xff]  ;;  %v3099_v62 = vld [vmem:[%s4204_s1 + $0x320] ss:$8 sps:$4 sm:$0xff]  }
  0x99   :  { %2086 = vmatprep.subr.bf16.mxu0 %v3032_v63  ;;  %v3102_v63 = vld [vmem:[%s4204_s1 + $0x720] ss:$8 sps:$4 sm:$0xff]  }
  0x9b   :  { %1875 = vmatpush1.bf16.msra.mxu1 %v3027_v0  ;;  %v3107_v0 = vld [vmem:[%s4204_s1 + $0x334] ss:$8 sps:$4 sm:$0xff]  }
  0x9c   :  { %2087 = vmatpush1.bf16.msra.mxu0 %v3030_v1  ;;  %1876 = vmatprep.subr.bf16.mxu1 %v3035_v2  ;;  %v3110_v1 = vld [vmem:[%s4204_s1 + $0x734] ss:$8 sps:$4 sm:$0xff]   ;;  %v2449_v2 = vcombine.high %v3946_v56, %v3951_v59 }
  0x9d   :  { %2088 = vmatprep.subr.bf16.mxu0 %v3038_v3  ;;  %v2457_v3 = vcombine.high %v3956_v60, %v3961_v61 }
  0x9f   :  { %1877 = vmatpush1.bf16.msra.mxu1 %v3033_v4  ;;  %v3105_v4 = vld [vmem:[%s4204_s1 + $0x330] ss:$8 sps:$4 sm:$0xff]  }
  0xa0   :  { %2089 = vmatpush1.bf16.msra.mxu0 %v3036_v5  ;;  %1878 = vmatprep.subr.bf16.mxu1 %v3041_v6  ;;  %v3108_v5 = vld [vmem:[%s4204_s1 + $0x730] ss:$8 sps:$4 sm:$0xff]   ;;  %v3113_v6 = vld [vmem:[%s4204_s1 + $0x344] ss:$8 sps:$4 sm:$0xff]  }
  0xa1   :  { %2090 = vmatprep.subr.bf16.mxu0 %v3044_v7  ;;  %v3116_v7 = vld [vmem:[%s4204_s1 + $0x744] ss:$8 sps:$4 sm:$0xff]  }
  0xa3   :  { %1879 = vmatpush1.bf16.msra.mxu1 %v3039_v8  ;;  %v3111_v8 = vld [vmem:[%s4204_s1 + $0x340] ss:$8 sps:$4 sm:$0xff]  }
  0xa4   :  { %2091 = vmatpush1.bf16.msra.mxu0 %v3042_v9  ;;  %1880 = vmatprep.subr.bf16.mxu1 %v3047_v10  ;;  %v3114_v9 = vld [vmem:[%s4204_s1 + $0x740] ss:$8 sps:$4 sm:$0xff]   ;;  %v3119_v10 = vld [vmem:[%s4204_s1 + $0x354] ss:$8 sps:$4 sm:$0xff]  }
  0xa5   :  { %2092 = vmatprep.subr.bf16.mxu0 %v3050_v11  ;;  %v3122_v11 = vld [vmem:[%s4204_s1 + $0x754] ss:$8 sps:$4 sm:$0xff]  }
  0xa7   :  { %1881 = vmatpush1.bf16.msra.mxu1 %v3045_v12  ;;  %v3117_v12 = vld [vmem:[%s4204_s1 + $0x350] ss:$8 sps:$4 sm:$0xff]  }
  0xa8   :  { %2093 = vmatpush1.bf16.msra.mxu0 %v3048_v13  ;;  %1882 = vmatprep.subr.bf16.mxu1 %v3053_v14  ;;  %v3120_v13 = vld [vmem:[%s4204_s1 + $0x750] ss:$8 sps:$4 sm:$0xff]   ;;  %v3125_v14 = vld [vmem:[%s4204_s1 + $0x364] ss:$8 sps:$4 sm:$0xff]  }
  0xa9   :  { %2094 = vmatprep.subr.bf16.mxu0 %v3056_v15  ;;  %v3128_v15 = vld [vmem:[%s4204_s1 + $0x764] ss:$8 sps:$4 sm:$0xff]  }
  0xab   :  { %1883 = vmatpush1.bf16.msra.mxu1 %v3051_v16  ;;  %v3123_v16 = vld [vmem:[%s4204_s1 + $0x360] ss:$8 sps:$4 sm:$0xff]  }
  0xac   :  { %2095 = vmatpush1.bf16.msra.mxu0 %v3054_v17  ;;  %1884 = vmatprep.subr.bf16.mxu1 %v3059_v18  ;;  %v3126_v17 = vld [vmem:[%s4204_s1 + $0x760] ss:$8 sps:$4 sm:$0xff]   ;;  %v3131_v18 = vld [vmem:[%s4204_s1 + $0x374] ss:$8 sps:$4 sm:$0xff]  }
  0xad   :  { %2096 = vmatprep.subr.bf16.mxu0 %v3062_v19  ;;  %v3134_v19 = vld [vmem:[%s4204_s1 + $0x774] ss:$8 sps:$4 sm:$0xff]  }
  0xaf   :  { %1885 = vmatpush1.bf16.msra.mxu1 %v3057_v20  ;;  %v3129_v20 = vld [vmem:[%s4204_s1 + $0x370] ss:$8 sps:$4 sm:$0xff]  }
  0xb0   :  { %2097 = vmatpush1.bf16.msra.mxu0 %v3060_v21  ;;  %1886 = vmatprep.subr.bf16.mxu1 %v3065_v22  ;;  %v3132_v21 = vld [vmem:[%s4204_s1 + $0x770] ss:$8 sps:$4 sm:$0xff]   ;;  %v3137_v22 = vld [vmem:[%s4204_s1 + $0x384] ss:$8 sps:$4 sm:$0xff]  }
  0xb1   :  { %2098 = vmatprep.subr.bf16.mxu0 %v3068_v23  ;;  %v3140_v23 = vld [vmem:[%s4204_s1 + $0x784] ss:$8 sps:$4 sm:$0xff]  }
  0xb3   :  { %1887 = vmatpush1.bf16.msra.mxu1 %v3063_v24  ;;  %v3135_v24 = vld [vmem:[%s4204_s1 + $0x380] ss:$8 sps:$4 sm:$0xff]  }
  0xb4   :  { %2099 = vmatpush1.bf16.msra.mxu0 %v3066_v25  ;;  %1888 = vmatprep.subr.bf16.mxu1 %v3071_v26  ;;  %v3138_v25 = vld [vmem:[%s4204_s1 + $0x780] ss:$8 sps:$4 sm:$0xff]   ;;  %v3143_v26 = vld [vmem:[%s4204_s1 + $0x394] ss:$8 sps:$4 sm:$0xff]  }
  0xb5   :  { %2100 = vmatprep.subr.bf16.mxu0 %v3074_v27  ;;  %v3146_v27 = vld [vmem:[%s4204_s1 + $0x794] ss:$8 sps:$4 sm:$0xff]  }
  0xb7   :  { %1889 = vmatpush1.bf16.msra.mxu1 %v3069_v28  ;;  %v3141_v28 = vld [vmem:[%s4204_s1 + $0x390] ss:$8 sps:$4 sm:$0xff]  }
  0xb8   :  { %2101 = vmatpush1.bf16.msra.mxu0 %v3072_v29  ;;  %1890 = vmatprep.subr.bf16.mxu1 %v3077_v30  ;;  %v3144_v29 = vld [vmem:[%s4204_s1 + $0x790] ss:$8 sps:$4 sm:$0xff]   ;;  %v3149_v30 = vld [vmem:[%s4204_s1 + $0x3a4] ss:$8 sps:$4 sm:$0xff]  }
  0xb9   :  { %2102 = vmatprep.subr.bf16.mxu0 %v3080_v31  ;;  %v3152_v31 = vld [vmem:[%s4204_s1 + $0x7a4] ss:$8 sps:$4 sm:$0xff]  }
  0xbb   :  { %1891 = vmatpush1.bf16.msra.mxu1 %v3075_v32  ;;  %v3147_v32 = vld [vmem:[%s4204_s1 + $0x3a0] ss:$8 sps:$4 sm:$0xff]  }
  0xbc   :  { %2103 = vmatpush1.bf16.msra.mxu0 %v3078_v33  ;;  %1892 = vmatprep.subr.bf16.mxu1 %v3083_v34  ;;  %v3150_v33 = vld [vmem:[%s4204_s1 + $0x7a0] ss:$8 sps:$4 sm:$0xff]   ;;  %v3155_v34 = vld [vmem:[%s4204_s1 + $0x3b4] ss:$8 sps:$4 sm:$0xff]  }
  0xbd   :  { %2104 = vmatprep.subr.bf16.mxu0 %v3086_v35  ;;  %v3158_v35 = vld [vmem:[%s4204_s1 + $0x7b4] ss:$8 sps:$4 sm:$0xff]  }
  0xbf   :  { %1893 = vmatpush1.bf16.msra.mxu1 %v3081_v36  ;;  %v3153_v36 = vld [vmem:[%s4204_s1 + $0x3b0] ss:$8 sps:$4 sm:$0xff]  }
  0xc0   :  { %2105 = vmatpush1.bf16.msra.mxu0 %v3084_v37  ;;  %1915 = vmatprep.subr.bf16.mxu1 %v3089_v38  ;;  %v3156_v37 = vld [vmem:[%s4204_s1 + $0x7b0] ss:$8 sps:$4 sm:$0xff]   ;;  %v3161_v38 = vld [vmem:[%s4204_s1 + $0x3c4] ss:$8 sps:$4 sm:$0xff]  }
  0xc1   :  { %2127 = vmatprep.subr.bf16.mxu0 %v3092_v39  ;;  %v3164_v39 = vld [vmem:[%s4204_s1 + $0x7c4] ss:$8 sps:$4 sm:$0xff]  }
  0xc2   :  { %1895 = vmatmul.mubr.bf16.vlgmr.msra.gmra.mrb[0].mxu1 %v2446_v41  ;;  %v3162_v41 = vld [vmem:[%s4204_s1 + $0x7c0] ss:$8 sps:$4 sm:$0xff]  }
  0xc3   :  { %2107 = vmatmul.mubr.bf16.vlgmr.msra.gmra.mrb[0].mxu0 %v2454_v43  ;;  %1916 = vmatpush1.bf16.msra.mxu1 %v3087_v42  ;;  %v3167_v43 = vld [vmem:[%s4204_s1 + $0x3d4] ss:$8 sps:$4 sm:$0xff]   ;;  %v3173_v42 = vld [vmem:[%s4204_s1 + $0x3e4] ss:$8 sps:$4 sm:$0xff]  }
  0xc4   :  { %2128 = vmatpush1.bf16.msra.mxu0 %v3090_v45  ;;  %1917 = vmatprep.subr.bf16.mxu1 %v3095_v46  ;;  %v3176_v45 = vld [vmem:[%s4204_s1 + $0x7e4] ss:$8 sps:$4 sm:$0xff]   ;;  %v3171_v46 = vld [vmem:[%s4204_s1 + $0x3e0] ss:$8 sps:$4 sm:$0xff]  }
  0xc5   :  { %2129 = vmatprep.subr.bf16.mxu0 %v3098_v47  ;;  %1904 = vmatprep.mubr.bf16.mxu1 %v2463_v50  ;;  %v3174_v47 = vld [vmem:[%s4204_s1 + $0x7e0] ss:$8 sps:$4 sm:$0xff]   ;;  %v3179_v50 = vld [vmem:[%s4204_s1 + $0x3f4] ss:$8 sps:$4 sm:$0xff]  }
  0xc6   :  { %2116 = vmatprep.mubr.bf16.mxu0 %v2471_v51  ;;  %v3182_v51 = vld [vmem:[%s4204_s1 + $0x7f4] ss:$8 sps:$4 sm:$0xff]  }
  0xc7   :  { %1918 = vmatpush1.bf16.msra.mxu1 %v3093_v52  ;;  %v3177_v52 = vld [vmem:[%s4204_s1 + $0x3f0] ss:$8 sps:$4 sm:$0xff]  }
  0xc8   :  { %2130 = vmatpush1.bf16.msra.mxu0 %v3096_v53  ;;  %1919 = vmatprep.subr.bf16.mxu1 %v3101_v54  ;;  %v3180_v53 = vld [vmem:[%s4204_s1 + $0x7f0] ss:$8 sps:$4 sm:$0xff]  }
  0xc9   :  { %2131 = vmatprep.subr.bf16.mxu0 %v3104_v55  ;;  %v47_v54 = vld [vmem:[%s4205_s0 + $0x98] sm:$0xff] }
  0xca   :  { %1905 = vmatmul.mubr.bf16.gmra.mrb[4].mxu1 %v2462_v57  ;;  %v55_v55 = vld [vmem:[%s4205_s0 + $0xd8] sm:$0xff] }
  0xcb   :  { %2117 = vmatmul.mubr.bf16.gmra.mrb[4].mxu0 %v2470_v58  ;;  %1920 = vmatpush1.bf16.msra.mxu1 %v3099_v62  ;;  %v51_v57 = vld [vmem:[%s4205_s0 + $0xb8] sm:$0xff]  ;;  %v2448_v62 = vcombine.low %v3946_v56, %v3951_v59 }
  0xcc   :  { %2132 = vmatpush1.bf16.msra.mxu0 %v3102_v63  ;;  %1921 = vmatprep.subr.bf16.mxu1 %v3107_v0  ;;  %v59_v58 = vld [vmem:[%s4205_s0 + $0xf8] sm:$0xff]  ;;  %v2456_v63 = vcombine.low %v3956_v60, %v3961_v61  ;;  %v2465_v0 = vcombine.high %v47_v54, %v55_v55 }
  0xcd   :  { %2133 = vmatprep.subr.bf16.mxu0 %v3110_v1  ;;  %1947 = vmatprep.mubr.bf16.mxu1 %v2449_v2  ;;  %v2473_v1 = vcombine.high %v51_v57, %v59_v58  ;;  %v2464_v2 = vcombine.low %v47_v54, %v55_v55 }
  0xce   :  { %2159 = vmatprep.mubr.bf16.mxu0 %v2457_v3  ;;  %v2472_v3 = vcombine.low %v51_v57, %v59_v58 }
  0xcf   :  { %1922 = vmatpush1.bf16.msra.mxu1 %v3105_v4  ;;  %v3191_v4 = vmov 0.0  }
  0xd0   :  { %2134 = vmatpush1.bf16.msra.mxu0 %v3108_v5  ;;  %1923 = vmatprep.subr.bf16.mxu1 %v3113_v6 }
  0xd1   :  { %2135 = vmatprep.subr.bf16.mxu0 %v3116_v7 }
  0xd3   :  { %1924 = vmatpush1.bf16.msra.mxu1 %v3111_v8 }
  0xd4   :  { %2136 = vmatpush1.bf16.msra.mxu0 %v3114_v9  ;;  %1925 = vmatprep.subr.bf16.mxu1 %v3119_v10 }
  0xd5   :  { %2137 = vmatprep.subr.bf16.mxu0 %v3122_v11 }
  0xd7   :  { %1926 = vmatpush1.bf16.msra.mxu1 %v3117_v12 }
  0xd8   :  { %2138 = vmatpush1.bf16.msra.mxu0 %v3120_v13  ;;  %1927 = vmatprep.subr.bf16.mxu1 %v3125_v14 }
  0xd9   :  { %2139 = vmatprep.subr.bf16.mxu0 %v3128_v15 }
  0xdb   :  { %1928 = vmatpush1.bf16.msra.mxu1 %v3123_v16 }
  0xdc   :  { %2140 = vmatpush1.bf16.msra.mxu0 %v3126_v17  ;;  %1929 = vmatprep.subr.bf16.mxu1 %v3131_v18 }
  0xdd   :  { %2141 = vmatprep.subr.bf16.mxu0 %v3134_v19 }
  0xdf   :  { %1930 = vmatpush1.bf16.msra.mxu1 %v3129_v20 }
  0xe0   :  { %2142 = vmatpush1.bf16.msra.mxu0 %v3132_v21  ;;  %1931 = vmatprep.subr.bf16.mxu1 %v3137_v22 }
  0xe1   :  { %2143 = vmatprep.subr.bf16.mxu0 %v3140_v23 }
  0xe3   :  { %1932 = vmatpush1.bf16.msra.mxu1 %v3135_v24 }
  0xe4   :  { %2144 = vmatpush1.bf16.msra.mxu0 %v3138_v25  ;;  %1933 = vmatprep.subr.bf16.mxu1 %v3143_v26 }
  0xe5   :  { %2145 = vmatprep.subr.bf16.mxu0 %v3146_v27 }
  0xe7   :  { %1934 = vmatpush1.bf16.msra.mxu1 %v3141_v28 }
  0xe8   :  { %2146 = vmatpush1.bf16.msra.mxu0 %v3144_v29  ;;  %1935 = vmatprep.subr.bf16.mxu1 %v3149_v30 }
  0xe9   :  { %2147 = vmatprep.subr.bf16.mxu0 %v3152_v31 }
  0xeb   :  { %1936 = vmatpush1.bf16.msra.mxu1 %v3147_v32 }
  0xec   :  { %2148 = vmatpush1.bf16.msra.mxu0 %v3150_v33  ;;  %1937 = vmatprep.subr.bf16.mxu1 %v3155_v34 }
  0xed   :  { %2149 = vmatprep.subr.bf16.mxu0 %v3158_v35 }
  0xef   :  { %1938 = vmatpush1.bf16.msra.mxu1 %v3153_v36 }
  0xf0   :  { %2150 = vmatpush1.bf16.msra.mxu0 %v3156_v37  ;;  %1939 = vmatprep.subr.bf16.mxu1 %v3161_v38 }
  0xf1   :  { %2151 = vmatprep.subr.bf16.mxu0 %v3164_v39 }
  0xf3   :  { %1940 = vmatpush1.bf16.msra.mxu1 %v3159_v40 }
  0xf4   :  { %2152 = vmatpush1.bf16.msra.mxu0 %v3162_v41  ;;  %1941 = vmatprep.subr.bf16.mxu1 %v3167_v43 }
  0xf5   :  { %2153 = vmatprep.subr.bf16.mxu0 %v3170_v44 }
  0xf7   :  { %1942 = vmatpush1.bf16.msra.mxu1 %v3165_v48 }
  0xf8   :  { %2154 = vmatpush1.bf16.msra.mxu0 %v3168_v49  ;;  %1943 = vmatprep.subr.bf16.mxu1 %v3173_v42 }
  0xf9   :  { %2155 = vmatprep.subr.bf16.mxu0 %v3176_v45 }
  0xfb   :  { %1944 = vmatpush1.bf16.msra.mxu1 %v3171_v46 }
  0xfc   :  { %2156 = vmatpush1.bf16.msra.mxu0 %v3174_v47  ;;  %1945 = vmatprep.subr.bf16.mxu1 %v3179_v50 }
  0xfd   :  { %2157 = vmatprep.subr.bf16.mxu0 %v3182_v51 }
  0xff   :  { %1946 = vmatpush1.bf16.msra.mxu1 %v3177_v52 }
 0x100   :  { %2158 = vmatpush1.bf16.msra.mxu0 %v3180_v53 }
 0x102   :  { %1948 = vmatmul.mubr.bf16.vlgmr.msra.gmra.mrb[0].mxu1 %v2448_v62 }
 0x103   :  { %2160 = vmatmul.mubr.bf16.vlgmr.msra.gmra.mrb[0].mxu0 %v2456_v63  ;;  %1957 = vmatprep.mubr.bf16.mxu1 %v2465_v0 }
 0x104   :  { %2169 = vmatprep.mubr.bf16.mxu0 %v2473_v1 }
 0x10a   :  { %1958 = vmatmul.mubr.bf16.gmra.mrb[4].mxu1 %v2464_v2 }
 0x10b   :  { %2170 = vmatmul.mubr.bf16.gmra.mrb[4].mxu0 %v2472_v3  ;;  %2409 = vmatprep.mubr.f32.mxu1 %v3191_v4 }
 0x1d5   :  { %v1949_v5 = vpop.f32.mrb[0].mxu1 }
 0x1d6   :  { %v2161_v6 = vpop.f32.mrb[0].mxu0  ;;  %v1951_v59 = vpop.f32.mrb[1].mxu1 }
 0x1d7   :  { %v2741_v56 = vadd.f32 %v2161_v6, %v1949_v5  ;;  %v2163_v7 = vpop.f32.mrb[1].mxu0  ;;  %v1953_v61 = vpop.f32.mrb[2].mxu1 }
 0x1d8   :  { %v2742_v60 = vadd.f32 %v2163_v7, %v1951_v59  ;;  %v2165_v8 = vpop.f32.mrb[2].mxu0  ;;  %v1955_v10 = vpop.f32.mrb[3].mxu1 }
 0x1d9   :  { %v2743_v9 = vadd.f32 %v2165_v8, %v1953_v61  ;;  %v2167_v11 = vpop.f32.mrb[3].mxu0 }
 0x1da   :  { %v2744_v12 = vadd.f32 %v2167_v11, %v1955_v10 }
 0x1db   :  { %v2182_v13 = vadd.f32 %v2743_v9, %v2741_v56 }
 0x1dc   :  { %v2191_v14 = vadd.f32 %v2744_v12, %v2742_v60 }
 0x1dd   :  { %v1959_v15 = vpop.f32.mrb[4].mxu1 }
 0x1de   :  { %v2171_v16 = vpop.f32.mrb[4].mxu0  ;;  %v1961_v18 = vpop.f32.mrb[5].mxu1 }
 0x1df   :  { %v2745_v17 = vadd.f32 %v2171_v16, %v1959_v15  ;;  %v2173_v19 = vpop.f32.mrb[5].mxu0  ;;  %v1963_v21 = vpop.f32.mrb[6].mxu1 }
 0x1e0   :  { %v2746_v20 = vadd.f32 %v2173_v19, %v1961_v18  ;;  %v2175_v22 = vpop.f32.mrb[6].mxu0  ;;  %v1965_v25 = vpop.f32.mrb[7].mxu1  ;;  %v3192_v19 = vmov 1966171168  }
 0x1e1   :  { %v2183_v23 = vadd.f32 %v2745_v17, %v2182_v13  ;;  %v2747_v24 = vadd.f32 %v2175_v22, %v1963_v21  ;;  %v2177_v26 = vpop.f32.mrb[7].mxu0  ;;  %v2249_v21 = vlaneseq }
 0x1e2   :  { %v2192_v27 = vadd.f32 %v2746_v20, %v2191_v14  ;;  %v2748_v28 = vadd.f32 %v2177_v26, %v1965_v25 }
 0x1e3   :  { %v2184_v29 = vadd.f32 %v2747_v24, %v2183_v23  ;;  %v2250_v23 = vshrl.u32 %v2249_v21, 7 }
 0x1e4   :  { %v2193_v30 = vadd.f32 %v2748_v28, %v2192_v27 }
 0x1e5   :  { %v2185_v31 = vrot.slane %v2184_v29, 4 }
 0x1e6   :  { %v2194_v32 = vrot.slane %v2193_v30, 4 }
 0x1e7   :  { %v2186_v33 = vadd.f32 %v2185_v31, %v2184_v29  ;;  %v2180_v29 = vld [vmem:[%s4206_s2] sm:$0x3]  ;;  %v2265_v31 = vsub.s32 0, %v2250_v23 }
 0x1e8   :  { %v2195_v34 = vadd.f32 %v2194_v32, %v2193_v30  ;;  %v2269_v32 = vsub.s32 1, %v2250_v23 }
 0x1e9   :  { %v2187_v35 = vrot.slane %v2186_v33, 2 }
 0x1ea   :  { %v2196_v36 = vrot.slane %v2195_v34, 2 }
 0x1eb   :  { %v2188_v37 = vadd.f32 %v2187_v35, %v2186_v33  ;;  %v2181_v33 = vld [vmem:[%s4207_s3] sm:$0x3] }
 0x1ec   :  { %v2197_v38 = vadd.f32 %v2196_v36, %v2195_v34 }
 0x1ed   :  { %v2189_v39 = vrot.slane %v2188_v37, 1 }
 0x1ee   :  { %v2198_v40 = vrot.slane %v2197_v38, 1 }
 0x1ef   :  { %v2190_v41 = vadd.f32 %v2189_v39, %v2188_v37  ;;  %v2285_v37 = vrot.slane %v2181_v33, %v2265_v31 }
 0x1f0   :  { %v2199_v43 = vadd.f32 %v2198_v40, %v2197_v38  ;;  %v2289_v38 = vrot.slane %v2181_v33, %v2269_v32 }
 0x1f1   :  { %v2201_v44 = vmul.f32 0.03125, %v2190_v41 }
 0x1f2   :  { %v2202_v48 = vmul.f32 0.03125, %v2199_v43 }
 0x1f3   :  { %v4145_v49 = vsub.f32 %v2741_v56, %v2201_v44  ;;  %v4147_v42 = vsub.f32 %v2743_v9, %v2201_v44  ;;  %v4149_v45 = vsub.f32 %v2745_v17, %v2201_v44  ;;  %v4151_v46 = vsub.f32 %v2747_v24, %v2201_v44 }
 0x1f4   :  { %v2204_v47 = vsub.f32 %v2742_v60, %v2202_v48  ;;  %v2206_v50 = vsub.f32 %v2744_v12, %v2202_v48  ;;  %v2208_v51 = vsub.f32 %v2746_v20, %v2202_v48  ;;  %v2210_v52 = vsub.f32 %v2748_v28, %v2202_v48 }
 0x1f5   :  { %v2211_v53 = vmul.f32 %v4145_v49, %v4145_v49  ;;  %v2213_v54 = vmul.f32 %v4147_v42, %v4147_v42  ;;  %v2215_v58 = vmul.f32 %v4149_v45, %v4149_v45  ;;  %v2217_v1 = vmul.f32 %v4151_v46, %v4151_v46 }
 0x1f6   :  { %v2212_v55 = vmul.f32 %v2204_v47, %v2204_v47  ;;  %v2214_v57 = vmul.f32 %v2206_v50, %v2206_v50  ;;  %v2216_v63 = vmul.f32 %v2208_v51, %v2208_v51  ;;  %v2218_v3 = vmul.f32 %v2210_v52, %v2210_v52 }
 0x1f7   :  { %v2219_v62 = vadd.f32 %v2213_v54, %v2211_v53  ;;  %v2247_v20 = vunpack.c.l.s4 %v3192_v19 }
 0x1f8   :  { %v2228_v0 = vadd.f32 %v2214_v57, %v2212_v55 }
 0x1f9   :  { %v2220_v2 = vadd.f32 %v2219_v62, %v2215_v58  ;;  %v2248_v22 = vunpack.c.0.s8 %v2247_v20  ;;  %v2330_v20 = vld [vmem:[%s4208_s4 + $0x30] sm:$0xff] }
 0x1fa   :  { %v2229_v4 = vadd.f32 %v2228_v0, %v2216_v63  ;;  %v2325_v63 = vld [vmem:[%s4208_s4 + $0x8] sm:$0xff] }
 0x1fb   :  { %v2221_v5 = vadd.f32 %v2220_v2, %v2217_v1  ;;  %v2251_v25 = vsub.s32 %v2248_v22, %v2250_v23 }
 0x1fc   :  { %v2230_v6 = vadd.f32 %v2229_v4, %v2218_v3  ;;  %v2326_v4 = vld [vmem:[%s4208_s4 + $0x10] sm:$0xff] }
 0x1fd   :  { %v2222_v56 = vrot.slane %v2221_v5, 4 }
 0x1fe   :  { %v2231_v59 = vrot.slane %v2230_v6, 4 }
 0x1ff   :  { %v2223_v7 = vadd.f32 %v2222_v56, %v2221_v5  ;;  %v2331_v5 = vld [vmem:[%s4208_s4 + $0x38] sm:$0xff] }
 0x200   :  { %v2232_v60 = vadd.f32 %v2231_v59, %v2230_v6 }
 0x201   :  { %v2224_v61 = vrot.slane %v2223_v7, 2 }
 0x202   :  { %v2233_v8 = vrot.slane %v2232_v60, 2 }
 0x203   :  { %v2225_v9 = vadd.f32 %v2224_v61, %v2223_v7 }
 0x204   :  { %v2234_v10 = vadd.f32 %v2233_v8, %v2232_v60  ;;  %v2329_v60 = vld [vmem:[%s4208_s4 + $0x28] sm:$0xff] }
 0x205   :  { %v2226_v11 = vrot.slane %v2225_v9, 1 }
 0x206   :  { %v2235_v12 = vrot.slane %v2234_v10, 1 }
 0x207   :  { %v2227_v13 = vadd.f32 %v2226_v11, %v2225_v9 }
 0x208   :  { %v2236_v14 = vadd.f32 %v2235_v12, %v2234_v10 }
 0x209   :  { %v2237_v15 = vmul.f32 0.03125, %v2227_v13 }
 0x20a   :  { %v2238_v16 = vmul.f32 0.03125, %v2236_v14 }
 0x20b   :  { %v2239_v17 = vadd.f32 1e-05, %v2237_v15 }
 0x20c   :  { %v2240_v18 = vadd.f32 1e-05, %v2238_v16 }
 0x20d   :  { %3183 = vrsqrt.f32 %v2239_v17  ;;  %v2328_v17 = vld [vmem:[%s4208_s4 + $0x20] sm:$0xff] }
 0x20e   :  { %3185 = vrsqrt.f32 %v2240_v18 }
 0x217   :  { %v3184_v24 = vpop.eup %3183 }
 0x218   :  { %v3186_v26 = vpop.eup %3185 }
 0x219   :  { %v2245_v27 = vcombine.low %v3184_v24, %v3186_v26 }
 0x21b   :  { %v2252_v28 = vrot.slane %v2245_v27, %v2251_v25  ;;  %v2340_v27 = vld [vmem:[%s4209_s5] sm:$0x3] }
 0x21d   :  { %v2259_v30 = vrot.slane %v2252_v28, %v2251_v25  ;;  %v12_v28 = vstv %s4210_s6 }
 0x21e   :  { %13 = vst [vmem:[#allocation2] sm:$0x1] %v12_v28 }
 0x21f   :  { %v2261_v34 = vmul.f32 %v2259_v30, %v2180_v29 }
 0x221   :  { %v2266_v35 = vrot.slane %v2261_v34, %v2265_v31  ;;  %v2270_v36 = vrot.slane %v2261_v34, %v2269_v32 }
 0x223   :  { %v2280_v39 = vmul.f32 %v2270_v36, %v2210_v52  ;;  %v2274_v40 = vmul.f32 %v2270_v36, %v2204_v47  ;;  %v2276_v41 = vmul.f32 %v2270_v36, %v2206_v50  ;;  %v2273_v43 = vmul.f32 %v2266_v35, %v4145_v49  ;;  %v2327_v47 = vld [vmem:[%s4208_s4 + $0x18] sm:$0xff] }
 0x224   :  { %v2275_v44 = vmul.f32 %v2266_v35, %v4147_v42  ;;  %v2278_v48 = vmul.f32 %v2270_v36, %v2208_v51  ;;  %v2277_v53 = vmul.f32 %v2266_v35, %v4149_v45  ;;  %v2279_v54 = vmul.f32 %v2266_v35, %v4151_v46  ;;  %v2324_v42 = vld [vmem:[%s4208_s4] sm:$0xff] }
 0x225   :  { %v2299_v55 = vadd.f32 %v2289_v38, %v2280_v39  ;;  %v2293_v57 = vadd.f32 %v2289_v38, %v2274_v40  ;;  %v2295_v58 = vadd.f32 %v2289_v38, %v2276_v41  ;;  %v2292_v62 = vadd.f32 %v2285_v37, %v2273_v43  ;;  %v2731_v34 = vld [vmem:[#allocation2] ss:$0 sm:$0xff] }
 0x226   :  { %v2294_v49 = vadd.f32 %v2285_v37, %v2275_v44  ;;  %v2297_v45 = vadd.f32 %v2289_v38, %v2278_v48  ;;  %v2296_v50 = vadd.f32 %v2285_v37, %v2277_v53  ;;  %v2298_v46 = vadd.f32 %v2285_v37, %v2279_v54 }
 0x227   :  { %v2315_v51 = vmul.f32 0.2, %v2299_v55  ;;  %vm2301_vm0 = vcmp.gt.f32.partialorder %v2293_v57, 0.0  ;;  %vm2303_vm1 = vcmp.gt.f32.partialorder %v2295_v58, 0.0  ;;  %v2309_v52 = vmul.f32 0.2, %v2293_v57 }
 0x228   :  { %v2311_v0 = vmul.f32 0.2, %v2295_v58  ;;  %vm2300_vm2 = vcmp.gt.f32.partialorder %v2292_v62, 0.0  ;;  %vm2302_vm3 = vcmp.gt.f32.partialorder %v2294_v49, 0.0  ;;  %v2308_v1 = vmul.f32 0.2, %v2292_v62 }
 0x229   :  { %v2317_v2 = vsel %vm2301_vm0, %v2293_v57, %v2309_v52  ;;  %v2310_v3 = vmul.f32 0.2, %v2294_v49  ;;  %vm2305_vm4 = vcmp.gt.f32.partialorder %v2297_v45, 0.0  ;;  %vm2307_vm5 = vcmp.gt.f32.partialorder %v2299_v55, 0.0 }
 0x22a   :  { %v2319_v6 = vsel %vm2303_vm1, %v2295_v58, %v2311_v0  ;;  %v2333_v56 = vmul.f32 %v2325_v63, %v2317_v2  ;;  %v2316_v59 = vsel %vm2300_vm2, %v2292_v62, %v2308_v1  ;;  %v2313_v7 = vmul.f32 0.2, %v2297_v45 }
 0x22b   :  { %v2335_v61 = vmul.f32 %v2327_v47, %v2319_v6  ;;  %v2318_v8 = vsel %vm2302_vm3, %v2294_v49, %v2310_v3  ;;  %v2332_v9 = vmul.f32 %v2324_v42, %v2316_v59  ;;  %v2323_v10 = vsel %vm2307_vm5, %v2299_v55, %v2315_v51 }
 0x22c   :  { %v2334_v11 = vmul.f32 %v2326_v4, %v2318_v8  ;;  %v2321_v12 = vsel %vm2305_vm4, %v2297_v45, %v2313_v7  ;;  %v2339_v13 = vmul.f32 %v2331_v5, %v2323_v10  ;;  %vm2304_vm6 = vcmp.gt.f32.partialorder %v2296_v50, 0.0 }
 0x22d   :  { %v2733_v14 = vpack.c.bf16 %v2335_v61, %v2333_v56  ;;  %v2337_v15 = vmul.f32 %v2329_v60, %v2321_v12  ;;  %vm2306_vm7 = vcmp.gt.f32.partialorder %v2298_v46, 0.0  ;;  %v2312_v16 = vmul.f32 0.2, %v2296_v50 }
 0x22e   :  { %v2735_v18 = vpack.c.bf16 %v2334_v11, %v2332_v9  ;;  %v2314_v19 = vmul.f32 0.2, %v2298_v46 }
 0x22f   :  { %2734 = vmatprep.subr.bf16.mxu1 %v2733_v14  ;;  %v2737_v21 = vpack.c.bf16 %v2339_v13, %v2337_v15  ;;  %v2320_v22 = vsel %vm2304_vm6, %v2296_v50, %v2312_v16 }
 0x230   :  { %2736 = vmatpush1.bf16.msra.mxu1 %v2735_v18  ;;  %v2322_v23 = vsel %vm2306_vm7, %v2298_v46, %v2314_v19  ;;  %v2336_v24 = vmul.f32 %v2328_v17, %v2320_v22 }
 0x231   :  { %2738 = vmatprep.subr.bf16.mxu1 %v2737_v21  ;;  %v2338_v25 = vmul.f32 %v2330_v20, %v2322_v23 }
 0x233   :  { %v2739_v26 = vpack.c.bf16 %v2338_v25, %v2336_v24 }
 0x235   :  { %2740 = vmatpush1.bf16.msra.mxu1 %v2739_v26 }
 0x238   :  { %2730 = vmatmul.mubr.msk.f32.vlgmr.msra.gmra.mrb[8].mxu1 %vm2341_vm8, %v2340_v27 }
 0x30b   :  { %v2411_v29 = vpop.f32.mrb[8].mxu1 }
 0x30c   :  { %v2417_v30 = vsel %vm2416_vm9, %v2411_v29, 0.0  ;;  %v2413_v31 = vpop.f32.mrb[9].mxu1 }
 0x30d   :  { %v2418_v32 = vsel %vm2416_vm9, %v2413_v31, 0.0 }
 0x30e   :  { %v2419_v33 = vadd.f32 %v2418_v32, %v2417_v30 }
 0x310   :  { %2420 = vadd.xlane.f32.xlu0 %v2419_v33 }
 0x39d   :  { %v2421_v35 = vpop.xlane.xlu0 %2420 }
 0x39e   :  { %v2429_v36 = vadd.f32 %v2731_v34, %v2421_v35 }
 0x3a0   :  { %v2732_v37 = vmul.f32 -1.442695, %v2429_v36 }
 0x3a2   :  { %3187 = vpow2.f32 %v2732_v37 }
 0x3ac   :  { %v3188_v38 = vpop.eup %3187 }
 0x3ad   :  { %v2433_v39 = vadd.f32 1.0, %v3188_v38 }
 0x3af   :  { %3189 = vrcp.f32 %v2433_v39 }
 0x3b9   :  { %v3190_v40 = vpop.eup %3189 }
 0x3ba   :  { %2437 = vst.msk [vmem:[%s4211_s7] sm:$0x3] %vm2436_vm10, %v3190_v40 }

</bundles_post_ra>
